<compile_context>
chip_gen: v5e
topology: v5e:2x2
jax: 0.10.0
libtpu: 0.0.40
codegen_flags: <defaults>
</compile_context>

<pallas_src>
import functools

import jax
import jax.numpy as jnp
from jax.experimental import pallas as pl
from jax.experimental.pallas import tpu as pltpu

# MLP layer sizes: 1 -> 64 -> 128 -> 256 -> 128 -> 64 -> 1
LAYER_DIMS = [1, 64, 128, 256, 128, 64, 1]
NUM_LAYERS = len(LAYER_DIMS) - 1  # 6


def _feature_net_kernel(x_ref,
                        w1_ref, b1_ref, w2_ref, b2_ref, w3_ref, b3_ref,
                        w4_ref, b4_ref, w5_ref, b5_ref, w6_ref, b6_ref,
                        o_ref):
    """Whole 6-layer MLP for one (tile_n, 1) batch tile."""
    x = x_ref[...]                                            # (T, 1) f32

    # Layer 1: 1 -> 64.  A K=1 matmul is degenerate on the MXU (full weight
    # push / result pop for one MAC of depth); do it as a broadcast outer
    # product on the VPU instead.
    h = jnp.maximum(x * w1_ref[...] + b1_ref[...], 0.0)       # (T, 64) f32

    # Layers 2..5: MXU matmuls, bf16 inputs, f32 accumulation, ReLU in f32.
    for w_ref, b_ref in ((w2_ref, b2_ref), (w3_ref, b3_ref),
                         (w4_ref, b4_ref), (w5_ref, b5_ref)):
        h = jnp.dot(h.astype(jnp.bfloat16), w_ref[...],
                    preferred_element_type=jnp.float32) + b_ref[...]
        h = jnp.maximum(h, 0.0)

    # Layer 6: 64 -> 1.  An N=1 matmul produces a 1-lane MXU result; do a VPU
    # multiply and an XLU lane reduction instead (w6 is passed as (1, 64)).
    out = jnp.sum(h * w6_ref[...], axis=-1, keepdims=True) + b6_ref[...]
    o_ref[...] = out.astype(o_ref.dtype)


@functools.partial(jax.jit, static_argnames=("tile_n",))
def feature_network(x, params, *, tile_n=512):
    """x: (N, 1) float32.  params: list of (W (in,out) f32, b (1,out) f32).

    tile_n must be a multiple of 256 (MXU-aligned on v6e/v7x, and a multiple
    of 128 for v5e).  On v7x, pick tile_n so the padded batch gives >= 2 grid
    steps so the 'parallel' axis shards across both TensorCores.
    """
    assert tile_n % 256 == 0, "tile_n must be a multiple of 256"
    n = x.shape[0]
    n_pad = ((n + tile_n - 1) // tile_n) * tile_n
    if n_pad != n:
        x = jnp.pad(x, ((0, n_pad - n), (0, 0)))

    (w1, b1), (w2, b2), (w3, b3), (w4, b4), (w5, b5), (w6, b6) = params

    # Hidden-layer weights feed the MXU -> bf16 (activations cast in-kernel).
    w2, w3, w4, w5 = (w.astype(jnp.bfloat16) for w in (w2, w3, w4, w5))
    # Last-layer weight as a (1, 64) lane vector for the VPU/XLU path.
    w6 = w6.reshape(1, -1).astype(jnp.float32)
    b6 = b6.reshape(1, 1).astype(jnp.float32)

    flat_params = (w1, b1, w2, b2, w3, b3, w4, b4, w5, b5, w6, b6)

    # x / out tile over the grid; parameters are full-array blocks with a
    # constant block index, so they stay resident in VMEM across the grid.
    in_specs = [pl.BlockSpec((tile_n, 1), lambda i: (i, 0))]
    in_specs += [pl.BlockSpec(p.shape, lambda i: (0, 0)) for p in flat_params]
    out_spec = pl.BlockSpec((tile_n, 1), lambda i: (i, 0))

    out = pl.pallas_call(
        _feature_net_kernel,
        out_shape=jax.ShapeDtypeStruct((n_pad, 1), jnp.float32),
        grid_spec=pltpu.PrefetchScalarGridSpec(
            num_scalar_prefetch=0,
            grid=(n_pad // tile_n,),
            in_specs=in_specs,
            out_specs=out_spec,
        ),
        compiler_params=pltpu.CompilerParams(
            dimension_semantics=("parallel",),
            # Headroom for large tile_n (e.g. 4096) on v7x's 64 MiB VMEM.
            vmem_limit_bytes=48 * 1024 * 1024,
        ),
    )(x, *flat_params)
    return out[:n]


def init_params(key):
    """Deterministic init matching torch.nn.Linear default:
    U(-1/sqrt(fan_in), 1/sqrt(fan_in)) for both weight and bias.
    Weights stored transposed vs torch, i.e. (in, out)."""
    params = []
    for layer in range(NUM_LAYERS):
        fan_in = LAYER_DIMS[layer]
        fan_out = LAYER_DIMS[layer + 1]
        key, kw, kb = jax.random.split(key, 3)
        bound = 1.0 / (fan_in ** 0.5)
        w = jax.random.uniform(
            kw, (fan_in, fan_out), jnp.float32, minval=-bound, maxval=bound
        )
        b = jax.random.uniform(
            kb, (1, fan_out), jnp.float32, minval=-bound, maxval=bound
        )
        params.append((w, b))
    return params


def reference_forward(x, params, *, matmul_dtype=jnp.float32):
    """Pure-JAX reference of the PyTorch forward pass.

    matmul_dtype=bfloat16 mirrors the kernel's mixed-precision hidden layers
    (layers 2-5) for a tight numerical comparison; float32 is the exact
    PyTorch-equivalent computation."""
    h = x
    for layer, (w, b) in enumerate(params):
        if 1 <= layer <= 4:
            h = jnp.dot(h.astype(matmul_dtype), w.astype(matmul_dtype),
                        preferred_element_type=jnp.float32) + b
        else:
            h = h @ w + b
        if layer < NUM_LAYERS - 1:
            h = jnp.maximum(h, 0.0)
    return h


if __name__ == "__main__":
    key = jax.random.PRNGKey(0)
    key, kx = jax.random.split(key)

    batch = 64  # small demo batch; wrapper pads up to one 512-row tile
    x = jax.random.normal(kx, (batch, 1), dtype=jnp.float32)
    params = init_params(key)

    out = feature_network(x, params, tile_n=512)
    out = jax.block_until_ready(out)
    assert out.shape == (batch, 1)

    # Tight check against a reference using the same bf16 matmul precision.
    ref_bf16 = reference_forward(x, params, matmul_dtype=jnp.bfloat16)
    assert jnp.allclose(out, ref_bf16, atol=2e-3, rtol=2e-2), \
        "mismatch vs bf16-precision reference"

    # Loose check against the full-f32 (PyTorch-equivalent) forward pass.
    ref_f32 = reference_forward(x, params, matmul_dtype=jnp.float32)
    assert jnp.allclose(out, ref_f32, atol=5e-2, rtol=5e-2), \
        "mismatch vs f32 reference"

    print("KERNEL_OK")
</pallas_src>

<mosaic_0001>
module attributes {stable_mosaic.version = 11 : i64} {
  func.func @_feature_net_kernel(%arg0: i32, %arg1: memref<512x1xf32, #tpu.memory_space<vmem>>, %arg2: memref<1x64xf32, #tpu.memory_space<vmem>>, %arg3: memref<1x64xf32, #tpu.memory_space<vmem>>, %arg4: memref<64x128xbf16, #tpu.memory_space<vmem>>, %arg5: memref<1x128xf32, #tpu.memory_space<vmem>>, %arg6: memref<128x256xbf16, #tpu.memory_space<vmem>>, %arg7: memref<1x256xf32, #tpu.memory_space<vmem>>, %arg8: memref<256x128xbf16, #tpu.memory_space<vmem>>, %arg9: memref<1x128xf32, #tpu.memory_space<vmem>>, %arg10: memref<128x64xbf16, #tpu.memory_space<vmem>>, %arg11: memref<1x64xf32, #tpu.memory_space<vmem>>, %arg12: memref<1x64xf32, #tpu.memory_space<vmem>>, %arg13: memref<1x1xf32, #tpu.memory_space<vmem>>, %arg14: memref<512x1xf32, #tpu.memory_space<vmem>>) attributes {dimension_semantics = [#tpu.dimension_semantics<parallel>], iteration_bounds = array<i64: 1>, scalar_prefetch = 0 : i64, scratch_operands = 0 : i64, tpu.core_type = #tpu.core_type<tc>, window_params = [{transform_indices = @transform_0, window_bounds = array<i64: 512, 1>}, {pipeline_mode = #tpu.pipeline_mode<synchronous>, transform_indices = @transform_1, window_bounds = array<i64: 1, 64>}, {pipeline_mode = #tpu.pipeline_mode<synchronous>, transform_indices = @transform_2, window_bounds = array<i64: 1, 64>}, {pipeline_mode = #tpu.pipeline_mode<synchronous>, transform_indices = @transform_3, window_bounds = array<i64: 64, 128>}, {pipeline_mode = #tpu.pipeline_mode<synchronous>, transform_indices = @transform_4, window_bounds = array<i64: 1, 128>}, {pipeline_mode = #tpu.pipeline_mode<synchronous>, transform_indices = @transform_5, window_bounds = array<i64: 128, 256>}, {pipeline_mode = #tpu.pipeline_mode<synchronous>, transform_indices = @transform_6, window_bounds = array<i64: 1, 256>}, {pipeline_mode = #tpu.pipeline_mode<synchronous>, transform_indices = @transform_7, window_bounds = array<i64: 256, 128>}, {pipeline_mode = #tpu.pipeline_mode<synchronous>, transform_indices = @transform_8, window_bounds = array<i64: 1, 128>}, {pipeline_mode = #tpu.pipeline_mode<synchronous>, transform_indices = @transform_9, window_bounds = array<i64: 128, 64>}, {pipeline_mode = #tpu.pipeline_mode<synchronous>, transform_indices = @transform_10, window_bounds = array<i64: 1, 64>}, {pipeline_mode = #tpu.pipeline_mode<synchronous>, transform_indices = @transform_11, window_bounds = array<i64: 1, 64>}, {pipeline_mode = #tpu.pipeline_mode<synchronous>, transform_indices = @transform_12, window_bounds = array<i64: 1, 1>}, {transform_indices = @transform_13, window_bounds = array<i64: 512, 1>}]} {
    %c0 = arith.constant 0 : index
    %c0_0 = arith.constant 0 : index
    %0 = vector.load %arg1[%c0, %c0_0] : memref<512x1xf32, #tpu.memory_space<vmem>>, vector<512x1xf32>
    %c0_1 = arith.constant 0 : index
    %c0_2 = arith.constant 0 : index
    %1 = vector.load %arg2[%c0_1, %c0_2] : memref<1x64xf32, #tpu.memory_space<vmem>>, vector<1x64xf32>
    %2 = vector.broadcast %0 : vector<512x1xf32> to vector<512x64xf32>
    %3 = vector.broadcast %1 : vector<1x64xf32> to vector<512x64xf32>
    %4 = arith.mulf %2, %3 : vector<512x64xf32>
    %c0_3 = arith.constant 0 : index
    %c0_4 = arith.constant 0 : index
    %5 = vector.load %arg3[%c0_3, %c0_4] : memref<1x64xf32, #tpu.memory_space<vmem>>, vector<1x64xf32>
    %6 = vector.broadcast %5 : vector<1x64xf32> to vector<512x64xf32>
    %7 = arith.addf %4, %6 : vector<512x64xf32>
    %cst = arith.constant 0.000000e+00 : f32
    %8 = vector.broadcast %cst : f32 to vector<512x64xf32>
    %9 = arith.maximumf %7, %8 : vector<512x64xf32>
    %10 = arith.truncf %9 : vector<512x64xf32> to vector<512x64xbf16>
    %c0_5 = arith.constant 0 : index
    %c0_6 = arith.constant 0 : index
    %11 = vector.load %arg4[%c0_5, %c0_6] : memref<64x128xbf16, #tpu.memory_space<vmem>>, vector<64x128xbf16>
    %cst_7 = arith.constant dense<0.000000e+00> : vector<512x128xf32>
    %12 = tpu.matmul %10, %11, %cst_7 {dimension_numbers = #tpu.dot_dimension_numbers<[1], [0], [0], [1], [0, 0, 1, 1], [], []>} : vector<512x64xbf16>, vector<64x128xbf16>, vector<512x128xf32> -> vector<512x128xf32>
    %c0_8 = arith.constant 0 : index
    %c0_9 = arith.constant 0 : index
    %13 = vector.load %arg5[%c0_8, %c0_9] : memref<1x128xf32, #tpu.memory_space<vmem>>, vector<1x128xf32>
    %14 = vector.broadcast %13 : vector<1x128xf32> to vector<512x128xf32>
    %15 = arith.addf %12, %14 : vector<512x128xf32>
    %cst_10 = arith.constant 0.000000e+00 : f32
    %16 = vector.broadcast %cst_10 : f32 to vector<512x128xf32>
    %17 = arith.maximumf %15, %16 : vector<512x128xf32>
    %18 = arith.truncf %17 : vector<512x128xf32> to vector<512x128xbf16>
    %c0_11 = arith.constant 0 : index
    %c0_12 = arith.constant 0 : index
    %19 = vector.load %arg6[%c0_11, %c0_12] : memref<128x256xbf16, #tpu.memory_space<vmem>>, vector<128x256xbf16>
    %cst_13 = arith.constant dense<0.000000e+00> : vector<512x256xf32>
    %20 = tpu.matmul %18, %19, %cst_13 {dimension_numbers = #tpu.dot_dimension_numbers<[1], [0], [0], [1], [0, 0, 1, 1], [], []>} : vector<512x128xbf16>, vector<128x256xbf16>, vector<512x256xf32> -> vector<512x256xf32>
    %c0_14 = arith.constant 0 : index
    %c0_15 = arith.constant 0 : index
    %21 = vector.load %arg7[%c0_14, %c0_15] : memref<1x256xf32, #tpu.memory_space<vmem>>, vector<1x256xf32>
    %22 = vector.broadcast %21 : vector<1x256xf32> to vector<512x256xf32>
    %23 = arith.addf %20, %22 : vector<512x256xf32>
    %cst_16 = arith.constant 0.000000e+00 : f32
    %24 = vector.broadcast %cst_16 : f32 to vector<512x256xf32>
    %25 = arith.maximumf %23, %24 : vector<512x256xf32>
    %26 = arith.truncf %25 : vector<512x256xf32> to vector<512x256xbf16>
    %c0_17 = arith.constant 0 : index
    %c0_18 = arith.constant 0 : index
    %27 = vector.load %arg8[%c0_17, %c0_18] : memref<256x128xbf16, #tpu.memory_space<vmem>>, vector<256x128xbf16>
    %cst_19 = arith.constant dense<0.000000e+00> : vector<512x128xf32>
    %28 = tpu.matmul %26, %27, %cst_19 {dimension_numbers = #tpu.dot_dimension_numbers<[1], [0], [0], [1], [0, 0, 1, 1], [], []>} : vector<512x256xbf16>, vector<256x128xbf16>, vector<512x128xf32> -> vector<512x128xf32>
    %c0_20 = arith.constant 0 : index
    %c0_21 = arith.constant 0 : index
    %29 = vector.load %arg9[%c0_20, %c0_21] : memref<1x128xf32, #tpu.memory_space<vmem>>, vector<1x128xf32>
    %30 = vector.broadcast %29 : vector<1x128xf32> to vector<512x128xf32>
    %31 = arith.addf %28, %30 : vector<512x128xf32>
    %cst_22 = arith.constant 0.000000e+00 : f32
    %32 = vector.broadcast %cst_22 : f32 to vector<512x128xf32>
    %33 = arith.maximumf %31, %32 : vector<512x128xf32>
    %34 = arith.truncf %33 : vector<512x128xf32> to vector<512x128xbf16>
    %c0_23 = arith.constant 0 : index
    %c0_24 = arith.constant 0 : index
    %35 = vector.load %arg10[%c0_23, %c0_24] : memref<128x64xbf16, #tpu.memory_space<vmem>>, vector<128x64xbf16>
    %cst_25 = arith.constant dense<0.000000e+00> : vector<512x64xf32>
    %36 = tpu.matmul %34, %35, %cst_25 {dimension_numbers = #tpu.dot_dimension_numbers<[1], [0], [0], [1], [0, 0, 1, 1], [], []>} : vector<512x128xbf16>, vector<128x64xbf16>, vector<512x64xf32> -> vector<512x64xf32>
    %c0_26 = arith.constant 0 : index
    %c0_27 = arith.constant 0 : index
    %37 = vector.load %arg11[%c0_26, %c0_27] : memref<1x64xf32, #tpu.memory_space<vmem>>, vector<1x64xf32>
    %38 = vector.broadcast %37 : vector<1x64xf32> to vector<512x64xf32>
    %39 = arith.addf %36, %38 : vector<512x64xf32>
    %cst_28 = arith.constant 0.000000e+00 : f32
    %40 = vector.broadcast %cst_28 : f32 to vector<512x64xf32>
    %41 = arith.maximumf %39, %40 : vector<512x64xf32>
    %c0_29 = arith.constant 0 : index
    %c0_30 = arith.constant 0 : index
    %42 = vector.load %arg12[%c0_29, %c0_30] : memref<1x64xf32, #tpu.memory_space<vmem>>, vector<1x64xf32>
    %43 = vector.broadcast %42 : vector<1x64xf32> to vector<512x64xf32>
    %44 = arith.mulf %41, %43 : vector<512x64xf32>
    %cst_31 = arith.constant dense<0.000000e+00> : vector<512xf32>
    %45 = vector.multi_reduction <add>, %44, %cst_31 [1] : vector<512x64xf32> to vector<512xf32>
    %46 = vector.shape_cast %45 : vector<512xf32> to vector<512x1xf32>
    %c0_32 = arith.constant 0 : index
    %c0_33 = arith.constant 0 : index
    %47 = vector.load %arg13[%c0_32, %c0_33] : memref<1x1xf32, #tpu.memory_space<vmem>>, vector<1x1xf32>
    %48 = vector.broadcast %47 : vector<1x1xf32> to vector<512x1xf32>
    %49 = arith.addf %46, %48 : vector<512x1xf32>
    %c0_34 = arith.constant 0 : index
    %c0_35 = arith.constant 0 : index
    %50 = vector.load %arg14[%c0_34, %c0_35] : memref<512x1xf32, #tpu.memory_space<vmem>>, vector<512x1xf32>
    tpu.vector_store %arg14[%c0_34, %c0_35], %49 {strides = array<i32>} : memref<512x1xf32, #tpu.memory_space<vmem>>, vector<512x1xf32>,
    return
  }
  func.func @transform_0(%arg0: i32) -> (i32, i32) {
    %c0_i32 = arith.constant 0 : i32
    %c0_i32_0 = arith.constant 0 : i32
    return %arg0, %c0_i32 : i32, i32
  }
  func.func @transform_1(%arg0: i32) -> (i32, i32) {
    %c0_i32 = arith.constant 0 : i32
    %c0_i32_0 = arith.constant 0 : i32
    %c0_i32_1 = arith.constant 0 : i32
    return %c0_i32, %c0_i32_0 : i32, i32
  }
  func.func @transform_2(%arg0: i32) -> (i32, i32) {
    %c0_i32 = arith.constant 0 : i32
    %c0_i32_0 = arith.constant 0 : i32
    %c0_i32_1 = arith.constant 0 : i32
    return %c0_i32, %c0_i32_0 : i32, i32
  }
  func.func @transform_3(%arg0: i32) -> (i32, i32) {
    %c0_i32 = arith.constant 0 : i32
    %c0_i32_0 = arith.constant 0 : i32
    %c0_i32_1 = arith.constant 0 : i32
    return %c0_i32, %c0_i32_0 : i32, i32
  }
  func.func @transform_4(%arg0: i32) -> (i32, i32) {
    %c0_i32 = arith.constant 0 : i32
    %c0_i32_0 = arith.constant 0 : i32
    %c0_i32_1 = arith.constant 0 : i32
    return %c0_i32, %c0_i32_0 : i32, i32
  }
  func.func @transform_5(%arg0: i32) -> (i32, i32) {
    %c0_i32 = arith.constant 0 : i32
    %c0_i32_0 = arith.constant 0 : i32
    %c0_i32_1 = arith.constant 0 : i32
    return %c0_i32, %c0_i32_0 : i32, i32
  }
  func.func @transform_6(%arg0: i32) -> (i32, i32) {
    %c0_i32 = arith.constant 0 : i32
    %c0_i32_0 = arith.constant 0 : i32
    %c0_i32_1 = arith.constant 0 : i32
    return %c0_i32, %c0_i32_0 : i32, i32
  }
  func.func @transform_7(%arg0: i32) -> (i32, i32) {
    %c0_i32 = arith.constant 0 : i32
    %c0_i32_0 = arith.constant 0 : i32
    %c0_i32_1 = arith.constant 0 : i32
    return %c0_i32, %c0_i32_0 : i32, i32
  }
  func.func @transform_8(%arg0: i32) -> (i32, i32) {
    %c0_i32 = arith.constant 0 : i32
    %c0_i32_0 = arith.constant 0 : i32
    %c0_i32_1 = arith.constant 0 : i32
    return %c0_i32, %c0_i32_0 : i32, i32
  }
  func.func @transform_9(%arg0: i32) -> (i32, i32) {
    %c0_i32 = arith.constant 0 : i32
    %c0_i32_0 = arith.constant 0 : i32
    %c0_i32_1 = arith.constant 0 : i32
    return %c0_i32, %c0_i32_0 : i32, i32
  }
  func.func @transform_10(%arg0: i32) -> (i32, i32) {
    %c0_i32 = arith.constant 0 : i32
    %c0_i32_0 = arith.constant 0 : i32
    %c0_i32_1 = arith.constant 0 : i32
    return %c0_i32, %c0_i32_0 : i32, i32
  }
  func.func @transform_11(%arg0: i32) -> (i32, i32) {
    %c0_i32 = arith.constant 0 : i32
    %c0_i32_0 = arith.constant 0 : i32
    %c0_i32_1 = arith.constant 0 : i32
    return %c0_i32, %c0_i32_0 : i32, i32
  }
  func.func @transform_12(%arg0: i32) -> (i32, i32) {
    %c0_i32 = arith.constant 0 : i32
    %c0_i32_0 = arith.constant 0 : i32
    %c0_i32_1 = arith.constant 0 : i32
    return %c0_i32, %c0_i32_0 : i32, i32
  }
  func.func @transform_13(%arg0: i32) -> (i32, i32) {
    %c0_i32 = arith.constant 0 : i32
    %c0_i32_0 = arith.constant 0 : i32
    return %arg0, %c0_i32 : i32, i32
  }
}

</mosaic_0001>

<bundles_post_ra>
// kernel: feature_network.1
= control target key start
LH: loop header
LB: loop body
LE: loop exit
PB: predicated region body
PF: predicated region fallthrough
CT: control target
= control target key end

     0   :  { %v3238_v0 = vmov 0   ;;  %vm699_vm0 = vcmask 523264   ;;  %vm2888_vm1 = vcmask 7168   ;;  %s5033_s0 = inlined_call_operand.vmem [shape: f32[512,1], index: 0, kind: input, shape index: {}]   ;;  %s5034_s1 = inlined_call_operand.vmem [shape: f32[1,64], index: 1, kind: input, shape index: {}]   ;;  %s5035_s2 = inlined_call_operand.vmem [shape: f32[1,64], index: 2, kind: input, shape index: {}]   ;;  %s5036_s3 = inlined_call_operand.vmem [shape: bf16[64,128], index: 3, kind: input, shape index: {}]   ;;  %s5037_s4 = inlined_call_operand.vmem [shape: f32[1,128], index: 4, kind: input, shape index: {}]   ;;  %s5038_s5 = inlined_call_operand.vmem [shape: bf16[128,256], index: 5, kind: input, shape index: {}]   ;;  %s5039_s7 = inlined_call_operand.vmem [shape: bf16[256,128], index: 7, kind: input, shape index: {}]   ;;  %s5040_s6 = inlined_call_operand.vmem [shape: f32[1,256], index: 6, kind: input, shape index: {}]   ;;  %s5041_s8 = inlined_call_operand.vmem [shape: f32[1,128], index: 8, kind: input, shape index: {}]   ;;  %s5042_s9 = inlined_call_operand.vmem [shape: bf16[128,64], index: 9, kind: input, shape index: {}]   ;;  %s5043_s10 = inlined_call_operand.vmem [shape: f32[1,64], index: 10, kind: input, shape index: {}]   ;;  %s5044_s11 = inlined_call_operand.vmem [shape: f32[1,64], index: 11, kind: input, shape index: {}]   ;;  %s5045_s12 = inlined_call_operand.<no memory space> [shape: f32[1,1], index: 12, kind: input, shape index: {}]   ;;  %s5046_s13 = inlined_call_operand.vmem [shape: f32[512,1], index: 13, kind: output, shape index: {}]  }
   0x1   :  { %3224 = vset.pattern.permute.xlu2 %v3238_v0  ;;  %3223 = vset.pattern.permute.xlu1 %v3238_v0  ;;  %v51_v1 = vld [vmem:[%s5033_s0 + $0x20] sm:$0xff]  ;;  %v49_v2 = vld [vmem:[%s5033_s0 + $0x10] sm:$0xff]  ;;  %v52_v4 = vld [vmem:[%s5033_s0 + $0x28] sm:$0xff] }
   0x2   :  { %v47_v3 = vld [vmem:[%s5033_s0] sm:$0xff]  ;;  %3222 = vset.pattern.permute.xlu0 %v3238_v0  ;;  %134 = vperm.xlu2 %3224, %v51_v1   ;;  %v50_v5 = vld [vmem:[%s5033_s0 + $0x18] sm:$0xff]  ;;  %v48_v6 = vld [vmem:[%s5033_s0 + $0x8] sm:$0xff] }
   0x3   :  { %124 = vperm.xlu1 %3223, %v49_v2   ;;  %114 = vperm.xlu0 %3222, %v47_v3   ;;  %v55_v7 = vld [vmem:[%s5033_s0 + $0x40] sm:$0xff]  ;;  %v54_v8 = vld [vmem:[%s5033_s0 + $0x38] sm:$0xff]  ;;  %v53_v9 = vld [vmem:[%s5033_s0 + $0x30] sm:$0xff] }
   0x4   :  { %v58_v10 = vld [vmem:[%s5033_s0 + $0x58] sm:$0xff]  ;;  %v57_v11 = vld [vmem:[%s5033_s0 + $0x50] sm:$0xff]  ;;  %v56_v12 = vld [vmem:[%s5033_s0 + $0x48] sm:$0xff] }
   0x5   :  { %v61_v13 = vld [vmem:[%s5033_s0 + $0x70] sm:$0xff]  ;;  %v60_v14 = vld [vmem:[%s5033_s0 + $0x68] sm:$0xff]  ;;  %v59_v15 = vld [vmem:[%s5033_s0 + $0x60] sm:$0xff] }
   0x6   :  { %v64_v16 = vld [vmem:[%s5033_s0 + $0x88] sm:$0xff]  ;;  %v63_v17 = vld [vmem:[%s5033_s0 + $0x80] sm:$0xff]  ;;  %v62_v18 = vld [vmem:[%s5033_s0 + $0x78] sm:$0xff] }
   0x7   :  { %v67_v19 = vld [vmem:[%s5033_s0 + $0xa0] sm:$0xff]  ;;  %v66_v20 = vld [vmem:[%s5033_s0 + $0x98] sm:$0xff]  ;;  %v65_v21 = vld [vmem:[%s5033_s0 + $0x90] sm:$0xff] }
   0x8   :  { %v70_v22 = vld [vmem:[%s5033_s0 + $0xb8] sm:$0xff]  ;;  %v69_v23 = vld [vmem:[%s5033_s0 + $0xb0] sm:$0xff]  ;;  %v68_v24 = vld [vmem:[%s5033_s0 + $0xa8] sm:$0xff] }
   0x9   :  { %v73_v25 = vld [vmem:[%s5033_s0 + $0xd0] sm:$0xff]  ;;  %v72_v26 = vld [vmem:[%s5033_s0 + $0xc8] sm:$0xff]  ;;  %v71_v27 = vld [vmem:[%s5033_s0 + $0xc0] sm:$0xff] }
   0xa   :  { %139 = vperm.xlu2 %3224, %v52_v4   ;;  %v76_v28 = vld [vmem:[%s5033_s0 + $0xe8] sm:$0xff]  ;;  %v75_v29 = vld [vmem:[%s5033_s0 + $0xe0] sm:$0xff]  ;;  %v74_v30 = vld [vmem:[%s5033_s0 + $0xd8] sm:$0xff] }
   0xb   :  { %129 = vperm.xlu1 %3223, %v50_v5   ;;  %119 = vperm.xlu0 %3222, %v48_v6   ;;  %v79_v31 = vld [vmem:[%s5033_s0 + $0x100] sm:$0xff]  ;;  %v78_v32 = vld [vmem:[%s5033_s0 + $0xf8] sm:$0xff]  ;;  %v77_v33 = vld [vmem:[%s5033_s0 + $0xf0] sm:$0xff] }
   0xc   :  { %v3168_v34 = vld [vmem:[%s5036_s3 + $0x18] sm:$0xff]  ;;  %v81_v36 = vld [vmem:[%s5033_s0 + $0x110] sm:$0xff]  ;;  %v80_v37 = vld [vmem:[%s5033_s0 + $0x108] sm:$0xff] }
   0xd   :  { %v82_v35 = vld [vmem:[%s5033_s0 + $0x118] sm:$0xff]  ;;  %800 = vmatpush.bf16.msra.mxu0 %v3168_v34  ;;  %3209 = vmatpush.bf16.msra.mxu3 %v3168_v34  ;;  %v3167_v38 = vld [vmem:[%s5036_s3 + $0x10] sm:$0xff]  ;;  %v3166_v40 = vld [vmem:[%s5036_s3 + $0x8] sm:$0xff] }
   0xe   :  { %v85_v41 = vld [vmem:[%s5033_s0 + $0x130] sm:$0xff]  ;;  %v84_v42 = vld [vmem:[%s5033_s0 + $0x128] sm:$0xff]  ;;  %v83_v43 = vld [vmem:[%s5033_s0 + $0x120] sm:$0xff] }
   0xf   :  { %v3165_v44 = vld [vmem:[%s5036_s3] sm:$0xff]  ;;  %v88_v46 = vld [vmem:[%s5033_s0 + $0x148] sm:$0xff]  ;;  %v86_v48 = vld [vmem:[%s5033_s0 + $0x138] sm:$0xff] }
  0x10   :  { %v87_v47 = vld [vmem:[%s5033_s0 + $0x140] sm:$0xff]  ;;  %v90_v51 = vld [vmem:[%s5033_s0 + $0x158] sm:$0xff]  ;;  %v89_v52 = vld [vmem:[%s5033_s0 + $0x150] sm:$0xff] }
  0x11   :  { %801 = vmatpush.bf16.msra.mxu0 %v3167_v38  ;;  %3210 = vmatpush.bf16.msra.mxu3 %v3167_v38  ;;  %v91_v50 = vld [vmem:[%s5033_s0 + $0x160] sm:$0xff]  ;;  %v94_v57 = vld [vmem:[%s5033_s0 + $0x178] sm:$0xff]  ;;  %v93_v58 = vld [vmem:[%s5033_s0 + $0x170] sm:$0xff] }
  0x12   :  { %154 = vperm.xlu2 %3224, %v55_v7   ;;  %v3465_v55 = vld [vmem:[%s5034_s1] ss:$0 sm:$0xff]  ;;  %v92_v59 = vld [vmem:[%s5033_s0 + $0x168] sm:$0xff]  ;;  %v97_v2 = vld [vmem:[%s5033_s0 + $0x190] sm:$0xff] }
  0x13   :  { %149 = vperm.xlu1 %3223, %v54_v8   ;;  %144 = vperm.xlu0 %3222, %v53_v9   ;;  %v3479_v60 = vld [vmem:[%s5035_s2] ss:$0 sm:$0xff]  ;;  %v96_v5 = vld [vmem:[%s5033_s0 + $0x188] sm:$0xff] }
  0x14   :  { %v95_v6 = vld [vmem:[%s5033_s0 + $0x180] sm:$0xff] }
  0x15   :  { %802 = vmatpush.bf16.msra.mxu0 %v3166_v40  ;;  %3211 = vmatpush.bf16.msra.mxu3 %v3166_v40 }
  0x19   :  { %803 = vmatpush.bf16.msra.mxu0 %v3165_v44  ;;  %3212 = vmatpush.bf16.msra.mxu3 %v3165_v44 }
  0x1a   :  { %169 = vperm.xlu2 %3224, %v58_v10  }
  0x1b   :  { %164 = vperm.xlu1 %3223, %v57_v11   ;;  %159 = vperm.xlu0 %3222, %v56_v12   ;;  %v100_v12 = vld [vmem:[%s5033_s0 + $0x1a8] sm:$0xff] }
  0x22   :  { %184 = vperm.xlu2 %3224, %v61_v13  }
  0x23   :  { %179 = vperm.xlu1 %3223, %v60_v14   ;;  %174 = vperm.xlu0 %3222, %v59_v15  }
  0x2a   :  { %199 = vperm.xlu2 %3224, %v64_v16   ;;  %v99_v16 = vld [vmem:[%s5033_s0 + $0x1a0] sm:$0xff] }
  0x2b   :  { %194 = vperm.xlu1 %3223, %v63_v17   ;;  %189 = vperm.xlu0 %3222, %v62_v18   ;;  %v98_v17 = vld [vmem:[%s5033_s0 + $0x198] sm:$0xff] }
  0x32   :  { %214 = vperm.xlu2 %3224, %v67_v19  }
  0x33   :  { %209 = vperm.xlu1 %3223, %v66_v20   ;;  %204 = vperm.xlu0 %3222, %v65_v21  }
  0x3a   :  { %229 = vperm.xlu2 %3224, %v70_v22  }
  0x3b   :  { %224 = vperm.xlu1 %3223, %v69_v23   ;;  %219 = vperm.xlu0 %3222, %v68_v24  }
  0x42   :  { %244 = vperm.xlu2 %3224, %v73_v25   ;;  %v103_v25 = vld [vmem:[%s5033_s0 + $0x1c0] sm:$0xff] }
  0x43   :  { %239 = vperm.xlu1 %3223, %v72_v26   ;;  %234 = vperm.xlu0 %3222, %v71_v27  }
  0x4a   :  { %259 = vperm.xlu2 %3224, %v76_v28  }
  0x4b   :  { %254 = vperm.xlu1 %3223, %v75_v29   ;;  %249 = vperm.xlu0 %3222, %v74_v30   ;;  %v102_v30 = vld [vmem:[%s5033_s0 + $0x1b8] sm:$0xff] }
  0x52   :  { %274 = vperm.xlu2 %3224, %v79_v31   ;;  %v101_v31 = vld [vmem:[%s5033_s0 + $0x1b0] sm:$0xff] }
  0x53   :  { %269 = vperm.xlu1 %3223, %v78_v32   ;;  %264 = vperm.xlu0 %3222, %v77_v33  }
  0x5a   :  { %289 = vperm.xlu2 %3224, %v82_v35  }
  0x5b   :  { %284 = vperm.xlu1 %3223, %v81_v36   ;;  %279 = vperm.xlu0 %3222, %v80_v37  }
  0x5c   :  { %v3423_v39 = vpop.permute.xlu2 %134 }
  0x62   :  { %304 = vperm.xlu2 %3224, %v85_v41   ;;  %v106_v41 = vld [vmem:[%s5033_s0 + $0x1d8] sm:$0xff] }
  0x63   :  { %299 = vperm.xlu1 %3223, %v84_v42   ;;  %294 = vperm.xlu0 %3222, %v83_v43   ;;  %v439_v42 = vmul.f32 %v3465_v55, %v3423_v39 }
  0x64   :  { %v3440_v45 = vpop.permute.xlu2 %139 }
  0x65   :  { %v440_v43 = vmul.f32 %v3465_v55, %v3440_v45  ;;  %v507_v45 = vadd.f32 %v3479_v60, %v439_v42 }
  0x6a   :  { %319 = vperm.xlu2 %3224, %v88_v46  }
  0x6b   :  { %314 = vperm.xlu1 %3223, %v87_v47   ;;  %309 = vperm.xlu0 %3222, %v86_v48   ;;  %v105_v47 = vld [vmem:[%s5033_s0 + $0x1d0] sm:$0xff]  ;;  %v104_v48 = vld [vmem:[%s5033_s0 + $0x1c8] sm:$0xff] }
  0x6c   :  { %v3451_v49 = vpop.permute.xlu2 %154 }
  0x72   :  { %334 = vperm.xlu2 %3224, %v91_v50  }
  0x73   :  { %329 = vperm.xlu1 %3223, %v90_v51   ;;  %324 = vperm.xlu0 %3222, %v89_v52  }
  0x74   :  { %v170_v56 = vpop.permute.xlu2 %169 }
  0x75   :  { %v125_v53 = vpop.permute.xlu1 %124  ;;  %v115_v54 = vpop.permute.xlu0 %114  ;;  %v446_v13 = vmul.f32 %v3465_v55, %v170_v56 }
  0x76   :  { %v435_v61 = vmul.f32 %v3465_v55, %v115_v54  ;;  %v437_v14 = vmul.f32 %v3465_v55, %v125_v53  ;;  %v508_v53 = vadd.f32 %v3479_v60, %v440_v43 }
  0x77   :  { %v514_v19 = vadd.f32 %v3479_v60, %v446_v13 }
  0x78   :  { %v503_v0 = vadd.f32 %v3479_v60, %v435_v61  ;;  %v505_v20 = vadd.f32 %v3479_v60, %v437_v14 }
  0x79   :  { %v578_v26 = vmax.f32 %v514_v19, 0.0 }
  0x7a   :  { %349 = vperm.xlu2 %3224, %v94_v57   ;;  %v567_v7 = vmax.f32 %v503_v0, 0.0  ;;  %v569_v27 = vmax.f32 %v505_v20, 0.0  ;;  %v109_v0 = vld [vmem:[%s5033_s0 + $0x1f0] sm:$0xff] }
  0x7b   :  { %344 = vperm.xlu1 %3223, %v93_v58   ;;  %339 = vperm.xlu0 %3222, %v92_v59  }
  0x7c   :  { %v185_v3 = vpop.permute.xlu2 %184 }
  0x7d   :  { %v130_v62 = vpop.permute.xlu1 %129  ;;  %v120_v63 = vpop.permute.xlu0 %119  ;;  %v449_v50 = vmul.f32 %v3465_v55, %v185_v3 }
  0x7e   :  { %v436_v1 = vmul.f32 %v3465_v55, %v120_v63  ;;  %v438_v15 = vmul.f32 %v3465_v55, %v130_v62 }
  0x7f   :  { %v517_v58 = vadd.f32 %v3479_v60, %v449_v50 }
  0x80   :  { %v504_v4 = vadd.f32 %v3479_v60, %v436_v1  ;;  %v506_v21 = vadd.f32 %v3479_v60, %v438_v15  ;;  %v571_v1 = vmax.f32 %v507_v45, 0.0 }
  0x82   :  { %v568_v8 = vmax.f32 %v504_v4, 0.0  ;;  %364 = vperm.xlu2 %3224, %v97_v2   ;;  %v570_v28 = vmax.f32 %v506_v21, 0.0  ;;  %v572_v2 = vmax.f32 %v508_v53, 0.0 }
  0x83   :  { %359 = vperm.xlu1 %3223, %v96_v5   ;;  %354 = vperm.xlu0 %3222, %v95_v6   ;;  %v108_v5 = vld [vmem:[%s5033_s0 + $0x1e8] sm:$0xff]  ;;  %v107_v6 = vld [vmem:[%s5033_s0 + $0x1e0] sm:$0xff] }
  0x84   :  { %v631_v9 = vpack.c.bf16 %v568_v8, %v567_v7  ;;  %v200_v18 = vpop.permute.xlu2 %199  ;;  %v632_v34 = vpack.c.bf16 %v570_v28, %v569_v27  ;;  %v581_v7 = vmax.f32 %v517_v58, 0.0  ;;  %v633_v13 = vpack.c.bf16 %v572_v2, %v571_v1 }
  0x85   :  { %v3494_v10 = vpop.permute.xlu1 %149  ;;  %v3496_v11 = vpop.permute.xlu0 %144  ;;  %v452_v51 = vmul.f32 %v3465_v55, %v200_v18  ;;  %v443_v58 = vmul.f32 %v3465_v55, %v3451_v49 }
  0x86   :  { %2973 = vmatmul.msk.bf16.vlgmr.msra.gmra.mxu0 %vm699_vm0, %v631_v9  ;;  %v442_v20 = vmul.f32 %v3465_v55, %v3494_v10  ;;  %v441_v21 = vmul.f32 %v3465_v55, %v3496_v11 }
  0x87   :  { %v520_v59 = vadd.f32 %v3479_v60, %v452_v51 }
  0x88   :  { %v510_v10 = vadd.f32 %v3479_v60, %v442_v20  ;;  %v509_v11 = vadd.f32 %v3479_v60, %v441_v21 }
  0x89   :  { %v584_v8 = vmax.f32 %v520_v59, 0.0 }
  0x8a   :  { %379 = vperm.xlu2 %3224, %v100_v12  }
  0x8b   :  { %374 = vperm.xlu1 %3223, %v99_v16   ;;  %369 = vperm.xlu0 %3222, %v98_v17  }
  0x8c   :  { %v215_v33 = vpop.permute.xlu2 %214 }
  0x8d   :  { %v165_v22 = vpop.permute.xlu1 %164  ;;  %v3514_v23 = vpop.permute.xlu0 %159  ;;  %v455_v27 = vmul.f32 %v3465_v55, %v215_v33 }
  0x8e   :  { %v445_v24 = vmul.f32 %v3465_v55, %v165_v22  ;;  %v444_v59 = vmul.f32 %v3465_v55, %v3514_v23 }
  0x90   :  { %v513_v29 = vadd.f32 %v3479_v60, %v445_v24 }
  0x92   :  { %v577_v32 = vmax.f32 %v513_v29, 0.0  ;;  %394 = vperm.xlu2 %3224, %v103_v25  }
  0x93   :  { %389 = vperm.xlu1 %3223, %v102_v30   ;;  %384 = vperm.xlu0 %3222, %v101_v31  }
  0x94   :  { %v3527_v35 = vpack.c.bf16 %v578_v26, %v577_v32  ;;  %v230_v61 = vpop.permute.xlu2 %229  ;;  %v110_v26 = vld [vmem:[%s5033_s0 + $0x1f8] sm:$0xff] }
  0x95   :  { %v180_v36 = vpop.permute.xlu1 %179  ;;  %v175_v37 = vpop.permute.xlu0 %174  ;;  %v458_v28 = vmul.f32 %v3465_v55, %v230_v61 }
  0x96   :  { %v448_v38 = vmul.f32 %v3465_v55, %v180_v36  ;;  %v447_v40 = vmul.f32 %v3465_v55, %v175_v37  ;;  %2974 = vmatmul.msk.bf16.gmra.mxu0 %vm699_vm0, %v632_v34  ;;  %v523_v36 = vadd.f32 %v3479_v60, %v455_v27 }
  0x97   :  { %v526_v37 = vadd.f32 %v3479_v60, %v458_v28 }
  0x98   :  { %v516_v44 = vadd.f32 %v3479_v60, %v448_v38  ;;  %v515_v46 = vadd.f32 %v3479_v60, %v447_v40  ;;  %v574_v40 = vmax.f32 %v510_v10, 0.0 }
  0x9a   :  { %v580_v39 = vmax.f32 %v516_v44, 0.0  ;;  %v579_v52 = vmax.f32 %v515_v46, 0.0  ;;  %409 = vperm.xlu2 %3224, %v106_v41   ;;  %v573_v41 = vmax.f32 %v509_v11, 0.0  ;;  %v587_v44 = vmax.f32 %v523_v36, 0.0 }
  0x9b   :  { %404 = vperm.xlu1 %3223, %v105_v47   ;;  %399 = vperm.xlu0 %3222, %v104_v48   ;;  %v590_v46 = vmax.f32 %v526_v37, 0.0 }
  0x9c   :  { %v3551_v54 = vpack.c.bf16 %v580_v39, %v579_v52  ;;  %v245_v22 = vpop.permute.xlu2 %244  ;;  %v634_v51 = vpack.c.bf16 %v574_v40, %v573_v41 }
  0x9d   :  { %v195_v56 = vpop.permute.xlu1 %194  ;;  %v190_v57 = vpop.permute.xlu0 %189 }
  0x9e   :  { %v451_v62 = vmul.f32 %v3465_v55, %v195_v56  ;;  %v450_v63 = vmul.f32 %v3465_v55, %v190_v57 }
  0xa0   :  { %v519_v3 = vadd.f32 %v3479_v60, %v451_v62  ;;  %v518_v4 = vadd.f32 %v3479_v60, %v450_v63  ;;  %v461_v63 = vmul.f32 %v3465_v55, %v245_v22 }
  0xa2   :  { %v583_v9 = vmax.f32 %v519_v3, 0.0  ;;  %v582_v12 = vmax.f32 %v518_v4, 0.0  ;;  %424 = vperm.xlu2 %3224, %v109_v0   ;;  %v511_v3 = vadd.f32 %v3479_v60, %v443_v58  ;;  %v512_v4 = vadd.f32 %v3479_v60, %v444_v59 }
  0xa3   :  { %419 = vperm.xlu1 %3223, %v108_v5   ;;  %414 = vperm.xlu0 %3222, %v107_v6   ;;  %v529_v23 = vadd.f32 %v3479_v60, %v461_v63  ;;  %v3182_v63 = vld [vmem:[%s5038_s5 + $0x64] sm:$0xf0] }
  0xa4   :  { %v3568_v14 = vpack.c.bf16 %v582_v12, %v581_v7  ;;  %v3570_v15 = vpack.c.bf16 %v584_v8, %v583_v9  ;;  %v260_v47 = vpop.permute.xlu2 %259 }
  0xa5   :  { %v210_v16 = vpop.permute.xlu1 %209  ;;  %v205_v17 = vpop.permute.xlu0 %204  ;;  %v464_v0 = vmul.f32 %v3465_v55, %v260_v47 }
  0xa6   :  { %v454_v18 = vmul.f32 %v3465_v55, %v210_v16  ;;  %v453_v19 = vmul.f32 %v3465_v55, %v205_v17  ;;  %2975 = vmatmul.msk.bf16.gmra.mxu0 %vm699_vm0, %v633_v13  ;;  %v575_v13 = vmax.f32 %v511_v3, 0.0  ;;  %v576_v16 = vmax.f32 %v512_v4, 0.0 }
  0xa7   :  { %v532_v8 = vadd.f32 %v3479_v60, %v464_v0 }
  0xa8   :  { %v522_v24 = vadd.f32 %v3479_v60, %v454_v18  ;;  %v521_v25 = vadd.f32 %v3479_v60, %v453_v19  ;;  %v593_v19 = vmax.f32 %v529_v23, 0.0 }
  0xa9   :  { %v596_v20 = vmax.f32 %v532_v8, 0.0  ;;  %v3039_v8 = vld [vmem:[%s5038_s5 + $0x40] sm:$0xf] }
  0xaa   :  { %v586_v29 = vmax.f32 %v522_v24, 0.0  ;;  %v585_v30 = vmax.f32 %v521_v25, 0.0 }
  0xab   :  { %429 = vperm.xlu0 %3222, %v110_v26   ;;  %v635_v26 = vpack.c.bf16 %v576_v16, %v575_v13 }
  0xac   :  { %v3588_v31 = vpack.c.bf16 %v586_v29, %v585_v30  ;;  %v275_v5 = vpop.permute.xlu2 %274 }
  0xad   :  { %v225_v32 = vpop.permute.xlu1 %224  ;;  %v220_v34 = vpop.permute.xlu0 %219 }
  0xae   :  { %v457_v38 = vmul.f32 %v3465_v55, %v225_v32  ;;  %v456_v33 = vmul.f32 %v3465_v55, %v220_v34  ;;  %v467_v34 = vmul.f32 %v3465_v55, %v275_v5  ;;  %v3047_v5 = vld [vmem:[%s5038_s5 + $0x50] sm:$0xf] }
  0xb0   :  { %v525_v42 = vadd.f32 %v3479_v60, %v457_v38  ;;  %v524_v43 = vadd.f32 %v3479_v60, %v456_v33 }
  0xb2   :  { %v589_v48 = vmax.f32 %v525_v42, 0.0  ;;  %v588_v50 = vmax.f32 %v524_v43, 0.0  ;;  %v535_v42 = vadd.f32 %v3479_v60, %v467_v34  ;;  %v3007_v34 = vld [vmem:[%s5038_s5] sm:$0xf] }
  0xb4   :  { %v3596_v39 = vpack.c.bf16 %v588_v50, %v587_v44  ;;  %v3598_v52 = vpack.c.bf16 %v590_v46, %v589_v48  ;;  %v290_v10 = vpop.permute.xlu2 %289  ;;  %v3063_v50 = vld [vmem:[%s5038_s5 + $0x70] sm:$0xf] }
  0xb5   :  { %v240_v45 = vpop.permute.xlu1 %239  ;;  %v235_v53 = vpop.permute.xlu0 %234  ;;  %v470_v36 = vmul.f32 %v3465_v55, %v290_v10  ;;  %v3172_v10 = vld [vmem:[%s5038_s5 + $0x14] sm:$0xf0] }
  0xb6   :  { %v460_v56 = vmul.f32 %v3465_v55, %v240_v45  ;;  %v459_v57 = vmul.f32 %v3465_v55, %v235_v53  ;;  %2976 = vmatmul.msk.bf16.gmra.mxu0 %vm699_vm0, %v634_v51  ;;  %v3184_v51 = vld [vmem:[%s5038_s5 + $0x74] sm:$0xf0]  ;;  %v599_v53 = vmax.f32 %v535_v42, 0.0 }
  0xb7   :  { %v538_v43 = vadd.f32 %v3479_v60, %v470_v36  ;;  %v3064_v45 = vor.u32 %v3184_v51, %v3063_v50  ;;  %v3170_v36 = vld [vmem:[%s5038_s5 + $0x4] sm:$0xf0] }
  0xb8   :  { %v528_v61 = vadd.f32 %v3479_v60, %v460_v56  ;;  %v527_v62 = vadd.f32 %v3479_v60, %v459_v57 }
  0xb9   :  { %v602_v56 = vmax.f32 %v538_v43, 0.0  ;;  %1163 = vmatpush.bf16.msra.mxu1 %v3064_v45  ;;  %3213 = vmatpush.bf16.msra.mxu2 %v3064_v45 }
  0xba   :  { %v592_v1 = vmax.f32 %v528_v61, 0.0  ;;  %v591_v2 = vmax.f32 %v527_v62, 0.0  ;;  %v3055_v62 = vld [vmem:[%s5038_s5 + $0x60] sm:$0xf] }
  0xbc   :  { %v3613_v6 = vpack.c.bf16 %v592_v1, %v591_v2  ;;  %v3056_v2 = vor.u32 %v3182_v63, %v3055_v62 }
  0xbd   :  { %v255_v49 = vpop.permute.xlu1 %254  ;;  %v250_v7 = vpop.permute.xlu0 %249 }
  0xbe   :  { %v463_v9 = vmul.f32 %v3465_v55, %v255_v49  ;;  %v462_v12 = vmul.f32 %v3465_v55, %v250_v7  ;;  %1164 = vmatpush.bf16.msra.mxu1 %v3056_v2  ;;  %3214 = vmatpush.bf16.msra.mxu2 %v3056_v2  ;;  %v3180_v49 = vld [vmem:[%s5038_s5 + $0x54] sm:$0xf0] }
  0xbf   :  { %v3048_v7 = vor.u32 %v3180_v49, %v3047_v5 }
  0xc0   :  { %v531_v17 = vadd.f32 %v3479_v60, %v463_v9  ;;  %v530_v18 = vadd.f32 %v3479_v60, %v462_v12  ;;  %v3178_v9 = vld [vmem:[%s5038_s5 + $0x44] sm:$0xf0] }
  0xc1   :  { %v3040_v12 = vor.u32 %v3178_v9, %v3039_v8 }
  0xc2   :  { %v595_v21 = vmax.f32 %v531_v17, 0.0  ;;  %v594_v22 = vmax.f32 %v530_v18, 0.0  ;;  %1165 = vmatpush.bf16.msra.mxu1 %v3048_v7  ;;  %3215 = vmatpush.bf16.msra.mxu2 %v3048_v7  ;;  %v3031_v17 = vld [vmem:[%s5038_s5 + $0x30] sm:$0xf]  ;;  %v3176_v18 = vld [vmem:[%s5038_s5 + $0x34] sm:$0xf0] }
  0xc4   :  { %v3621_v24 = vpack.c.bf16 %v596_v20, %v595_v21  ;;  %v3623_v25 = vpack.c.bf16 %v594_v22, %v593_v19  ;;  %v3032_v19 = vor.u32 %v3176_v18, %v3031_v17  ;;  %v3023_v21 = vld [vmem:[%s5038_s5 + $0x20] sm:$0xf]  ;;  %v3174_v22 = vld [vmem:[%s5038_s5 + $0x24] sm:$0xf0] }
  0xc5   :  { %v270_v27 = vpop.permute.xlu1 %269  ;;  %v265_v28 = vpop.permute.xlu0 %264 }
  0xc6   :  { %v466_v29 = vmul.f32 %v3465_v55, %v270_v27  ;;  %v465_v30 = vmul.f32 %v3465_v55, %v265_v28  ;;  %2977 = vmatmul.msk.bf16.gmra.mxu0 %vm699_vm0, %v635_v26  ;;  %1166 = vmatpush.bf16.msra.mxu1 %v3040_v12  ;;  %v3024_v27 = vor.u32 %v3174_v22, %v3023_v21  ;;  %v305_v28 = vpop.permute.xlu2 %304 }
  0xc7   :  { %3216 = vmatpush.bf16.msra.mxu2 %v3040_v12 }
  0xc8   :  { %v534_v11 = vadd.f32 %v3479_v60, %v466_v29  ;;  %v533_v32 = vadd.f32 %v3479_v60, %v465_v30  ;;  %v3015_v30 = vld [vmem:[%s5038_s5 + $0x10] sm:$0xf] }
  0xca   :  { %v598_v37 = vmax.f32 %v534_v11, 0.0  ;;  %v597_v38 = vmax.f32 %v533_v32, 0.0  ;;  %1167 = vmatpush.bf16.msra.mxu1 %v3032_v19  ;;  %v3016_v11 = vor.u32 %v3172_v10, %v3015_v30  ;;  %v473_v32 = vmul.f32 %v3465_v55, %v305_v28 }
  0xcb   :  { %3217 = vmatpush.bf16.msra.mxu2 %v3032_v19 }
  0xcc   :  { %v3632_v33 = vpack.c.bf16 %v598_v37, %v597_v38  ;;  %v3008_v37 = vor.u32 %v3170_v36, %v3007_v34  ;;  %v541_v38 = vadd.f32 %v3479_v60, %v473_v32 }
  0xcd   :  { %v285_v40 = vpop.permute.xlu1 %284  ;;  %v280_v41 = vpop.permute.xlu0 %279 }
  0xce   :  { %v469_v44 = vmul.f32 %v3465_v55, %v285_v40  ;;  %v468_v46 = vmul.f32 %v3465_v55, %v280_v41  ;;  %1168 = vmatpush.bf16.msra.mxu1 %v3024_v27  ;;  %v605_v41 = vmax.f32 %v541_v38, 0.0 }
  0xcf   :  { %3218 = vmatpush.bf16.msra.mxu2 %v3024_v27 }
  0xd0   :  { %v537_v47 = vadd.f32 %v3479_v60, %v469_v44  ;;  %v536_v48 = vadd.f32 %v3479_v60, %v468_v46  ;;  %v320_v44 = vpop.permute.xlu2 %319 }
  0xd2   :  { %v601_v57 = vmax.f32 %v537_v47, 0.0  ;;  %v600_v58 = vmax.f32 %v536_v48, 0.0  ;;  %1169 = vmatpush.bf16.msra.mxu1 %v3016_v11  ;;  %v476_v47 = vmul.f32 %v3465_v55, %v320_v44 }
  0xd3   :  { %3219 = vmatpush.bf16.msra.mxu2 %v3016_v11 }
  0xd4   :  { %v3646_v59 = vpack.c.bf16 %v600_v58, %v599_v53  ;;  %v648_v61 = vpack.c.bf16 %v602_v56, %v601_v57  ;;  %v544_v50 = vadd.f32 %v3479_v60, %v476_v47 }
  0xd5   :  { %v300_v0 = vpop.permute.xlu1 %299  ;;  %v295_v1 = vpop.permute.xlu0 %294 }
  0xd6   :  { %2978 = vmatmul.msk.bf16.gmra.mxu0 %vm699_vm0, %v3527_v35  ;;  %2990 = vmatmul.msk.bf16.vlgmr.msra.gmra.mxu3 %vm699_vm0, %v648_v61  ;;  %v472_v3 = vmul.f32 %v3465_v55, %v300_v0  ;;  %v471_v4 = vmul.f32 %v3465_v55, %v295_v1  ;;  %v608_v45 = vmax.f32 %v544_v50, 0.0 }
  0xd7   :  { %1170 = vmatpush.bf16.msra.mxu1 %v3008_v37  ;;  %3220 = vmatpush.bf16.msra.mxu2 %v3008_v37 }
  0xd8   :  { %v540_v35 = vadd.f32 %v3479_v60, %v472_v3  ;;  %v539_v23 = vadd.f32 %v3479_v60, %v471_v4  ;;  %v335_v9 = vpop.permute.xlu2 %334 }
  0xda   :  { %v604_v13 = vmax.f32 %v540_v35, 0.0  ;;  %v603_v16 = vmax.f32 %v539_v23, 0.0 }
  0xdc   :  { %v649_v20 = vpack.c.bf16 %v604_v13, %v603_v16  ;;  %v479_v13 = vmul.f32 %v3465_v55, %v335_v9 }
  0xdd   :  { %v310_v26 = vpop.permute.xlu0 %309  ;;  %v315_v43 = vpop.permute.xlu1 %314 }
  0xde   :  { %v474_v29 = vmul.f32 %v3465_v55, %v310_v26  ;;  %v475_v46 = vmul.f32 %v3465_v55, %v315_v43 }
  0xe0   :  { %v543_v48 = vadd.f32 %v3479_v60, %v475_v46  ;;  %v350_v10 = vpop.permute.xlu2 %349 }
  0xe1   :  { %v482_v32 = vmul.f32 %v3465_v55, %v350_v10 }
  0xe2   :  { %v607_v51 = vmax.f32 %v543_v48, 0.0 }
  0xe3   :  { %v550_v38 = vadd.f32 %v3479_v60, %v482_v32 }
  0xe4   :  { %v651_v56 = vpack.c.bf16 %v608_v45, %v607_v51 }
  0xe5   :  { %v330_v57 = vpop.permute.xlu1 %329  ;;  %v325_v58 = vpop.permute.xlu0 %324  ;;  %v614_v43 = vmax.f32 %v550_v38, 0.0 }
  0xe6   :  { %2979 = vmatmul.msk.bf16.gmra.mxu0 %vm699_vm0, %v3551_v54  ;;  %2991 = vmatmul.msk.bf16.gmra.mxu3 %vm699_vm0, %v649_v20  ;;  %v542_v54 = vadd.f32 %v3479_v60, %v474_v29  ;;  %v478_v61 = vmul.f32 %v3465_v55, %v330_v57  ;;  %v477_v62 = vmul.f32 %v3465_v55, %v325_v58 }
  0xe7   :  { %v547_v20 = vadd.f32 %v3479_v60, %v479_v13 }
  0xe8   :  { %v606_v40 = vmax.f32 %v542_v54, 0.0  ;;  %v546_v1 = vadd.f32 %v3479_v60, %v478_v61  ;;  %v545_v2 = vadd.f32 %v3479_v60, %v477_v62 }
  0xe9   :  { %v611_v27 = vmax.f32 %v547_v20, 0.0 }
  0xea   :  { %v650_v42 = vpack.c.bf16 %v606_v40, %v605_v41  ;;  %v610_v49 = vmax.f32 %v546_v1, 0.0  ;;  %v609_v7 = vmax.f32 %v545_v2, 0.0 }
  0xec   :  { %v652_v23 = vpack.c.bf16 %v610_v49, %v609_v7 }
  0xed   :  { %v340_v8 = vpop.permute.xlu0 %339  ;;  %v345_v30 = vpop.permute.xlu1 %344 }
  0xee   :  { %v480_v12 = vmul.f32 %v3465_v55, %v340_v8  ;;  %v481_v11 = vmul.f32 %v3465_v55, %v345_v30 }
  0xf0   :  { %v548_v18 = vadd.f32 %v3479_v60, %v480_v12  ;;  %v549_v36 = vadd.f32 %v3479_v60, %v481_v11 }
  0xf2   :  { %v612_v26 = vmax.f32 %v548_v18, 0.0 }
  0xf4   :  { %v653_v29 = vpack.c.bf16 %v612_v26, %v611_v27 }
  0xf5   :  { %v360_v47 = vpop.permute.xlu1 %359  ;;  %v355_v48 = vpop.permute.xlu0 %354 }
  0xf6   :  { %2980 = vmatmul.msk.bf16.gmra.mxu0 %vm699_vm0, %v3568_v14  ;;  %2992 = vmatmul.msk.bf16.gmra.mxu3 %vm699_vm0, %v650_v42  ;;  %v3714_v14 = vld [vmem:[%s5037_s4] ss:$0 sm:$0xff]  ;;  %v613_v42 = vmax.f32 %v549_v36, 0.0  ;;  %v484_v50 = vmul.f32 %v3465_v55, %v360_v47  ;;  %v483_v51 = vmul.f32 %v3465_v55, %v355_v48 }
  0xf8   :  { %v654_v46 = vpack.c.bf16 %v614_v43, %v613_v42  ;;  %v551_v57 = vadd.f32 %v3479_v60, %v483_v51 }
  0xfd   :  { %v375_v20 = vpop.permute.xlu1 %374 }
 0x103   :  { %v805_v53 = vpop.f32.mrf.mxu0 }
 0x104   :  { %v806_v63 = vadd.f32 %v3714_v14, %v805_v53 }
 0x106   :  { %2981 = vmatmul.msk.bf16.gmra.mxu0 %vm699_vm0, %v3570_v15  ;;  %2993 = vmatmul.msk.bf16.gmra.mxu3 %vm699_vm0, %v651_v56  ;;  %v965_v4 = vmax.f32 %v806_v63, 0.0  ;;  %v552_v56 = vadd.f32 %v3479_v60, %v484_v50 }
 0x108   :  { %v616_v63 = vmax.f32 %v552_v56, 0.0 }
 0x10b   :  { %v807_v0 = vpop.f32.mrf.mxu0 }
 0x10c   :  { %v808_v3 = vadd.f32 %v3714_v14, %v807_v0  ;;  %v615_v0 = vmax.f32 %v551_v57, 0.0 }
 0x10e   :  { %v966_v5 = vmax.f32 %v808_v3, 0.0  ;;  %v655_v2 = vpack.c.bf16 %v616_v63, %v615_v0  ;;  %v370_v3 = vpop.permute.xlu0 %369 }
 0x110   :  { %v3725_v15 = vpack.c.bf16 %v966_v5, %v965_v4  ;;  %v365_v4 = vpop.permute.xlu2 %364  ;;  %v486_v5 = vmul.f32 %v3465_v55, %v370_v3 }
 0x111   :  { %v485_v49 = vmul.f32 %v3465_v55, %v365_v4 }
 0x112   :  { %1171 = vmatmul.bf16.vlgmr.msra.gmra.mxu1 %v3725_v15 }
 0x113   :  { %v810_v35 = vpop.f32.mrf.mxu0  ;;  %v553_v9 = vadd.f32 %v3479_v60, %v485_v49 }
 0x114   :  { %v811_v16 = vadd.f32 %v3714_v14, %v810_v35 }
 0x116   :  { %2982 = vmatmul.msk.bf16.gmra.mxu0 %vm699_vm0, %v3588_v31  ;;  %2994 = vmatmul.msk.bf16.gmra.mxu3 %vm699_vm0, %v652_v23  ;;  %v967_v21 = vmax.f32 %v811_v16, 0.0  ;;  %v554_v23 = vadd.f32 %v3479_v60, %v486_v5  ;;  %v385_v47 = vpop.permute.xlu0 %384 }
 0x117   :  { %v489_v51 = vmul.f32 %v3465_v55, %v385_v47 }
 0x118   :  { %v618_v16 = vmax.f32 %v554_v23, 0.0 }
 0x11b   :  { %v812_v17 = vpop.f32.mrf.mxu0 }
 0x11c   :  { %v813_v19 = vadd.f32 %v3714_v14, %v812_v17  ;;  %v617_v17 = vmax.f32 %v553_v9, 0.0 }
 0x11e   :  { %v968_v22 = vmax.f32 %v813_v19, 0.0  ;;  %v656_v19 = vpack.c.bf16 %v618_v16, %v617_v17  ;;  %v400_v23 = vpop.permute.xlu0 %399 }
 0x120   :  { %v3737_v31 = vpack.c.bf16 %v968_v22, %v967_v21  ;;  %v380_v21 = vpop.permute.xlu2 %379  ;;  %v487_v22 = vmul.f32 %v3465_v55, %v375_v20 }
 0x121   :  { %v488_v27 = vmul.f32 %v3465_v55, %v380_v21 }
 0x122   :  { %1176 = vmatmul.bf16.gmra.mxu1 %v3737_v31  ;;  %v555_v30 = vadd.f32 %v3479_v60, %v487_v22 }
 0x123   :  { %v815_v28 = vpop.f32.mrf.mxu0  ;;  %v556_v11 = vadd.f32 %v3479_v60, %v488_v27 }
 0x124   :  { %v816_v54 = vadd.f32 %v3714_v14, %v815_v28 }
 0x125   :  { %v620_v38 = vmax.f32 %v556_v11, 0.0 }
 0x126   :  { %2983 = vmatmul.msk.bf16.gmra.mxu0 %vm699_vm0, %v3596_v39  ;;  %2995 = vmatmul.msk.bf16.gmra.mxu3 %vm699_vm0, %v653_v29  ;;  %v969_v40 = vmax.f32 %v816_v54, 0.0 }
 0x128   :  { %v395_v9 = vpop.permute.xlu2 %394 }
 0x129   :  { %v491_v16 = vmul.f32 %v3465_v55, %v395_v9 }
 0x12b   :  { %v817_v34 = vpop.f32.mrf.mxu0  ;;  %v559_v21 = vadd.f32 %v3479_v60, %v491_v16 }
 0x12c   :  { %v818_v37 = vadd.f32 %v3714_v14, %v817_v34 }
 0x12e   :  { %v970_v41 = vmax.f32 %v818_v37, 0.0 }
 0x130   :  { %v3749_v39 = vpack.c.bf16 %v970_v41, %v969_v40 }
 0x132   :  { %1181 = vmatmul.bf16.gmra.mxu1 %v3749_v39 }
 0x133   :  { %v820_v44 = vpop.f32.mrf.mxu0 }
 0x134   :  { %v821_v45 = vadd.f32 %v3714_v14, %v820_v44 }
 0x136   :  { %2984 = vmatmul.msk.bf16.gmra.mxu0 %vm699_vm0, %v3598_v52  ;;  %2996 = vmatmul.msk.bf16.gmra.mxu3 %vm699_vm0, %v654_v46  ;;  %v971_v61 = vmax.f32 %v821_v45, 0.0  ;;  %v390_v46 = vpop.permute.xlu1 %389 }
 0x137   :  { %v490_v50 = vmul.f32 %v3465_v55, %v390_v46 }
 0x139   :  { %v558_v57 = vadd.f32 %v3479_v60, %v490_v50 }
 0x13b   :  { %v822_v53 = vpop.f32.mrf.mxu0  ;;  %v622_v63 = vmax.f32 %v558_v57, 0.0 }
 0x13c   :  { %v823_v58 = vadd.f32 %v3714_v14, %v822_v53 }
 0x13e   :  { %v972_v62 = vmax.f32 %v823_v58, 0.0  ;;  %v557_v58 = vadd.f32 %v3479_v60, %v489_v51  ;;  %v3190_v51 = vld [vmem:[%s5039_s7 + $0x28] sm:$0xff] }
 0x140   :  { %v3761_v52 = vpack.c.bf16 %v972_v62, %v971_v61  ;;  %v621_v0 = vmax.f32 %v557_v58, 0.0 }
 0x142   :  { %1186 = vmatmul.bf16.gmra.mxu1 %v3761_v52 }
 0x143   :  { %v825_v1 = vpop.f32.mrf.mxu0 }
 0x144   :  { %v826_v7 = vadd.f32 %v3714_v14, %v825_v1 }
 0x146   :  { %2985 = vmatmul.msk.bf16.gmra.mxu0 %vm699_vm0, %v3613_v6  ;;  %2997 = vmatmul.msk.bf16.gmra.mxu3 %vm699_vm0, %v655_v2  ;;  %v973_v12 = vmax.f32 %v826_v7, 0.0 }
 0x14b   :  { %v827_v35 = vpop.f32.mrf.mxu0 }
 0x14c   :  { %v828_v8 = vadd.f32 %v3714_v14, %v827_v35  ;;  %v658_v35 = vpack.c.bf16 %v622_v63, %v621_v0  ;;  %v3189_v63 = vld [vmem:[%s5039_s7 + $0x20] sm:$0xff] }
 0x14e   :  { %v974_v13 = vmax.f32 %v828_v8, 0.0 }
 0x150   :  { %v3773_v6 = vpack.c.bf16 %v974_v13, %v973_v12  ;;  %v492_v12 = vmul.f32 %v3465_v55, %v400_v23  ;;  %v3188_v23 = vld [vmem:[%s5039_s7 + $0x18] sm:$0xff] }
 0x152   :  { %1191 = vmatmul.bf16.gmra.mxu1 %v3773_v6 }
 0x153   :  { %v830_v18 = vpop.f32.mrf.mxu0 }
 0x154   :  { %v831_v28 = vadd.f32 %v3714_v14, %v830_v18 }
 0x156   :  { %2986 = vmatmul.msk.bf16.gmra.mxu0 %vm699_vm0, %v3623_v25  ;;  %2998 = vmatmul.msk.bf16.gmra.mxu3 %vm699_vm0, %v656_v19  ;;  %v975_v32 = vmax.f32 %v831_v28, 0.0  ;;  %v619_v25 = vmax.f32 %v555_v30, 0.0  ;;  %v560_v19 = vadd.f32 %v3479_v60, %v492_v12  ;;  %v623_v30 = vmax.f32 %v559_v21, 0.0 }
 0x158   :  { %v657_v44 = vpack.c.bf16 %v620_v38, %v619_v25 }
 0x159   :  { %v890_v26 = vpop.f32.mrf.mxu3 }
 0x15a   :  { %v891_v34 = vadd.f32 %v3714_v14, %v890_v26  ;;  %v624_v26 = vmax.f32 %v560_v19, 0.0 }
 0x15b   :  { %v832_v29 = vpop.f32.mrf.mxu0 }
 0x15c   :  { %v833_v10 = vadd.f32 %v3714_v14, %v832_v29  ;;  %v999_v42 = vmax.f32 %v891_v34, 0.0  ;;  %v659_v25 = vpack.c.bf16 %v624_v26, %v623_v30  ;;  %v405_v34 = vpop.permute.xlu1 %404  ;;  %v3186_v26 = vld [vmem:[%s5039_s7 + $0x8] sm:$0xff] }
 0x15e   :  { %v976_v54 = vmax.f32 %v833_v10, 0.0 }
 0x160   :  { %v3786_v36 = vpack.c.bf16 %v976_v54, %v975_v32 }
 0x161   :  { %v892_v37 = vpop.f32.mrf.mxu3 }
 0x162   :  { %v893_v40 = vadd.f32 %v3714_v14, %v892_v37  ;;  %1196 = vmatmul.bf16.gmra.mxu1 %v3786_v36  ;;  %v3192_v37 = vld [vmem:[%s5039_s7 + $0x38] sm:$0xff] }
 0x163   :  { %v835_v41 = vpop.f32.mrf.mxu0  ;;  %1825 = vmatpush.bf16.msrb.mxu3 %v3192_v37 }
 0x164   :  { %v1000_v43 = vmax.f32 %v893_v40, 0.0  ;;  %v836_v53 = vadd.f32 %v3714_v14, %v835_v41  ;;  %v410_v40 = vpop.permute.xlu2 %409  ;;  %v493_v41 = vmul.f32 %v3465_v55, %v405_v34 }
 0x166   :  { %2987 = vmatmul.msk.bf16.gmra.mxu0 %vm699_vm0, %v3621_v24  ;;  %2999 = vmatmul.msk.bf16.gmra.mxu3 %vm699_vm0, %v657_v44  ;;  %v3793_v48 = vpack.c.bf16 %v1000_v43, %v999_v42  ;;  %v977_v62 = vmax.f32 %v836_v53, 0.0  ;;  %v3191_v43 = vld [vmem:[%s5039_s7 + $0x30] sm:$0xff]  ;;  %v494_v44 = vmul.f32 %v3465_v55, %v410_v40 }
 0x167   :  { %1826 = vmatpush.bf16.msrb.mxu3 %v3191_v43 }
 0x169   :  { %v895_v45 = vpop.f32.mrf.mxu3 }
 0x16a   :  { %v896_v1 = vadd.f32 %v3714_v14, %v895_v45  ;;  %v562_v45 = vadd.f32 %v3479_v60, %v494_v44 }
 0x16b   :  { %v837_v56 = vpop.f32.mrf.mxu0  ;;  %1827 = vmatpush.bf16.msrb.mxu3 %v3190_v51 }
 0x16c   :  { %v838_v61 = vadd.f32 %v3714_v14, %v837_v56  ;;  %v1001_v49 = vmax.f32 %v896_v1, 0.0  ;;  %v626_v0 = vmax.f32 %v562_v45, 0.0  ;;  %v425_v44 = vpop.permute.xlu2 %424 }
 0x16e   :  { %v978_v24 = vmax.f32 %v838_v61, 0.0 }
 0x16f   :  { %1828 = vmatpush.bf16.msrb.mxu3 %v3189_v63 }
 0x170   :  { %v3802_v2 = vpack.c.bf16 %v978_v24, %v977_v62 }
 0x171   :  { %v897_v3 = vpop.f32.mrf.mxu3 }
 0x172   :  { %v898_v4 = vadd.f32 %v3714_v14, %v897_v3  ;;  %1201 = vmatmul.bf16.gmra.mxu1 %v3802_v2 }
 0x173   :  { %v840_v5 = vpop.f32.mrf.mxu0  ;;  %1829 = vmatpush.bf16.msrb.mxu3 %v3188_v23 }
 0x174   :  { %v1002_v7 = vmax.f32 %v898_v4, 0.0  ;;  %v841_v17 = vadd.f32 %v3714_v14, %v840_v5 }
 0x176   :  { %2988 = vmatmul.msk.bf16.gmra.mxu0 %vm699_vm0, %v3632_v33  ;;  %3000 = vmatmul.msk.bf16.gmra.mxu3 %vm699_vm0, %v658_v35  ;;  %v3809_v8 = vpack.c.bf16 %v1002_v7, %v1001_v49  ;;  %v979_v33 = vmax.f32 %v841_v17, 0.0  ;;  %v420_v7 = vpop.permute.xlu1 %419  ;;  %v415_v35 = vpop.permute.xlu0 %414 }
 0x177   :  { %v495_v16 = vmul.f32 %v3465_v55, %v415_v35 }
 0x179   :  { %v900_v13 = vpop.f32.mrf.mxu3 }
 0x17a   :  { %v901_v27 = vadd.f32 %v3714_v14, %v900_v13  ;;  %v496_v13 = vmul.f32 %v3465_v55, %v420_v7 }
 0x17b   :  { %v842_v18 = vpop.f32.mrf.mxu0 }
 0x17c   :  { %v843_v20 = vadd.f32 %v3714_v14, %v842_v18  ;;  %v1003_v32 = vmax.f32 %v901_v27, 0.0  ;;  %v3187_v18 = vld [vmem:[%s5039_s7 + $0x10] sm:$0xff]  ;;  %v564_v21 = vadd.f32 %v3479_v60, %v496_v13 }
 0x17d   :  { %1830 = vmatpush.bf16.msrb.mxu3 %v3187_v18 }
 0x17e   :  { %v980_v22 = vmax.f32 %v843_v20, 0.0  ;;  %v628_v30 = vmax.f32 %v564_v21, 0.0 }
 0x180   :  { %v3818_v28 = vpack.c.bf16 %v980_v22, %v979_v33  ;;  %v563_v33 = vadd.f32 %v3479_v60, %v495_v16 }
 0x181   :  { %v902_v29 = vpop.f32.mrf.mxu3  ;;  %1831 = vmatpush.bf16.msrb.mxu3 %v3186_v26 }
 0x182   :  { %v903_v10 = vadd.f32 %v3714_v14, %v902_v29  ;;  %1206 = vmatmul.bf16.gmra.mxu1 %v3818_v28 }
 0x183   :  { %v845_v11 = vpop.f32.mrf.mxu0 }
 0x184   :  { %v1004_v54 = vmax.f32 %v903_v10, 0.0  ;;  %v846_v46 = vadd.f32 %v3714_v14, %v845_v11  ;;  %v627_v10 = vmax.f32 %v563_v33, 0.0 }
 0x186   :  { %2989 = vmatmul.msk.bf16.gmra.mxu0 %vm699_vm0, %v3646_v59  ;;  %3001 = vmatmul.msk.bf16.gmra.mxu3 %vm699_vm0, %v659_v25  ;;  %v3828_v38 = vpack.c.bf16 %v1004_v54, %v1003_v32  ;;  %v561_v59 = vadd.f32 %v3479_v60, %v493_v41  ;;  %v981_v53 = vmax.f32 %v846_v46, 0.0  ;;  %v3185_v60 = vld [vmem:[%s5039_s7] sm:$0xff]  ;;  %v661_v37 = vpack.c.bf16 %v628_v30, %v627_v10 }
 0x187   :  { %1832 = vmatpush.bf16.msrb.mxu3 %v3185_v60 }
 0x188   :  { %v625_v58 = vmax.f32 %v561_v59, 0.0 }
 0x189   :  { %v905_v42 = vpop.f32.mrf.mxu3 }
 0x18a   :  { %v906_v61 = vadd.f32 %v3714_v14, %v905_v42  ;;  %v660_v4 = vpack.c.bf16 %v626_v0, %v625_v58  ;;  %v430_v42 = vpop.permute.xlu0 %429 }
 0x18b   :  { %v847_v47 = vpop.f32.mrf.mxu0 }
 0x18c   :  { %v848_v50 = vadd.f32 %v3714_v14, %v847_v47  ;;  %v1005_v5 = vmax.f32 %v906_v61, 0.0  ;;  %v3232_v47 = vld [vmem:[%s5034_s1] ss:$0 sm:$0xff] }
 0x18d   :  { %v498_v59 = vmul.f32 %v3232_v47, %v430_v42  ;;  %v497_v51 = vmul.f32 %v3232_v47, %v425_v44 }
 0x18e   :  { %v982_v56 = vmax.f32 %v848_v50, 0.0 }
 0x18f   :  { %v3842_v57 = vpop.f32.mrf.mxu1 }
 0x190   :  { %v3845_v62 = vpack.c.bf16 %v982_v56, %v981_v53  ;;  %v3233_v56 = vld [vmem:[%s5035_s2] ss:$0 sm:$0xff] }
 0x191   :  { %v907_v24 = vpop.f32.mrf.mxu3  ;;  %v566_v58 = vadd.f32 %v3233_v56, %v498_v59 }
 0x192   :  { %v908_v1 = vadd.f32 %v3714_v14, %v907_v24  ;;  %1211 = vmatmul.bf16.gmra.mxu1 %v3845_v62  ;;  %v565_v24 = vadd.f32 %v3233_v56, %v497_v51 }
 0x193   :  { %v850_v3 = vpop.f32.mrf.mxu0 }
 0x194   :  { %v1006_v49 = vmax.f32 %v908_v1, 0.0  ;;  %v851_v19 = vadd.f32 %v3714_v14, %v850_v3  ;;  %v630_v3 = vmax.f32 %v566_v58, 0.0  ;;  %v629_v7 = vmax.f32 %v565_v24, 0.0 }
 0x196   :  { %3002 = vmatmul.msk.bf16.gmra.mxu3 %vm699_vm0, %v660_v4  ;;  %v3856_v9 = vpack.c.bf16 %v1006_v49, %v1005_v5  ;;  %v983_v55 = vmax.f32 %v851_v19, 0.0  ;;  %v662_v13 = vpack.c.bf16 %v630_v3, %v629_v7  ;;  %v3906_v19 = vld [vmem:[%s5040_s6] sm:$0x3] }
 0x197   :  { %v3858_v12 = vpop.f32.mrf.mxu1  ;;  %v3909_v33 = vperm.slane %v3906_v19, 0 }
 0x199   :  { %v910_v17 = vpop.f32.mrf.mxu3  ;;  %v1173_v30 = vadd.f32 %v3842_v57, %v3909_v33 }
 0x19a   :  { %v911_v11 = vadd.f32 %v3714_v14, %v910_v17 }
 0x19b   :  { %v852_v20 = vpop.f32.mrf.mxu0 }
 0x19c   :  { %v853_v22 = vadd.f32 %v3714_v14, %v852_v20  ;;  %v1007_v40 = vmax.f32 %v911_v11, 0.0 }
 0x19e   :  { %v984_v27 = vmax.f32 %v853_v22, 0.0 }
 0x19f   :  { %v3872_v29 = vpop.f32.mrf.mxu1 }
 0x1a0   :  { %v3875_v32 = vpack.c.bf16 %v984_v27, %v983_v55  ;;  %v1175_v55 = vadd.f32 %v3858_v12, %v3909_v33  ;;  %v1178_v58 = vadd.f32 %v3872_v29, %v3909_v33 }
 0x1a1   :  { %v912_v54 = vpop.f32.mrf.mxu3 }
 0x1a2   :  { %v913_v25 = vadd.f32 %v3714_v14, %v912_v54  ;;  %1216 = vmatmul.bf16.gmra.mxu1 %v3875_v32  ;;  %v1503_v60 = vmax.f32 %v1175_v55, 0.0  ;;  %v1505_v7 = vmax.f32 %v1178_v58, 0.0 }
 0x1a3   :  { %v855_v34 = vpop.f32.mrf.mxu0 }
 0x1a4   :  { %v1008_v41 = vmax.f32 %v913_v25, 0.0  ;;  %v856_v45 = vadd.f32 %v3714_v14, %v855_v34 }
 0x1a6   :  { %3003 = vmatmul.msk.bf16.gmra.mxu3 %vm699_vm0, %v661_v37  ;;  %v3883_v43 = vpack.c.bf16 %v1008_v41, %v1007_v40  ;;  %v985_v63 = vmax.f32 %v856_v45, 0.0  ;;  %v1501_v40 = vmax.f32 %v1173_v30, 0.0 }
 0x1a7   :  { %v1179_v46 = vpop.f32.mrf.mxu1 }
 0x1a8   :  { %v1629_v42 = vpack.c.bf16 %v1503_v60, %v1501_v40 }
 0x1a9   :  { %v915_v50 = vpop.f32.mrf.mxu3 }
 0x1aa   :  { %v916_v4 = vadd.f32 %v3714_v14, %v915_v50 }
 0x1ab   :  { %v857_v53 = vpop.f32.mrf.mxu0 }
 0x1ac   :  { %v858_v61 = vadd.f32 %v3714_v14, %v857_v53  ;;  %v1009_v16 = vmax.f32 %v916_v4, 0.0  ;;  %v1180_v53 = vadd.f32 %v1179_v46, %v3909_v33 }
 0x1ae   :  { %v986_v0 = vmax.f32 %v858_v61, 0.0 }
 0x1af   :  { %v3893_v1 = vpop.f32.mrf.mxu1 }
 0x1b0   :  { %v3896_v5 = vpack.c.bf16 %v986_v0, %v985_v63  ;;  %v1507_v0 = vmax.f32 %v1180_v53, 0.0  ;;  %v1183_v30 = vadd.f32 %v3893_v1, %v3909_v33 }
 0x1b1   :  { %v917_v49 = vpop.f32.mrf.mxu3 }
 0x1b2   :  { %v918_v35 = vadd.f32 %v3714_v14, %v917_v49  ;;  %1221 = vmatmul.bf16.gmra.mxu1 %v3896_v5 }
 0x1b3   :  { %v860_v23 = vpop.f32.mrf.mxu0 }
 0x1b4   :  { %v1010_v17 = vmax.f32 %v918_v35, 0.0  ;;  %v861_v22 = vadd.f32 %v3714_v14, %v860_v23 }
 0x1b6   :  { %3004 = vmatmul.msk.bf16.gmra.mxu3 %vm699_vm0, %v662_v13  ;;  %v3901_v18 = vpack.c.bf16 %v1010_v17, %v1009_v16  ;;  %v987_v10 = vmax.f32 %v861_v22, 0.0  ;;  %v1631_v16 = vpack.c.bf16 %v1507_v0, %v1505_v7 }
 0x1b7   :  { %v1184_v20 = vpop.f32.mrf.mxu1 }
 0x1b8   :  { %v1185_v55 = vadd.f32 %v1184_v20, %v3909_v33 }
 0x1b9   :  { %v920_v21 = vpop.f32.mrf.mxu3 }
 0x1ba   :  { %v921_v25 = vadd.f32 %v3714_v14, %v920_v21 }
 0x1bb   :  { %v862_v26 = vpop.f32.mrf.mxu0 }
 0x1bc   :  { %v863_v27 = vadd.f32 %v3714_v14, %v862_v26  ;;  %v1011_v44 = vmax.f32 %v921_v25, 0.0  ;;  %v1511_v25 = vmax.f32 %v1185_v55, 0.0  ;;  %v3065_v55 = vld [vmem:[%s5038_s5 + $0x78] sm:$0xf0] }
 0x1be   :  { %v988_v11 = vmax.f32 %v863_v27, 0.0 }
 0x1bf   :  { %v3917_v54 = vpop.f32.mrf.mxu1 }
 0x1c0   :  { %v3920_v34 = vpack.c.bf16 %v988_v11, %v987_v10 }
 0x1c1   :  { %v922_v37 = vpop.f32.mrf.mxu3 }
 0x1c2   :  { %v923_v41 = vadd.f32 %v3714_v14, %v922_v37  ;;  %1226 = vmatmul.bf16.gmra.mxu1 %v3920_v34 }
 0x1c3   :  { %v865_v12 = vpop.f32.mrf.mxu0 }
 0x1c4   :  { %v1012_v47 = vmax.f32 %v923_v41, 0.0  ;;  %v866_v51 = vadd.f32 %v3714_v14, %v865_v12  ;;  %v1509_v12 = vmax.f32 %v1183_v30, 0.0 }
 0x1c6   :  { %1833 = vmatmul.bf16.vlgmr.msrb.gmra.mxu3 %v1629_v42  ;;  %v3924_v57 = vpack.c.bf16 %v1012_v47, %v1011_v44  ;;  %v989_v61 = vmax.f32 %v866_v51, 0.0 }
 0x1c7   :  { %v1189_v59 = vpop.f32.mrf.mxu1 }
 0x1c8   :  { %v1190_v58 = vadd.f32 %v1189_v59, %v3909_v33 }
 0x1c9   :  { %v925_v50 = vpop.f32.mrf.mxu3 }
 0x1ca   :  { %v926_v3 = vadd.f32 %v3714_v14, %v925_v50  ;;  %v1633_v50 = vpack.c.bf16 %v1511_v25, %v1509_v12  ;;  %v1515_v7 = vmax.f32 %v1190_v58, 0.0 }
 0x1cb   :  { %v867_v45 = vpop.f32.mrf.mxu0 }
 0x1cc   :  { %v868_v56 = vadd.f32 %v3714_v14, %v867_v45  ;;  %v1013_v23 = vmax.f32 %v926_v3, 0.0 }
 0x1ce   :  { %v990_v24 = vmax.f32 %v868_v56, 0.0 }
 0x1cf   :  { %v3931_v63 = vpop.f32.mrf.mxu1 }
 0x1d0   :  { %v3934_v4 = vpack.c.bf16 %v990_v24, %v989_v61  ;;  %v1188_v24 = vadd.f32 %v3917_v54, %v3909_v33  ;;  %v3183_v54 = vld [vmem:[%s5038_s5 + $0x74] sm:$0xf] }
 0x1d1   :  { %v927_v49 = vpop.f32.mrf.mxu3 }
 0x1d2   :  { %v928_v35 = vadd.f32 %v3714_v14, %v927_v49  ;;  %1231 = vmatmul.bf16.gmra.mxu1 %v3934_v4 }
 0x1d3   :  { %v870_v46 = vpop.f32.mrf.mxu0 }
 0x1d4   :  { %v1014_v13 = vmax.f32 %v928_v35, 0.0  ;;  %v871_v22 = vadd.f32 %v3714_v14, %v870_v46 }
 0x1d6   :  { %1838 = vmatmul.bf16.gmra.mxu3 %v1631_v16  ;;  %v3938_v29 = vpack.c.bf16 %v1014_v13, %v1013_v23  ;;  %v991_v10 = vmax.f32 %v871_v22, 0.0  ;;  %v1513_v13 = vmax.f32 %v1188_v24, 0.0 }
 0x1d7   :  { %v1194_v17 = vpop.f32.mrf.mxu1 }
 0x1d9   :  { %v930_v21 = vpop.f32.mrf.mxu3 }
 0x1da   :  { %v931_v37 = vadd.f32 %v3714_v14, %v930_v21 }
 0x1db   :  { %v872_v26 = vpop.f32.mrf.mxu0 }
 0x1dc   :  { %v873_v27 = vadd.f32 %v3714_v14, %v872_v26  ;;  %v1015_v44 = vmax.f32 %v931_v37, 0.0  ;;  %v1635_v26 = vpack.c.bf16 %v1515_v7, %v1513_v13 }
 0x1de   :  { %v992_v11 = vmax.f32 %v873_v27, 0.0  ;;  %v3068_v27 = vor.u32 %v3183_v54, %v3065_v55 }
 0x1df   :  { %v3945_v60 = vpop.f32.mrf.mxu1 }
 0x1e0   :  { %v3948_v40 = vpack.c.bf16 %v992_v11, %v991_v10  ;;  %1332 = vmatpush.bf16.msrb.mxu2 %v3068_v27 }
 0x1e1   :  { %v932_v41 = vpop.f32.mrf.mxu3 }
 0x1e2   :  { %v933_v42 = vadd.f32 %v3714_v14, %v932_v41  ;;  %1236 = vmatmul.bf16.gmra.mxu1 %v3948_v40  ;;  %v1195_v41 = vadd.f32 %v1194_v17, %v3909_v33 }
 0x1e3   :  { %v875_v20 = vpop.f32.mrf.mxu0 }
 0x1e4   :  { %v1016_v47 = vmax.f32 %v933_v42, 0.0  ;;  %v876_v53 = vadd.f32 %v3714_v14, %v875_v20  ;;  %v1193_v42 = vadd.f32 %v3931_v63, %v3909_v33 }
 0x1e6   :  { %1843 = vmatmul.bf16.gmra.mxu3 %v1633_v50  ;;  %v3952_v1 = vpack.c.bf16 %v1016_v47, %v1015_v44  ;;  %v993_v0 = vmax.f32 %v876_v53, 0.0  ;;  %v1519_v50 = vmax.f32 %v1195_v41, 0.0  ;;  %v1517_v58 = vmax.f32 %v1193_v42, 0.0 }
 0x1e7   :  { %v1199_v51 = vpop.f32.mrf.mxu1 }
 0x1e8   :  { %5054 = vst [vmem:[#allocation3_spill] sm:$0xff] %v3952_v1 }
 0x1e9   :  { %v935_v45 = vpop.f32.mrf.mxu3 }
 0x1ea   :  { %v936_v35 = vadd.f32 %v3714_v14, %v935_v45 }
 0x1eb   :  { %v877_v56 = vpop.f32.mrf.mxu0 }
 0x1ec   :  { %v878_v61 = vadd.f32 %v3714_v14, %v877_v56  ;;  %v1017_v21 = vmax.f32 %v936_v35, 0.0 }
 0x1ee   :  { %v994_v3 = vmax.f32 %v878_v61, 0.0 }
 0x1ef   :  { %v3959_v49 = vpop.f32.mrf.mxu1 }
 0x1f0   :  { %v3962_v46 = vpack.c.bf16 %v994_v3, %v993_v0  ;;  %v1637_v3 = vpack.c.bf16 %v1519_v50, %v1517_v58 }
 0x1f1   :  { %v937_v23 = vpop.f32.mrf.mxu3 }
 0x1f2   :  { %v938_v16 = vadd.f32 %v3714_v14, %v937_v23  ;;  %1241 = vmatmul.bf16.gmra.mxu1 %v3962_v46 }
 0x1f3   :  { %v880_v59 = vpop.f32.mrf.mxu0 }
 0x1f4   :  { %v1018_v22 = vmax.f32 %v938_v16, 0.0  ;;  %v881_v25 = vadd.f32 %v3714_v14, %v880_v59  ;;  %v1200_v16 = vadd.f32 %v1199_v51, %v3909_v33 }
 0x1f6   :  { %1848 = vmatmul.bf16.gmra.mxu3 %v1635_v26  ;;  %v3972_v30 = vpack.c.bf16 %v1018_v22, %v1017_v21  ;;  %v995_v20 = vmax.f32 %v881_v25, 0.0  ;;  %v1198_v21 = vadd.f32 %v3945_v60, %v3909_v33  ;;  %v1523_v54 = vmax.f32 %v1200_v16, 0.0  ;;  %v3181_v60 = vld [vmem:[%s5038_s5 + $0x64] sm:$0xf] }
 0x1f7   :  { %v1204_v10 = vpop.f32.mrf.mxu1 }
 0x1f8   :  { %5055 = vst [vmem:[#allocation4_spill] sm:$0xff] %v3972_v30  ;;  %v1521_v25 = vmax.f32 %v1198_v21, 0.0 }
 0x1f9   :  { %v940_v11 = vpop.f32.mrf.mxu3 }
 0x1fa   :  { %v941_v45 = vadd.f32 %v3714_v14, %v940_v11  ;;  %v1639_v42 = vpack.c.bf16 %v1523_v54, %v1521_v25 }
 0x1fb   :  { %v882_v37 = vpop.f32.mrf.mxu0 }
 0x1fc   :  { %v883_v12 = vadd.f32 %v3714_v14, %v882_v37  ;;  %v1019_v24 = vmax.f32 %v941_v45, 0.0 }
 0x1fe   :  { %v996_v44 = vmax.f32 %v883_v12, 0.0 }
 0x1ff   :  { %v1207_v47 = vpop.f32.mrf.mxu1 }
 0x200   :  { %v3980_v53 = vpack.c.bf16 %v996_v44, %v995_v20  ;;  %v3057_v20 = vld [vmem:[%s5038_s5 + $0x68] sm:$0xf0] }
 0x201   :  { %v942_v56 = vpop.f32.mrf.mxu3  ;;  %v3060_v44 = vor.u32 %v3181_v60, %v3057_v20 }
 0x202   :  { %v943_v61 = vadd.f32 %v3714_v14, %v942_v56  ;;  %1246 = vmatmul.bf16.gmra.mxu1 %v3980_v53  ;;  %v1205_v56 = vadd.f32 %v1204_v10, %v3909_v33 }
 0x203   :  { %v885_v17 = vpop.f32.mrf.mxu0  ;;  %1333 = vmatpush.bf16.msrb.mxu2 %v3060_v44 }
 0x204   :  { %v1020_v0 = vmax.f32 %v943_v61, 0.0  ;;  %v886_v23 = vadd.f32 %v3714_v14, %v885_v17  ;;  %v1203_v61 = vadd.f32 %v3959_v49, %v3909_v33  ;;  %v1527_v17 = vmax.f32 %v1205_v56, 0.0 }
 0x205   :  { %v1208_v49 = vadd.f32 %v1207_v47, %v3909_v33 }
 0x206   :  { %1853 = vmatmul.bf16.gmra.mxu3 %v1637_v3  ;;  %v3984_v63 = vpack.c.bf16 %v1020_v0, %v1019_v24  ;;  %v997_v22 = vmax.f32 %v886_v23, 0.0  ;;  %v1525_v3 = vmax.f32 %v1203_v61, 0.0 }
 0x207   :  { %v1209_v7 = vpop.f32.mrf.mxu1  ;;  %v1529_v25 = vmax.f32 %v1208_v49, 0.0 }
 0x208   :  { %5056 = vst [vmem:[#allocation5_spill] sm:$0xff] %v3984_v63  ;;  %v1641_v16 = vpack.c.bf16 %v1527_v17, %v1525_v3 }
 0x209   :  { %v945_v35 = vpop.f32.mrf.mxu3 }
 0x20a   :  { %v946_v55 = vadd.f32 %v3714_v14, %v945_v35 }
 0x20b   :  { %v887_v13 = vpop.f32.mrf.mxu0 }
 0x20c   :  { %v888_v59 = vadd.f32 %v3714_v14, %v887_v13  ;;  %v1021_v51 = vmax.f32 %v946_v55, 0.0 }
 0x20e   :  { %v998_v26 = vmax.f32 %v888_v59, 0.0 }
 0x20f   :  { %v1212_v41 = vpop.f32.mrf.mxu1 }
 0x210   :  { %v3992_v27 = vpack.c.bf16 %v998_v26, %v997_v22  ;;  %v1210_v22 = vadd.f32 %v1209_v7, %v3909_v33  ;;  %v3049_v7 = vld [vmem:[%s5038_s5 + $0x58] sm:$0xf0]  ;;  %v1213_v61 = vadd.f32 %v1212_v41, %v3909_v33 }
 0x211   :  { %v947_v11 = vpop.f32.mrf.mxu3 }
 0x212   :  { %v948_v37 = vadd.f32 %v3714_v14, %v947_v11  ;;  %1251 = vmatmul.bf16.vlgmr.msra.gmra.mxu2 %v3992_v27  ;;  %v1531_v26 = vmax.f32 %v1210_v22, 0.0  ;;  %v1533_v3 = vmax.f32 %v1213_v61, 0.0 }
 0x214   :  { %v1022_v12 = vmax.f32 %v948_v37, 0.0  ;;  %v1643_v60 = vpack.c.bf16 %v1531_v26, %v1529_v25  ;;  %v3177_v25 = vld [vmem:[%s5038_s5 + $0x44] sm:$0xf] }
 0x216   :  { %1858 = vmatmul.bf16.gmra.mxu3 %v1639_v42  ;;  %v4002_v50 = vpack.c.bf16 %v1022_v12, %v1021_v51  ;;  %v3179_v51 = vld [vmem:[%s5038_s5 + $0x54] sm:$0xf] }
 0x217   :  { %v1214_v58 = vpop.f32.mrf.mxu1  ;;  %v3052_v12 = vor.u32 %v3179_v51, %v3049_v7 }
 0x218   :  { %5057 = vst [vmem:[#allocation6_spill] sm:$0xff] %v4002_v50  ;;  %v1215_v56 = vadd.f32 %v1214_v58, %v3909_v33 }
 0x219   :  { %v950_v45 = vpop.f32.mrf.mxu3  ;;  %1334 = vmatpush.bf16.msrb.mxu2 %v3052_v12 }
 0x21a   :  { %v951_v24 = vadd.f32 %v3714_v14, %v950_v45  ;;  %v1535_v17 = vmax.f32 %v1215_v56, 0.0 }
 0x21c   :  { %v1023_v23 = vmax.f32 %v951_v24, 0.0 }
 0x21f   :  { %v1217_v10 = vpop.f32.mrf.mxu1 }
 0x220   :  { %v1218_v58 = vadd.f32 %v1217_v10, %v3909_v33 }
 0x221   :  { %v952_v0 = vpop.f32.mrf.mxu3 }
 0x222   :  { %v953_v35 = vadd.f32 %v3714_v14, %v952_v0  ;;  %1256 = vmatmul.bf16.gmra.mxu2 %v3793_v48 }
 0x224   :  { %v1024_v13 = vmax.f32 %v953_v35, 0.0 }
 0x226   :  { %1863 = vmatmul.bf16.gmra.mxu3 %v1641_v16  ;;  %v4010_v59 = vpack.c.bf16 %v1024_v13, %v1023_v23  ;;  %v1645_v16 = vpack.c.bf16 %v1535_v17, %v1533_v3 }
 0x227   :  { %v1219_v55 = vpop.f32.mrf.mxu1 }
 0x228   :  { %5058 = vst [vmem:[#allocation7_spill] sm:$0xff] %v4010_v59  ;;  %v1220_v41 = vadd.f32 %v1219_v55, %v3909_v33 }
 0x229   :  { %v955_v21 = vpop.f32.mrf.mxu3 }
 0x22a   :  { %v956_v54 = vadd.f32 %v3714_v14, %v955_v21 }
 0x22c   :  { %v1025_v47 = vmax.f32 %v956_v54, 0.0  ;;  %v1539_v54 = vmax.f32 %v1220_v41, 0.0 }
 0x22f   :  { %v1222_v45 = vpop.f32.mrf.mxu1 }
 0x231   :  { %v957_v11 = vpop.f32.mrf.mxu3 }
 0x232   :  { %v958_v37 = vadd.f32 %v3714_v14, %v957_v11  ;;  %1261 = vmatmul.bf16.gmra.mxu2 %v3809_v8 }
 0x234   :  { %v1026_v42 = vmax.f32 %v958_v37, 0.0  ;;  %v3041_v37 = vld [vmem:[%s5038_s5 + $0x48] sm:$0xf0] }
 0x235   :  { %v3044_v51 = vor.u32 %v3177_v25, %v3041_v37 }
 0x236   :  { %1868 = vmatmul.bf16.gmra.mxu3 %v1643_v60  ;;  %v4023_v20 = vpack.c.bf16 %v1026_v42, %v1025_v47  ;;  %v1223_v47 = vadd.f32 %v1222_v45, %v3909_v33 }
 0x237   :  { %v1224_v21 = vpop.f32.mrf.mxu1  ;;  %1335 = vmatpush.bf16.msrb.mxu2 %v3044_v51 }
 0x238   :  { %5059 = vst [vmem:[#allocation8_spill] sm:$0xff] %v4023_v20  ;;  %v1225_v12 = vadd.f32 %v1224_v21, %v3909_v33  ;;  %v3200_v21 = vld [vmem:[%s5039_s7 + $0x78] sm:$0xff] }
 0x239   :  { %v960_v44 = vpop.f32.mrf.mxu3  ;;  %1994 = vmatpush.bf16.msrb.mxu0 %v3200_v21 }
 0x23a   :  { %v961_v24 = vadd.f32 %v3714_v14, %v960_v44  ;;  %v1543_v42 = vmax.f32 %v1225_v12, 0.0  ;;  %v1541_v44 = vmax.f32 %v1223_v47, 0.0 }
 0x23c   :  { %v1027_v23 = vmax.f32 %v961_v24, 0.0  ;;  %v1649_v61 = vpack.c.bf16 %v1543_v42, %v1541_v44 }
 0x23f   :  { %v1227_v26 = vpop.f32.mrf.mxu1 }
 0x240   :  { %v1228_v3 = vadd.f32 %v1227_v26, %v3909_v33 }
 0x241   :  { %v962_v0 = vpop.f32.mrf.mxu3 }
 0x242   :  { %v963_v35 = vadd.f32 %v3714_v14, %v962_v0  ;;  %1266 = vmatmul.bf16.gmra.mxu2 %v3828_v38  ;;  %v1537_v14 = vmax.f32 %v1218_v58, 0.0  ;;  %v1545_v45 = vmax.f32 %v1228_v3, 0.0  ;;  %v3173_v3 = vld [vmem:[%s5038_s5 + $0x24] sm:$0xf] }
 0x244   :  { %v1028_v13 = vmax.f32 %v963_v35, 0.0  ;;  %v1647_v7 = vpack.c.bf16 %v1539_v54, %v1537_v14 }
 0x246   :  { %1873 = vmatmul.bf16.gmra.mxu3 %v1645_v16  ;;  %v4030_v22 = vpack.c.bf16 %v1028_v13, %v1027_v23  ;;  %v3175_v13 = vld [vmem:[%s5038_s5 + $0x34] sm:$0xf]  ;;  %v3033_v16 = vld [vmem:[%s5038_s5 + $0x38] sm:$0xf0] }
 0x247   :  { %v1229_v10 = vpop.f32.mrf.mxu1  ;;  %v3036_v41 = vor.u32 %v3175_v13, %v3033_v16 }
 0x248   :  { %5060 = vst [vmem:[#allocation9_spill] sm:$0xff] %v4030_v22  ;;  %v1230_v24 = vadd.f32 %v1229_v10, %v3909_v33 }
 0x249   :  { %v4032_v49 = vpop.f32.mrf.mxu3  ;;  %1336 = vmatpush.bf16.msrb.mxu2 %v3036_v41  ;;  %v3199_v41 = vld [vmem:[%s5039_s7 + $0x70] sm:$0xff] }
 0x24a   :  { %v1547_v35 = vmax.f32 %v1230_v24, 0.0  ;;  %1995 = vmatpush.bf16.msrb.mxu0 %v3199_v41  ;;  %v3171_v41 = vld [vmem:[%s5038_s5 + $0x14] sm:$0xf] }
 0x24c   :  { %v1651_v58 = vpack.c.bf16 %v1547_v35, %v1545_v45  ;;  %v3025_v35 = vld [vmem:[%s5038_s5 + $0x28] sm:$0xf0] }
 0x24d   :  { %v3028_v45 = vor.u32 %v3173_v3, %v3025_v35 }
 0x24f   :  { %v1232_v56 = vpop.f32.mrf.mxu1  ;;  %1337 = vmatpush.bf16.msrb.mxu2 %v3028_v45 }
 0x250   :  { %v1233_v25 = vadd.f32 %v1232_v56, %v3909_v33 }
 0x251   :  { %v4036_v11 = vpop.f32.mrf.mxu3 }
 0x252   :  { %1271 = vmatmul.bf16.gmra.mxu2 %v3856_v9  ;;  %v1549_v10 = vmax.f32 %v1233_v25, 0.0 }
 0x256   :  { %1878 = vmatmul.bf16.gmra.mxu3 %v1647_v7 }
 0x257   :  { %v1234_v0 = vpop.f32.mrf.mxu1 }
 0x258   :  { %v1235_v14 = vadd.f32 %v1234_v0, %v3909_v33 }
 0x259   :  { %v4045_v55 = vpop.f32.mrf.mxu3 }
 0x25a   :  { %v1551_v37 = vmax.f32 %v1235_v14, 0.0 }
 0x25c   :  { %v1653_v12 = vpack.c.bf16 %v1551_v37, %v1549_v10 }
 0x25f   :  { %v1237_v26 = vpop.f32.mrf.mxu1 }
 0x261   :  { %v4049_v60 = vpop.f32.mrf.mxu3 }
 0x262   :  { %1276 = vmatmul.bf16.gmra.mxu2 %v3883_v43 }
 0x266   :  { %1883 = vmatmul.bf16.gmra.mxu3 %v1649_v61  ;;  %v1238_v61 = vadd.f32 %v1237_v26, %v3909_v33 }
 0x267   :  { %v1239_v51 = vpop.f32.mrf.mxu1 }
 0x268   :  { %v1240_v44 = vadd.f32 %v1239_v51, %v3909_v33  ;;  %v1553_v56 = vmax.f32 %v1238_v61, 0.0 }
 0x269   :  { %v4052_v17 = vpop.f32.mrf.mxu3 }
 0x26a   :  { %v1555_v24 = vmax.f32 %v1240_v44, 0.0 }
 0x26c   :  { %v1655_v13 = vpack.c.bf16 %v1555_v24, %v1553_v56 }
 0x26f   :  { %v1242_v42 = vpop.f32.mrf.mxu1 }
 0x270   :  { %v1243_v25 = vadd.f32 %v1242_v42, %v3909_v33 }
 0x271   :  { %v4056_v23 = vpop.f32.mrf.mxu3 }
 0x272   :  { %1281 = vmatmul.bf16.gmra.mxu2 %v3901_v18 }
 0x276   :  { %1888 = vmatmul.bf16.gmra.mxu3 %v1651_v58 }
 0x277   :  { %v1244_v16 = vpop.f32.mrf.mxu1 }
 0x278   :  { %v1245_v26 = vadd.f32 %v1244_v16, %v3909_v33 }
 0x279   :  { %v4068_v54 = vpop.f32.mrf.mxu3 }
 0x27a   :  { %v1559_v51 = vmax.f32 %v1245_v26, 0.0  ;;  %v3017_v26 = vld [vmem:[%s5038_s5 + $0x18] sm:$0xf0] }
 0x27f   :  { %v1247_v37 = vpop.f32.mrf.mxu1 }
 0x280   :  { %v1248_v45 = vadd.f32 %v1247_v37, %v3909_v33  ;;  %v3198_v37 = vld [vmem:[%s5039_s7 + $0x68] sm:$0xff] }
 0x281   :  { %v4072_v7 = vpop.f32.mrf.mxu3  ;;  %1996 = vmatpush.bf16.msrb.mxu0 %v3198_v37 }
 0x282   :  { %1286 = vmatmul.bf16.gmra.mxu2 %v3924_v57  ;;  %v1561_v42 = vmax.f32 %v1248_v45, 0.0 }
 0x286   :  { %1893 = vmatmul.bf16.gmra.mxu3 %v1653_v12  ;;  %v1557_v12 = vmax.f32 %v1243_v25, 0.0  ;;  %v3020_v25 = vor.u32 %v3171_v41, %v3017_v26 }
 0x287   :  { %v1249_v24 = vpop.f32.mrf.mxu1 }
 0x288   :  { %v1657_v44 = vpack.c.bf16 %v1559_v51, %v1557_v12  ;;  %v1250_v3 = vadd.f32 %v1249_v24, %v3909_v33  ;;  %1338 = vmatpush.bf16.msrb.mxu2 %v3020_v25 }
 0x289   :  { %v4075_v47 = vpop.f32.mrf.mxu3 }
 0x291   :  { %v4079_v0 = vpop.f32.mrf.mxu3 }
 0x292   :  { %1291 = vmatmul.bf16.gmra.mxu2 %v3938_v29 }
 0x295   :  { %v1252_v21 = vpop.f32.mrf.mxu2 }
 0x296   :  { %1898 = vmatmul.bf16.gmra.mxu3 %v1655_v13  ;;  %v1563_v13 = vmax.f32 %v1250_v3, 0.0  ;;  %v1253_v45 = vadd.f32 %v1252_v21, %v3909_v33  ;;  %v3169_v21 = vld [vmem:[%s5038_s5 + $0x4] sm:$0xf] }
 0x298   :  { %v1659_v51 = vpack.c.bf16 %v1563_v13, %v1561_v42 }
 0x299   :  { %v4091_v58 = vpop.f32.mrf.mxu3 }
 0x29d   :  { %v1254_v14 = vpop.f32.mrf.mxu2 }
 0x2a1   :  { %v4095_v10 = vpop.f32.mrf.mxu3 }
 0x2a2   :  { %1296 = vmatmul.bf16.gmra.mxu2 %v3952_v1  ;;  %v1565_v1 = vmax.f32 %v1253_v45, 0.0  ;;  %v3197_v45 = vld [vmem:[%s5039_s7 + $0x60] sm:$0xff] }
 0x2a3   :  { %1997 = vmatpush.bf16.msrb.mxu0 %v3197_v45 }
 0x2a5   :  { %v1257_v61 = vpop.f32.mrf.mxu2 }
 0x2a6   :  { %1903 = vmatmul.bf16.gmra.mxu3 %v1657_v44  ;;  %v1255_v44 = vadd.f32 %v1254_v14, %v3909_v33 }
 0x2a9   :  { %v4098_v56 = vpop.f32.mrf.mxu3 }
 0x2ad   :  { %v1259_v35 = vpop.f32.mrf.mxu2 }
 0x2ae   :  { %v1260_v26 = vadd.f32 %v1259_v35, %v3909_v33 }
 0x2b0   :  { %v1571_v14 = vmax.f32 %v1260_v26, 0.0 }
 0x2b1   :  { %v4102_v16 = vpop.f32.mrf.mxu3 }
 0x2b2   :  { %1301 = vmatmul.bf16.gmra.mxu2 %v3972_v30  ;;  %v1567_v30 = vmax.f32 %v1255_v44, 0.0 }
 0x2b4   :  { %v1661_v13 = vpack.c.bf16 %v1567_v30, %v1565_v1  ;;  %v3009_v1 = vld [vmem:[%s5038_s5 + $0x8] sm:$0xf0] }
 0x2b5   :  { %v1262_v12 = vpop.f32.mrf.mxu2  ;;  %v3012_v30 = vor.u32 %v3169_v21, %v3009_v1 }
 0x2b6   :  { %1908 = vmatmul.bf16.gmra.mxu3 %v1659_v51  ;;  %v1258_v51 = vadd.f32 %v1257_v61, %v3909_v33 }
 0x2b7   :  { %1339 = vmatpush.bf16.msrb.mxu2 %v3012_v30 }
 0x2b9   :  { %v4115_v24 = vpop.f32.mrf.mxu3 }
 0x2ba   :  { %5061 = vst [vmem:[#allocation10_spill] sm:$0xff] %v4115_v24  ;;  %v1569_v24 = vmax.f32 %v1258_v51, 0.0  ;;  %v1263_v51 = vadd.f32 %v1262_v12, %v3909_v33 }
 0x2bc   :  { %v1663_v44 = vpack.c.bf16 %v1571_v14, %v1569_v24 }
 0x2bd   :  { %v1264_v3 = vpop.f32.mrf.mxu2 }
 0x2c1   :  { %v4119_v41 = vpop.f32.mrf.mxu3 }
 0x2c2   :  { %1306 = vmatmul.bf16.gmra.mxu2 %v3984_v63  ;;  %v1573_v63 = vmax.f32 %v1263_v51, 0.0 }
 0x2c5   :  { %v1267_v42 = vpop.f32.mrf.mxu2 }
 0x2c6   :  { %1913 = vmatmul.bf16.gmra.mxu3 %v1661_v13  ;;  %v1265_v13 = vadd.f32 %v1264_v3, %v3909_v33 }
 0x2c9   :  { %v4123_v37 = vpop.f32.mrf.mxu3 }
 0x2cd   :  { %v1269_v25 = vpop.f32.mrf.mxu2 }
 0x2ce   :  { %v1270_v1 = vadd.f32 %v1269_v25, %v3909_v33 }
 0x2d0   :  { %v1579_v3 = vmax.f32 %v1270_v1, 0.0 }
 0x2d1   :  { %v4132_v61 = vpop.f32.mrf.mxu3 }
 0x2d2   :  { %1311 = vmatmul.bf16.gmra.mxu2 %v4002_v50  ;;  %5062 = vst [vmem:[#allocation11_spill] sm:$0xff] %v4132_v61  ;;  %v1575_v50 = vmax.f32 %v1265_v13, 0.0 }
 0x2d4   :  { %v1665_v14 = vpack.c.bf16 %v1575_v50, %v1573_v63  ;;  %v3196_v63 = vld [vmem:[%s5039_s7 + $0x58] sm:$0xff] }
 0x2d5   :  { %v1272_v35 = vpop.f32.mrf.mxu2  ;;  %1998 = vmatpush.bf16.msrb.mxu0 %v3196_v63 }
 0x2d6   :  { %1918 = vmatmul.bf16.gmra.mxu3 %v1663_v44  ;;  %v1268_v44 = vadd.f32 %v1267_v42, %v3909_v33  ;;  %v1273_v42 = vadd.f32 %v1272_v35, %v3909_v33  ;;  %v3208_v35 = vld [vmem:[%s5042_s9 + $0x38] sm:$0xff] }
 0x2d7   :  { %2327 = vmatpush.bf16.msrb.mxu1 %v3208_v35 }
 0x2d8   :  { %v1577_v45 = vmax.f32 %v1268_v44, 0.0  ;;  %v1581_v1 = vmax.f32 %v1273_v42, 0.0 }
 0x2d9   :  { %v4140_v24 = vpop.f32.mrf.mxu3 }
 0x2da   :  { %v1667_v12 = vpack.c.bf16 %v1579_v3, %v1577_v45 }
 0x2dd   :  { %v1274_v26 = vpop.f32.mrf.mxu2 }
 0x2de   :  { %v1275_v50 = vadd.f32 %v1274_v26, %v3909_v33 }
 0x2e1   :  { %v4144_v61 = vpop.f32.mrf.mxu3 }
 0x2e2   :  { %1316 = vmatmul.bf16.gmra.mxu2 %v4010_v59 }
 0x2e5   :  { %v1277_v21 = vpop.f32.mrf.mxu2 }
 0x2e6   :  { %1923 = vmatmul.bf16.gmra.mxu3 %v1665_v14  ;;  %v1583_v14 = vmax.f32 %v1275_v50, 0.0  ;;  %v1278_v26 = vadd.f32 %v1277_v21, %v3909_v33 }
 0x2e8   :  { %v1669_v3 = vpack.c.bf16 %v1583_v14, %v1581_v1  ;;  %v1585_v50 = vmax.f32 %v1278_v26, 0.0  ;;  %v3195_v26 = vld [vmem:[%s5039_s7 + $0x50] sm:$0xff] }
 0x2e9   :  { %v4147_v51 = vpop.f32.mrf.mxu3  ;;  %1999 = vmatpush.bf16.msrb.mxu0 %v3195_v26 }
 0x2ed   :  { %v1279_v30 = vpop.f32.mrf.mxu2 }
 0x2f1   :  { %v4154_v44 = vpop.f32.mrf.mxu3 }
 0x2f2   :  { %1321 = vmatmul.bf16.gmra.mxu2 %v4023_v20 }
 0x2f5   :  { %v1282_v13 = vpop.f32.mrf.mxu2 }
 0x2f6   :  { %1928 = vmatmul.bf16.gmra.mxu3 %v1667_v12  ;;  %v1280_v12 = vadd.f32 %v1279_v30, %v3909_v33 }
 0x2f8   :  { %v1587_v63 = vmax.f32 %v1280_v12, 0.0 }
 0x2f9   :  { %v4158_v20 = vpop.f32.mrf.mxu3 }
 0x2fa   :  { %5063 = vst [vmem:[#allocation12_spill] sm:$0xff] %v4158_v20  ;;  %v1671_v42 = vpack.c.bf16 %v1587_v63, %v1585_v50 }
 0x2fd   :  { %v1284_v25 = vpop.f32.mrf.mxu2 }
 0x2fe   :  { %v1285_v30 = vadd.f32 %v1284_v25, %v3909_v33 }
 0x300   :  { %v1591_v21 = vmax.f32 %v1285_v30, 0.0  ;;  %v3207_v30 = vld [vmem:[%s5042_s9 + $0x30] sm:$0xff] }
 0x301   :  { %v4165_v1 = vpop.f32.mrf.mxu3  ;;  %2328 = vmatpush.bf16.msrb.mxu1 %v3207_v30 }
 0x302   :  { %1326 = vmatmul.bf16.gmra.mxu2 %v4030_v22  ;;  %v1283_v22 = vadd.f32 %v1282_v13, %v3909_v33 }
 0x304   :  { %v1589_v20 = vmax.f32 %v1283_v22, 0.0 }
 0x305   :  { %v1287_v45 = vpop.f32.mrf.mxu2 }
 0x306   :  { %1933 = vmatmul.bf16.gmra.mxu3 %v1669_v3  ;;  %v1288_v13 = vadd.f32 %v1287_v45, %v3909_v33 }
 0x309   :  { %v4169_v12 = vpop.f32.mrf.mxu3 }
 0x30a   :  { %5064 = vst [vmem:[#allocation13_spill] sm:$0xff] %v4169_v12  ;;  %v1593_v12 = vmax.f32 %v1288_v13, 0.0 }
 0x30d   :  { %v1289_v59 = vpop.f32.mrf.mxu2 }
 0x30e   :  { %v1290_v25 = vadd.f32 %v1289_v59, %v3909_v33 }
 0x311   :  { %v4175_v35 = vpop.f32.mrf.mxu3 }
 0x312   :  { %1340 = vmatmul.bf16.vlgmr.msrb.gmra.mxu2 %v3725_v15  ;;  %v1673_v15 = vpack.c.bf16 %v1591_v21, %v1589_v20 }
 0x315   :  { %v1292_v14 = vpop.f32.mrf.mxu2 }
 0x316   :  { %1938 = vmatmul.bf16.gmra.mxu3 %v1671_v42  ;;  %v1595_v42 = vmax.f32 %v1290_v25, 0.0  ;;  %v1293_v26 = vadd.f32 %v1292_v14, %v3909_v33  ;;  %v3194_v25 = vld [vmem:[%s5039_s7 + $0x48] sm:$0xff] }
 0x317   :  { %2000 = vmatpush.bf16.msrb.mxu0 %v3194_v25 }
 0x318   :  { %v1675_v20 = vpack.c.bf16 %v1595_v42, %v1593_v12  ;;  %v1597_v13 = vmax.f32 %v1293_v26, 0.0 }
 0x31d   :  { %v1294_v3 = vpop.f32.mrf.mxu2 }
 0x31e   :  { %v1295_v21 = vadd.f32 %v1294_v3, %v3909_v33 }
 0x322   :  { %1345 = vmatmul.bf16.gmra.mxu2 %v3737_v31  ;;  %v4183_v31 = vpop.f32.mrf.mxu3 }
 0x325   :  { %v1297_v63 = vpop.f32.mrf.mxu2 }
 0x326   :  { %1943 = vmatmul.bf16.gmra.mxu3 %v1673_v15  ;;  %v1599_v15 = vmax.f32 %v1295_v21, 0.0  ;;  %v1298_v14 = vadd.f32 %v1297_v63, %v3909_v33  ;;  %v3206_v21 = vld [vmem:[%s5042_s9 + $0x28] sm:$0xff] }
 0x327   :  { %2329 = vmatpush.bf16.msrb.mxu1 %v3206_v21 }
 0x32a   :  { %v4187_v45 = vpop.f32.mrf.mxu3 }
 0x32b   :  { %5065 = vst [vmem:[#allocation14_spill] sm:$0xff] %v4187_v45  ;;  %v1601_v45 = vmax.f32 %v1298_v14, 0.0  ;;  %v3193_v14 = vld [vmem:[%s5039_s7 + $0x40] sm:$0xff] }
 0x32c   :  { %2001 = vmatpush.bf16.msrb.mxu0 %v3193_v14 }
 0x32d   :  { %v1299_v50 = vpop.f32.mrf.mxu2 }
 0x32e   :  { %v1300_v3 = vadd.f32 %v1299_v50, %v3909_v33 }
 0x332   :  { %1350 = vmatmul.bf16.gmra.mxu2 %v3749_v39  ;;  %v1677_v39 = vpack.c.bf16 %v1599_v15, %v1597_v13  ;;  %v4193_v42 = vpop.f32.mrf.mxu3 }
 0x335   :  { %v1302_v22 = vpop.f32.mrf.mxu2 }
 0x336   :  { %1948 = vmatmul.bf16.gmra.mxu3 %v1675_v20  ;;  %v1603_v20 = vmax.f32 %v1300_v3, 0.0  ;;  %v1303_v63 = vadd.f32 %v1302_v22, %v3909_v33 }
 0x338   :  { %v1605_v3 = vmax.f32 %v1303_v63, 0.0 }
 0x33a   :  { %v4200_v26 = vpop.f32.mrf.mxu3 }
 0x33d   :  { %v1304_v59 = vpop.f32.mrf.mxu2 }
 0x33e   :  { %v1305_v50 = vadd.f32 %v1304_v59, %v3909_v33 }
 0x342   :  { %1355 = vmatmul.bf16.gmra.mxu2 %v3761_v52  ;;  %v1679_v52 = vpack.c.bf16 %v1603_v20, %v1601_v45  ;;  %v4203_v25 = vpop.f32.mrf.mxu3 }
 0x343   :  { %5066 = vst [vmem:[#allocation15_spill] sm:$0xff] %v4203_v25 }
 0x345   :  { %v1307_v12 = vpop.f32.mrf.mxu2 }
 0x346   :  { %1953 = vmatmul.bf16.gmra.mxu3 %v1677_v39  ;;  %v1607_v39 = vmax.f32 %v1305_v50, 0.0 }
 0x34a   :  { %v4211_v20 = vpop.f32.mrf.mxu3 }
 0x34b   :  { %5067 = vst [vmem:[#allocation16_spill] sm:$0xff] %v4211_v20 }
 0x34d   :  { %v1309_v30 = vpop.f32.mrf.mxu2 }
 0x34e   :  { %v1310_v21 = vadd.f32 %v1309_v30, %v3909_v33 }
 0x350   :  { %v1611_v50 = vmax.f32 %v1310_v21, 0.0 }
 0x352   :  { %1360 = vmatmul.bf16.gmra.mxu2 %v3773_v6  ;;  %v1681_v6 = vpack.c.bf16 %v1607_v39, %v1605_v3  ;;  %v4215_v22 = vpop.f32.mrf.mxu3 }
 0x353   :  { %5068 = vst [vmem:[#allocation17_spill] sm:$0xff] %v4215_v22 }
 0x355   :  { %v1312_v15 = vpop.f32.mrf.mxu2 }
 0x356   :  { %1958 = vmatmul.bf16.gmra.mxu3 %v1679_v52  ;;  %v1308_v52 = vadd.f32 %v1307_v12, %v3909_v33  ;;  %v1313_v12 = vadd.f32 %v1312_v15, %v3909_v33  ;;  %v3204_v15 = vld [vmem:[%s5042_s9 + $0x18] sm:$0xff] }
 0x358   :  { %v1609_v63 = vmax.f32 %v1308_v52, 0.0  ;;  %v1613_v21 = vmax.f32 %v1313_v12, 0.0 }
 0x35a   :  { %v1683_v39 = vpack.c.bf16 %v1611_v50, %v1609_v63  ;;  %v4221_v14 = vpop.f32.mrf.mxu3 }
 0x35d   :  { %v1314_v13 = vpop.f32.mrf.mxu2 }
 0x35e   :  { %v1315_v30 = vadd.f32 %v1314_v13, %v3909_v33 }
 0x360   :  { %v1615_v22 = vmax.f32 %v1315_v30, 0.0 }
 0x362   :  { %1365 = vmatmul.bf16.gmra.mxu2 %v3786_v36  ;;  %v3205_v36 = vld [vmem:[%s5042_s9 + $0x20] sm:$0xff]  ;;  %v4226_v20 = vpop.f32.mrf.mxu3  ;;  %v1685_v52 = vpack.c.bf16 %v1615_v22, %v1613_v21 }
 0x363   :  { %2330 = vmatpush.bf16.msrb.mxu1 %v3205_v36 }
 0x365   :  { %v1317_v45 = vpop.f32.mrf.mxu2 }
 0x366   :  { %1963 = vmatmul.bf16.gmra.mxu3 %v1681_v6  ;;  %v1318_v63 = vadd.f32 %v1317_v45, %v3909_v33 }
 0x367   :  { %2331 = vmatpush.bf16.msrb.mxu1 %v3204_v15 }
 0x36a   :  { %v4229_v36 = vpop.f32.mrf.mxu3 }
 0x36d   :  { %v1319_v59 = vpop.f32.mrf.mxu2 }
 0x372   :  { %1370 = vmatmul.bf16.gmra.mxu2 %v3802_v2  ;;  %v1320_v2 = vadd.f32 %v1319_v59, %v3909_v33  ;;  %v4236_v30 = vpop.f32.mrf.mxu3  ;;  %v4239_v59 = vperm.slane %v3906_v19, 1 }
 0x373   :  { %5069 = vst [vmem:[#allocation18_spill] sm:$0xff] %v4236_v30 }
 0x374   :  { %v1619_v13 = vmax.f32 %v1320_v2, 0.0 }
 0x375   :  { %v1322_v3 = vpop.f32.mrf.mxu2 }
 0x376   :  { %1968 = vmatmul.bf16.gmra.mxu3 %v1683_v39  ;;  %v1617_v39 = vmax.f32 %v1318_v63, 0.0 }
 0x37d   :  { %v1324_v6 = vpop.f32.mrf.mxu2 }
 0x37e   :  { %v1325_v12 = vadd.f32 %v1324_v6, %v3909_v33 }
 0x380   :  { %v1623_v63 = vmax.f32 %v1325_v12, 0.0 }
 0x382   :  { %1375 = vmatmul.bf16.gmra.mxu2 %v3818_v28  ;;  %v1687_v28 = vpack.c.bf16 %v1619_v13, %v1617_v39  ;;  %v4245_v13 = vpop.f32.mrf.mxu3 }
 0x385   :  { %v1327_v25 = vpop.f32.mrf.mxu2 }
 0x386   :  { %1973 = vmatmul.bf16.gmra.mxu3 %v1685_v52  ;;  %v1323_v52 = vadd.f32 %v1322_v3, %v3909_v33  ;;  %v1328_v12 = vadd.f32 %v1327_v25, %v3909_v33 }
 0x388   :  { %v1621_v39 = vmax.f32 %v1323_v52, 0.0 }
 0x38a   :  { %v1689_v19 = vpack.c.bf16 %v1623_v63, %v1621_v39  ;;  %v4248_v6 = vpop.f32.mrf.mxu3  ;;  %v1625_v63 = vmax.f32 %v1328_v12, 0.0 }
 0x38d   :  { %v1329_v50 = vpop.f32.mrf.mxu2 }
 0x392   :  { %1380 = vmatmul.bf16.gmra.mxu2 %v3845_v62  ;;  %v4258_v39 = vpop.f32.mrf.mxu3 }
 0x395   :  { %v1341_v22 = vpop.f32.mrf.mxu2 }
 0x396   :  { %1978 = vmatmul.bf16.gmra.mxu3 %v1687_v28  ;;  %v1342_v45 = vadd.f32 %v1341_v22, %v4239_v59  ;;  %v1330_v22 = vadd.f32 %v1329_v50, %v3909_v33 }
 0x398   :  { %v1502_v62 = vmax.f32 %v1342_v45, 0.0 }
 0x39d   :  { %v1343_v21 = vpop.f32.mrf.mxu2 }
 0x39e   :  { %v1344_v2 = vadd.f32 %v1343_v21, %v4239_v59 }
 0x3a0   :  { %v1504_v15 = vmax.f32 %v1344_v2, 0.0  ;;  %v1627_v2 = vmax.f32 %v1330_v22, 0.0 }
 0x3a2   :  { %v1630_v28 = vpack.c.bf16 %v1504_v15, %v1502_v62  ;;  %1385 = vmatmul.bf16.gmra.mxu2 %v3875_v32  ;;  %v3203_v32 = vld [vmem:[%s5042_s9 + $0x10] sm:$0xff]  ;;  %v1691_v50 = vpack.c.bf16 %v1627_v2, %v1625_v63 }
 0x3a3   :  { %2332 = vmatpush.bf16.msrb.mxu1 %v3203_v32 }
 0x3a4   :  { %2002 = vmatmul.bf16.vlgmr.msrb.gmra.mxu0 %v1630_v28 }
 0x3a5   :  { %v1346_v30 = vpop.f32.mrf.mxu2 }
 0x3a6   :  { %1983 = vmatmul.bf16.gmra.mxu3 %v1689_v19  ;;  %v1347_v3 = vadd.f32 %v1346_v30, %v4239_v59 }
 0x3a8   :  { %v1506_v52 = vmax.f32 %v1347_v3, 0.0 }
 0x3ad   :  { %v1348_v21 = vpop.f32.mrf.mxu2 }
 0x3ae   :  { %v1349_v45 = vadd.f32 %v1348_v21, %v4239_v59 }
 0x3b0   :  { %v1508_v62 = vmax.f32 %v1349_v45, 0.0 }
 0x3b2   :  { %1390 = vmatmul.bf16.gmra.mxu2 %v3896_v5  ;;  %v1632_v15 = vpack.c.bf16 %v1508_v62, %v1506_v52  ;;  %v3202_v62 = vld [vmem:[%s5042_s9 + $0x8] sm:$0xff] }
 0x3b3   :  { %2333 = vmatpush.bf16.msrb.mxu1 %v3202_v62 }
 0x3b4   :  { %2007 = vmatmul.bf16.gmra.mxu0 %v1632_v15 }
 0x3b5   :  { %v1351_v30 = vpop.f32.mrf.mxu2 }
 0x3b6   :  { %1988 = vmatmul.bf16.gmra.mxu3 %v1691_v50  ;;  %v1352_v33 = vadd.f32 %v1351_v30, %v4239_v59 }
 0x3b8   :  { %v1510_v19 = vmax.f32 %v1352_v33, 0.0 }
 0x3bd   :  { %v1353_v25 = vpop.f32.mrf.mxu2 }
 0x3be   :  { %v1354_v28 = vadd.f32 %v1353_v25, %v4239_v59 }
 0x3c0   :  { %v1512_v22 = vmax.f32 %v1354_v28, 0.0 }
 0x3c2   :  { %1395 = vmatmul.bf16.gmra.mxu2 %v3920_v34  ;;  %v1634_v3 = vpack.c.bf16 %v1512_v22, %v1510_v19 }
 0x3c4   :  { %2012 = vmatmul.bf16.gmra.mxu0 %v1634_v3 }
 0x3c5   :  { %v1356_v5 = vpop.f32.mrf.mxu2 }
 0x3c6   :  { %v1357_v21 = vadd.f32 %v1356_v5, %v4239_v59 }
 0x3c8   :  { %v1514_v2 = vmax.f32 %v1357_v21, 0.0  ;;  %v3201_v21 = vld [vmem:[%s5042_s9] sm:$0xff] }
 0x3c9   :  { %2334 = vmatpush.bf16.msrb.mxu1 %v3201_v21  ;;  %v4289_v21 = vld [vmem:[%s5041_s8] ss:$0 sm:$0xff] }
 0x3cd   :  { %v1358_v12 = vpop.f32.mrf.mxu2 }
 0x3ce   :  { %v1359_v45 = vadd.f32 %v1358_v12, %v4239_v59 }
 0x3d0   :  { %v1516_v52 = vmax.f32 %v1359_v45, 0.0 }
 0x3d2   :  { %1400 = vmatmul.bf16.gmra.mxu2 %v3934_v4  ;;  %v1636_v32 = vpack.c.bf16 %v1516_v52, %v1514_v2 }
 0x3d4   :  { %2017 = vmatmul.bf16.gmra.mxu0 %v1636_v32 }
 0x3d5   :  { %v1361_v34 = vpop.f32.mrf.mxu2 }
 0x3d6   :  { %v1362_v63 = vadd.f32 %v1361_v34, %v4239_v59 }
 0x3d8   :  { %v1518_v30 = vmax.f32 %v1362_v63, 0.0 }
 0x3dd   :  { %v1363_v15 = vpop.f32.mrf.mxu2 }
 0x3de   :  { %v1364_v50 = vadd.f32 %v1363_v15, %v4239_v59 }
 0x3e0   :  { %v1520_v33 = vmax.f32 %v1364_v50, 0.0 }
 0x3e2   :  { %1405 = vmatmul.bf16.gmra.mxu2 %v3948_v40  ;;  %v1638_v25 = vpack.c.bf16 %v1520_v33, %v1518_v30 }
 0x3e4   :  { %2022 = vmatmul.bf16.gmra.mxu0 %v1638_v25 }
 0x3e5   :  { %v1366_v28 = vpop.f32.mrf.mxu2 }
 0x3e6   :  { %v1367_v19 = vadd.f32 %v1366_v28, %v4239_v59 }
 0x3e8   :  { %v1522_v3 = vmax.f32 %v1367_v19, 0.0 }
 0x3ed   :  { %v1368_v22 = vpop.f32.mrf.mxu2 }
 0x3ee   :  { %v1369_v4 = vadd.f32 %v1368_v22, %v4239_v59 }
 0x3f0   :  { %v1524_v5 = vmax.f32 %v1369_v4, 0.0 }
 0x3f2   :  { %1410 = vmatmul.bf16.gmra.mxu2 %v3962_v46  ;;  %v1640_v12 = vpack.c.bf16 %v1524_v5, %v1522_v3 }
 0x3f4   :  { %2027 = vmatmul.bf16.gmra.mxu0 %v1640_v12 }
 0x3f5   :  { %v1371_v40 = vpop.f32.mrf.mxu2 }
 0x3f6   :  { %v1372_v45 = vadd.f32 %v1371_v40, %v4239_v59  ;;  %v1835_v40 = vadd.f32 %v4289_v21, %v4032_v49 }
 0x3f8   :  { %v1526_v62 = vmax.f32 %v1372_v45, 0.0  ;;  %v1837_v45 = vadd.f32 %v4289_v21, %v4036_v11 }
 0x3fd   :  { %v1373_v2 = vpop.f32.mrf.mxu2 }
 0x3fe   :  { %v1374_v52 = vadd.f32 %v1373_v2, %v4239_v59 }
 0x400   :  { %v1528_v32 = vmax.f32 %v1374_v52, 0.0 }
 0x402   :  { %1415 = vmatmul.bf16.gmra.mxu2 %v3980_v53  ;;  %v1642_v34 = vpack.c.bf16 %v1528_v32, %v1526_v62 }
 0x404   :  { %2032 = vmatmul.bf16.gmra.mxu0 %v1642_v34 }
 0x405   :  { %v1376_v63 = vpop.f32.mrf.mxu2 }
 0x406   :  { %v1377_v15 = vadd.f32 %v1376_v63, %v4239_v59 }
 0x408   :  { %v1530_v30 = vmax.f32 %v1377_v15, 0.0 }
 0x40d   :  { %v1378_v50 = vpop.f32.mrf.mxu2 }
 0x40e   :  { %v1379_v46 = vadd.f32 %v1378_v50, %v4239_v59 }
 0x410   :  { %v1532_v33 = vmax.f32 %v1379_v46, 0.0 }
 0x412   :  { %1420 = vmatmul.bf16.gmra.mxu2 %v3992_v27  ;;  %v1644_v25 = vpack.c.bf16 %v1532_v33, %v1530_v30 }
 0x414   :  { %2037 = vmatmul.bf16.gmra.mxu0 %v1644_v25  ;;  %v1840_v25 = vadd.f32 %v4289_v21, %v4045_v55 }
 0x415   :  { %v1381_v28 = vpop.f32.mrf.mxu2 }
 0x416   :  { %v1382_v19 = vadd.f32 %v1381_v28, %v4239_v59  ;;  %v1842_v28 = vadd.f32 %v4289_v21, %v4049_v60 }
 0x418   :  { %v1534_v4 = vmax.f32 %v1382_v19, 0.0 }
 0x41d   :  { %v1383_v22 = vpop.f32.mrf.mxu2 }
 0x41e   :  { %v1384_v53 = vadd.f32 %v1383_v22, %v4239_v59 }
 0x420   :  { %v1536_v3 = vmax.f32 %v1384_v53, 0.0 }
 0x421   :  { %v2003_v5 = vpop.f32.mrf.mxu0 }
 0x422   :  { %1425 = vmatmul.bf16.gmra.mxu2 %v3793_v48  ;;  %v1646_v12 = vpack.c.bf16 %v1536_v3, %v1534_v4  ;;  %v2004_v2 = vadd.f32 %v2003_v5, %v1835_v40 }
 0x424   :  { %2042 = vmatmul.bf16.gmra.mxu0 %v1646_v12  ;;  %v2163_v32 = vmax.f32 %v2004_v2, 0.0 }
 0x425   :  { %v1386_v27 = vpop.f32.mrf.mxu2 }
 0x426   :  { %v1387_v34 = vadd.f32 %v1386_v27, %v4239_v59 }
 0x428   :  { %v1538_v46 = vmax.f32 %v1387_v34, 0.0 }
 0x429   :  { %v2005_v52 = vpop.f32.mrf.mxu0 }
 0x42a   :  { %v2006_v62 = vadd.f32 %v2005_v52, %v1837_v45  ;;  %v1845_v52 = vadd.f32 %v4289_v21, %v4052_v17 }
 0x42c   :  { %v2164_v63 = vmax.f32 %v2006_v62, 0.0  ;;  %v1847_v62 = vadd.f32 %v4289_v21, %v4056_v23 }
 0x42d   :  { %v1388_v15 = vpop.f32.mrf.mxu2 }
 0x42e   :  { %v2227_v50 = vpack.c.bf16 %v2164_v63, %v2163_v32  ;;  %v1389_v48 = vadd.f32 %v1388_v15, %v4239_v59 }
 0x430   :  { %v1540_v30 = vmax.f32 %v1389_v48, 0.0  ;;  %2335 = vmatmul.bf16.vlgmr.msrb.gmra.mxu1 %v2227_v50 }
 0x431   :  { %v2008_v33 = vpop.f32.mrf.mxu0 }
 0x432   :  { %1430 = vmatmul.bf16.gmra.mxu2 %v3809_v8  ;;  %v1648_v49 = vpack.c.bf16 %v1540_v30, %v1538_v46  ;;  %v2009_v19 = vadd.f32 %v2008_v33, %v1840_v25  ;;  %v1850_v25 = vadd.f32 %v4289_v21, %v4068_v54 }
 0x434   :  { %2047 = vmatmul.bf16.gmra.mxu0 %v1648_v49  ;;  %v2165_v4 = vmax.f32 %v2009_v19, 0.0 }
 0x435   :  { %v1391_v11 = vpop.f32.mrf.mxu2 }
 0x436   :  { %v1392_v3 = vadd.f32 %v1391_v11, %v4239_v59 }
 0x438   :  { %v1542_v40 = vmax.f32 %v1392_v3, 0.0 }
 0x439   :  { %v2010_v22 = vpop.f32.mrf.mxu0 }
 0x43a   :  { %v2011_v53 = vadd.f32 %v2010_v22, %v1842_v28  ;;  %v1852_v28 = vadd.f32 %v4289_v21, %v4072_v7 }
 0x43c   :  { %v2166_v5 = vmax.f32 %v2011_v53, 0.0 }
 0x43d   :  { %v1393_v12 = vpop.f32.mrf.mxu2 }
 0x43e   :  { %v1394_v27 = vadd.f32 %v1393_v12, %v4239_v59  ;;  %v2228_v8 = vpack.c.bf16 %v2166_v5, %v2165_v4 }
 0x440   :  { %v1544_v45 = vmax.f32 %v1394_v27, 0.0  ;;  %2340 = vmatmul.bf16.gmra.mxu1 %v2228_v8 }
 0x441   :  { %v2013_v2 = vpop.f32.mrf.mxu0 }
 0x442   :  { %1435 = vmatmul.bf16.gmra.mxu2 %v3828_v38  ;;  %v1650_v55 = vpack.c.bf16 %v1544_v45, %v1542_v40  ;;  %v2014_v32 = vadd.f32 %v2013_v2, %v1845_v52  ;;  %v1855_v2 = vadd.f32 %v4289_v21, %v4075_v47 }
 0x444   :  { %2052 = vmatmul.bf16.gmra.mxu0 %v1650_v55  ;;  %v2167_v15 = vmax.f32 %v2014_v32, 0.0  ;;  %v1857_v55 = vadd.f32 %v4289_v21, %v4079_v0 }
 0x445   :  { %v1396_v60 = vpop.f32.mrf.mxu2 }
 0x446   :  { %v1397_v50 = vadd.f32 %v1396_v60, %v4239_v59 }
 0x448   :  { %v1546_v33 = vmax.f32 %v1397_v50, 0.0 }
 0x449   :  { %v2015_v34 = vpop.f32.mrf.mxu0 }
 0x44a   :  { %v2016_v63 = vadd.f32 %v2015_v34, %v1847_v62 }
 0x44c   :  { %v2168_v48 = vmax.f32 %v2016_v63, 0.0 }
 0x44d   :  { %v1398_v46 = vpop.f32.mrf.mxu2 }
 0x44e   :  { %v1399_v30 = vadd.f32 %v1398_v46, %v4239_v59  ;;  %v2229_v38 = vpack.c.bf16 %v2168_v48, %v2167_v15 }
 0x450   :  { %v1548_v49 = vmax.f32 %v1399_v30, 0.0  ;;  %2345 = vmatmul.bf16.gmra.mxu1 %v2229_v38  ;;  %v1860_v38 = vadd.f32 %v4289_v21, %v4091_v58 }
 0x451   :  { %v2018_v11 = vpop.f32.mrf.mxu0 }
 0x452   :  { %1440 = vmatmul.bf16.gmra.mxu2 %v3856_v9  ;;  %v1652_v17 = vpack.c.bf16 %v1548_v49, %v1546_v33  ;;  %v2019_v19 = vadd.f32 %v2018_v11, %v1850_v25  ;;  %v1862_v33 = vadd.f32 %v4289_v21, %v4095_v10 }
 0x454   :  { %2057 = vmatmul.bf16.gmra.mxu0 %v1652_v17  ;;  %v2169_v4 = vmax.f32 %v2019_v19, 0.0 }
 0x455   :  { %v1401_v23 = vpop.f32.mrf.mxu2 }
 0x456   :  { %v1402_v3 = vadd.f32 %v1401_v23, %v4239_v59 }
 0x458   :  { %v1550_v8 = vmax.f32 %v1402_v3, 0.0 }
 0x459   :  { %v2020_v22 = vpop.f32.mrf.mxu0 }
 0x45a   :  { %v2021_v53 = vadd.f32 %v2020_v22, %v1852_v28 }
 0x45c   :  { %v2170_v5 = vmax.f32 %v2021_v53, 0.0 }
 0x45d   :  { %v1403_v12 = vpop.f32.mrf.mxu2 }
 0x45e   :  { %v1404_v27 = vadd.f32 %v1403_v12, %v4239_v59  ;;  %v2230_v9 = vpack.c.bf16 %v2170_v5, %v2169_v4  ;;  %v1865_v5 = vadd.f32 %v4289_v21, %v4098_v56  ;;  %v1867_v12 = vadd.f32 %v4289_v21, %v4102_v16 }
 0x460   :  { %v1552_v40 = vmax.f32 %v1404_v27, 0.0  ;;  %2350 = vmatmul.bf16.gmra.mxu1 %v2230_v9 }
 0x461   :  { %v2023_v45 = vpop.f32.mrf.mxu0 }
 0x462   :  { %1445 = vmatmul.bf16.gmra.mxu2 %v3883_v43  ;;  %v1654_v54 = vpack.c.bf16 %v1552_v40, %v1550_v8  ;;  %v2024_v60 = vadd.f32 %v2023_v45, %v1855_v2 }
 0x464   :  { %2062 = vmatmul.bf16.gmra.mxu0 %v1654_v54  ;;  %v2171_v32 = vmax.f32 %v2024_v60, 0.0 }
 0x465   :  { %v1406_v7 = vpop.f32.mrf.mxu2 }
 0x466   :  { %v1407_v34 = vadd.f32 %v1406_v7, %v4239_v59 }
 0x468   :  { %v1554_v48 = vmax.f32 %v1407_v34, 0.0  ;;  %v1872_v34 = vadd.f32 %v4289_v21, %v4119_v41 }
 0x469   :  { %v2025_v52 = vpop.f32.mrf.mxu0 }
 0x46a   :  { %v2026_v62 = vadd.f32 %v2025_v52, %v1857_v55 }
 0x46c   :  { %v2172_v63 = vmax.f32 %v2026_v62, 0.0  ;;  %v5070_v62 = vld [vmem:[#allocation10_spill] sm:$0xff] }
 0x46d   :  { %v1408_v15 = vpop.f32.mrf.mxu2 }
 0x46e   :  { %v1409_v50 = vadd.f32 %v1408_v15, %v4239_v59  ;;  %v2231_v43 = vpack.c.bf16 %v2172_v63, %v2171_v32  ;;  %v1870_v32 = vadd.f32 %v4289_v21, %v5070_v62 }
 0x470   :  { %v1556_v46 = vmax.f32 %v1409_v50, 0.0  ;;  %2355 = vmatmul.bf16.gmra.mxu1 %v2231_v43 }
 0x471   :  { %v2028_v30 = vpop.f32.mrf.mxu0 }
 0x472   :  { %1450 = vmatmul.bf16.gmra.mxu2 %v3901_v18  ;;  %v1656_v47 = vpack.c.bf16 %v1556_v46, %v1554_v48  ;;  %v2029_v49 = vadd.f32 %v2028_v30, %v1860_v38 }
 0x474   :  { %2067 = vmatmul.bf16.gmra.mxu0 %v1656_v47  ;;  %v2173_v23 = vmax.f32 %v2029_v49, 0.0  ;;  %v5071_v49 = vld [vmem:[#allocation3_spill] sm:$0xff] }
 0x475   :  { %v1411_v0 = vpop.f32.mrf.mxu2 }
 0x476   :  { %v1412_v25 = vadd.f32 %v1411_v0, %v4239_v59 }
 0x478   :  { %v1558_v53 = vmax.f32 %v1412_v25, 0.0 }
 0x479   :  { %v2030_v11 = vpop.f32.mrf.mxu0 }
 0x47a   :  { %v2031_v17 = vadd.f32 %v2030_v11, %v1862_v33 }
 0x47c   :  { %v2174_v28 = vmax.f32 %v2031_v17, 0.0  ;;  %v1875_v17 = vadd.f32 %v4289_v21, %v4123_v37 }
 0x47d   :  { %v1413_v19 = vpop.f32.mrf.mxu2 }
 0x47e   :  { %v1414_v22 = vadd.f32 %v1413_v19, %v4239_v59  ;;  %v2232_v18 = vpack.c.bf16 %v2174_v28, %v2173_v23  ;;  %v5072_v23 = vld [vmem:[#allocation11_spill] sm:$0xff] }
 0x47f   :  { %v1877_v25 = vadd.f32 %v4289_v21, %v5072_v23 }
 0x480   :  { %v1560_v4 = vmax.f32 %v1414_v22, 0.0  ;;  %2360 = vmatmul.bf16.gmra.mxu1 %v2232_v18  ;;  %v4355_v18 = vld [vmem:[%s5043_s10] ss:$0 sm:$0xff] }
 0x481   :  { %v2033_v3 = vpop.f32.mrf.mxu0 }
 0x482   :  { %1455 = vmatmul.bf16.gmra.mxu2 %v3924_v57  ;;  %v1658_v58 = vpack.c.bf16 %v1560_v4, %v1558_v53  ;;  %v2034_v27 = vadd.f32 %v2033_v3, %v1865_v5 }
 0x484   :  { %2072 = vmatmul.bf16.gmra.mxu0 %v1658_v58  ;;  %v2175_v40 = vmax.f32 %v2034_v27, 0.0  ;;  %v4363_v27 = vld [vmem:[%s5044_s11] ss:$0 sm:$0xff] }
 0x485   :  { %v1416_v10 = vpop.f32.mrf.mxu2 }
 0x486   :  { %v1417_v45 = vadd.f32 %v1416_v10, %v4239_v59 }
 0x488   :  { %v1562_v55 = vmax.f32 %v1417_v45, 0.0 }
 0x489   :  { %v2035_v9 = vpop.f32.mrf.mxu0 }
 0x48a   :  { %v2036_v8 = vadd.f32 %v2035_v9, %v1867_v12 }
 0x48c   :  { %v2176_v54 = vmax.f32 %v2036_v8, 0.0 }
 0x48d   :  { %v1418_v7 = vpop.f32.mrf.mxu2 }
 0x48e   :  { %v1419_v2 = vadd.f32 %v1418_v7, %v4239_v59  ;;  %v2233_v57 = vpack.c.bf16 %v2176_v54, %v2175_v40  ;;  %v5073_v54 = vld [vmem:[#allocation4_spill] sm:$0xff] }
 0x490   :  { %v1564_v60 = vmax.f32 %v1419_v2, 0.0  ;;  %2365 = vmatmul.bf16.gmra.mxu1 %v2233_v57 }
 0x491   :  { %v2038_v52 = vpop.f32.mrf.mxu0 }
 0x492   :  { %1460 = vmatmul.bf16.gmra.mxu2 %v3938_v29  ;;  %v1660_v56 = vpack.c.bf16 %v1564_v60, %v1562_v55  ;;  %v2039_v63 = vadd.f32 %v2038_v52, %v1870_v32  ;;  %v1880_v52 = vadd.f32 %v4289_v21, %v4140_v24 }
 0x494   :  { %2077 = vmatmul.bf16.gmra.mxu0 %v1660_v56  ;;  %v2177_v43 = vmax.f32 %v2039_v63, 0.0 }
 0x495   :  { %v1421_v16 = vpop.f32.mrf.mxu2 }
 0x496   :  { %v1422_v48 = vadd.f32 %v1421_v16, %v4239_v59  ;;  %v1882_v16 = vadd.f32 %v4289_v21, %v4144_v61 }
 0x498   :  { %v1566_v0 = vmax.f32 %v1422_v48, 0.0 }
 0x499   :  { %v2040_v15 = vpop.f32.mrf.mxu0 }
 0x49a   :  { %v2041_v50 = vadd.f32 %v2040_v15, %v1872_v34 }
 0x49c   :  { %v2178_v46 = vmax.f32 %v2041_v50, 0.0 }
 0x49d   :  { %v1423_v30 = vpop.f32.mrf.mxu2 }
 0x49e   :  { %v1424_v47 = vadd.f32 %v1423_v30, %v4239_v59  ;;  %v2234_v29 = vpack.c.bf16 %v2178_v46, %v2177_v43 }
 0x4a0   :  { %v1568_v38 = vmax.f32 %v1424_v47, 0.0  ;;  %2370 = vmatmul.bf16.gmra.mxu1 %v2234_v29 }
 0x4a1   :  { %v2043_v33 = vpop.f32.mrf.mxu0 }
 0x4a2   :  { %1465 = vmatmul.bf16.gmra.mxu2 %v5071_v49  ;;  %v1662_v11 = vpack.c.bf16 %v1568_v38, %v1566_v0  ;;  %v2044_v28 = vadd.f32 %v2043_v33, %v1875_v17 }
 0x4a4   :  { %2082 = vmatmul.bf16.gmra.mxu0 %v1662_v11  ;;  %v2179_v53 = vmax.f32 %v2044_v28, 0.0  ;;  %v5074_v11 = vld [vmem:[#allocation5_spill] sm:$0xff] }
 0x4a5   :  { %v1426_v41 = vpop.f32.mrf.mxu2 }
 0x4a6   :  { %v1427_v4 = vadd.f32 %v1426_v41, %v4239_v59 }
 0x4a8   :  { %v1570_v9 = vmax.f32 %v1427_v4, 0.0 }
 0x4a9   :  { %v2045_v19 = vpop.f32.mrf.mxu0 }
 0x4aa   :  { %v2046_v22 = vadd.f32 %v2045_v19, %v1877_v25  ;;  %v1885_v19 = vadd.f32 %v4289_v21, %v4147_v51 }
 0x4ac   :  { %v2180_v3 = vmax.f32 %v2046_v22, 0.0 }
 0x4ad   :  { %v1428_v58 = vpop.f32.mrf.mxu2  ;;  %v2336_v10 = vpop.f32.mrf.mxu1 }
 0x4ae   :  { %v1429_v5 = vadd.f32 %v1428_v58, %v4239_v59  ;;  %v2337_v37 = vadd.f32 %v4355_v18, %v2336_v10  ;;  %v2235_v12 = vpack.c.bf16 %v2180_v3, %v2179_v53  ;;  %v1887_v53 = vadd.f32 %v4289_v21, %v4154_v44 }
 0x4b0   :  { %v1572_v8 = vmax.f32 %v1429_v5, 0.0  ;;  %v2496_v40 = vmax.f32 %v2337_v37, 0.0  ;;  %2375 = vmatmul.bf16.gmra.mxu1 %v2235_v12 }
 0x4b1   :  { %v2048_v45 = vpop.f32.mrf.mxu0 }
 0x4b2   :  { %1470 = vmatmul.bf16.gmra.mxu2 %v5073_v54  ;;  %v1664_v7 = vpack.c.bf16 %v1572_v8, %v1570_v9  ;;  %v2564_v2 = vmul.f32 %v4363_v27, %v2496_v40  ;;  %v2049_v62 = vadd.f32 %v2048_v45, %v1880_v52 }
 0x4b4   :  { %2087 = vmatmul.bf16.gmra.mxu0 %v1664_v7  ;;  %v2628_v57 = vsel %vm699_vm0, %v2564_v2, 0.0  ;;  %v2181_v50 = vmax.f32 %v2049_v62, 0.0 }
 0x4b5   :  { %v1431_v55 = vpop.f32.mrf.mxu2  ;;  %v2338_v60 = vpop.f32.mrf.mxu1  ;;  %2629 = vadd.xlane.f32.xlu1 %v2628_v57 }
 0x4b6   :  { %v2339_v56 = vadd.f32 %v4355_v18, %v2338_v60  ;;  %v1432_v43 = vadd.f32 %v1431_v55, %v4239_v59  ;;  %v5075_v60 = vld [vmem:[#allocation6_spill] sm:$0xff] }
 0x4b8   :  { %v2497_v32 = vmax.f32 %v2339_v56, 0.0  ;;  %v1574_v0 = vmax.f32 %v1432_v43, 0.0 }
 0x4b9   :  { %v2050_v34 = vpop.f32.mrf.mxu0 }
 0x4ba   :  { %v2051_v63 = vadd.f32 %v2050_v34, %v1882_v16  ;;  %v2565_v15 = vmul.f32 %v4363_v27, %v2497_v32  ;;  %v5076_v34 = vld [vmem:[#allocation12_spill] sm:$0xff] }
 0x4bc   :  { %v2182_v48 = vmax.f32 %v2051_v63, 0.0  ;;  %v2631_v46 = vsel %vm699_vm0, %v2565_v15, 0.0  ;;  %v1890_v63 = vadd.f32 %v4289_v21, %v5076_v34  ;;  %v5079_v34 = vld [vmem:[#allocation8_spill] sm:$0xff] }
 0x4bd   :  { %v1433_v30 = vpop.f32.mrf.mxu2  ;;  %v2341_v47 = vpop.f32.mrf.mxu1  ;;  %2632 = vadd.xlane.f32.xlu2 %v2631_v46 }
 0x4be   :  { %v1434_v24 = vadd.f32 %v1433_v30, %v4239_v59  ;;  %v2342_v29 = vadd.f32 %v4355_v18, %v2341_v47  ;;  %v2236_v61 = vpack.c.bf16 %v2182_v48, %v2181_v50  ;;  %v1892_v50 = vadd.f32 %v4289_v21, %v4165_v1 }
 0x4c0   :  { %v1576_v38 = vmax.f32 %v1434_v24, 0.0  ;;  %v2498_v33 = vmax.f32 %v2342_v29, 0.0  ;;  %2380 = vmatmul.bf16.gmra.mxu1 %v2236_v61 }
 0x4c1   :  { %v2053_v49 = vpop.f32.mrf.mxu0 }
 0x4c2   :  { %1475 = vmatmul.bf16.gmra.mxu2 %v5074_v11  ;;  %v1666_v41 = vpack.c.bf16 %v1576_v38, %v1574_v0  ;;  %v2566_v17 = vmul.f32 %v4363_v27, %v2498_v33  ;;  %v2054_v4 = vadd.f32 %v2053_v49, %v1885_v19  ;;  %v5077_v19 = vld [vmem:[#allocation7_spill] sm:$0xff] }
 0x4c4   :  { %2092 = vmatmul.bf16.gmra.mxu0 %v1666_v41  ;;  %v2634_v23 = vsel %vm699_vm0, %v2566_v17, 0.0  ;;  %v2183_v37 = vmax.f32 %v2054_v4, 0.0 }
 0x4c5   :  { %v1436_v25 = vpop.f32.mrf.mxu2  ;;  %v2343_v28 = vpop.f32.mrf.mxu1  ;;  %2635 = vadd.xlane.f32.xlu0 %v2634_v23 }
 0x4c6   :  { %v2344_v22 = vadd.f32 %v4355_v18, %v2343_v28  ;;  %v1437_v12 = vadd.f32 %v1436_v25, %v4239_v59 }
 0x4c8   :  { %v2499_v3 = vmax.f32 %v2344_v22, 0.0  ;;  %v1578_v7 = vmax.f32 %v1437_v12, 0.0 }
 0x4c9   :  { %v2055_v58 = vpop.f32.mrf.mxu0 }
 0x4ca   :  { %v2056_v10 = vadd.f32 %v2055_v58, %v1887_v53  ;;  %v2567_v5 = vmul.f32 %v4363_v27, %v2499_v3  ;;  %v5078_v58 = vld [vmem:[#allocation13_spill] sm:$0xff] }
 0x4cc   :  { %v2184_v9 = vmax.f32 %v2056_v10, 0.0  ;;  %v2637_v8 = vsel %vm699_vm0, %v2567_v5, 0.0  ;;  %v1895_v10 = vadd.f32 %v4289_v21, %v5078_v58  ;;  %v5081_v58 = vld [vmem:[#allocation9_spill] sm:$0xff] }
 0x4cd   :  { %v1438_v40 = vpop.f32.mrf.mxu2  ;;  %v2346_v45 = vpop.f32.mrf.mxu1  ;;  %2638 = vadd.xlane.f32.xlu2 %v2637_v8 }
 0x4ce   :  { %v1439_v51 = vadd.f32 %v1438_v40, %v4239_v59  ;;  %v2347_v54 = vadd.f32 %v4355_v18, %v2346_v45  ;;  %v2237_v44 = vpack.c.bf16 %v2184_v9, %v2183_v37  ;;  %v1897_v37 = vadd.f32 %v4289_v21, %v4175_v35 }
 0x4d0   :  { %v1580_v2 = vmax.f32 %v1439_v51, 0.0  ;;  %v2500_v57 = vmax.f32 %v2347_v54, 0.0  ;;  %2385 = vmatmul.bf16.gmra.mxu1 %v2237_v44 }
 0x4d1   :  { %v2058_v55 = vpop.f32.mrf.mxu0 }
 0x4d2   :  { %1480 = vmatmul.bf16.gmra.mxu2 %v5075_v60  ;;  %v1668_v52 = vpack.c.bf16 %v1580_v2, %v1578_v7  ;;  %v2568_v56 = vmul.f32 %v4363_v27, %v2500_v57  ;;  %v2059_v43 = vadd.f32 %v2058_v55, %v1890_v63 }
 0x4d4   :  { %2097 = vmatmul.bf16.gmra.mxu0 %v1668_v52  ;;  %v2640_v16 = vsel %vm699_vm0, %v2568_v56, 0.0  ;;  %v2185_v24 = vmax.f32 %v2059_v43, 0.0 }
 0x4d5   :  { %v1441_v62 = vpop.f32.mrf.mxu2  ;;  %v2348_v32 = vpop.f32.mrf.mxu1  ;;  %2641 = vadd.xlane.f32.xlu1 %v2640_v16 }
 0x4d6   :  { %v2349_v15 = vadd.f32 %v4355_v18, %v2348_v32  ;;  %v1442_v29 = vadd.f32 %v1441_v62, %v4239_v59 }
 0x4d8   :  { %v2501_v48 = vmax.f32 %v2349_v15, 0.0  ;;  %v1582_v41 = vmax.f32 %v1442_v29, 0.0 }
 0x4d9   :  { %v2060_v46 = vpop.f32.mrf.mxu0 }
 0x4da   :  { %v2061_v30 = vadd.f32 %v2060_v46, %v1892_v50  ;;  %v2569_v47 = vmul.f32 %v4363_v27, %v2501_v48  ;;  %v1900_v48 = vadd.f32 %v4289_v21, %v4183_v31 }
 0x4dc   :  { %v2186_v61 = vmax.f32 %v2061_v30, 0.0  ;;  %v2643_v0 = vsel %vm699_vm0, %v2569_v47, 0.0  ;;  %v5080_v30 = vld [vmem:[#allocation14_spill] sm:$0xff] }
 0x4dd   :  { %v1443_v38 = vpop.f32.mrf.mxu2  ;;  %v2351_v33 = vpop.f32.mrf.mxu1  ;;  %2644 = vadd.xlane.f32.xlu2 %v2643_v0  ;;  %v1902_v47 = vadd.f32 %v4289_v21, %v5080_v30 }
 0x4de   :  { %v1444_v49 = vadd.f32 %v1443_v38, %v4239_v59  ;;  %v2352_v11 = vadd.f32 %v4355_v18, %v2351_v33  ;;  %v2238_v1 = vpack.c.bf16 %v2186_v61, %v2185_v24 }
 0x4e0   :  { %v1584_v17 = vmax.f32 %v1444_v49, 0.0  ;;  %v2502_v23 = vmax.f32 %v2352_v11, 0.0  ;;  %2390 = vmatmul.bf16.gmra.mxu1 %v2238_v1 }
 0x4e1   :  { %v2063_v25 = vpop.f32.mrf.mxu0 }
 0x4e2   :  { %v1670_v28 = vpack.c.bf16 %v1584_v17, %v1582_v41  ;;  %1485 = vmatmul.bf16.gmra.mxu2 %v5077_v19  ;;  %v2570_v22 = vmul.f32 %v4363_v27, %v2502_v23  ;;  %v2064_v12 = vadd.f32 %v2063_v25, %v1895_v10 }
 0x4e4   :  { %2102 = vmatmul.bf16.gmra.mxu0 %v1670_v28  ;;  %v2646_v53 = vsel %vm699_vm0, %v2570_v22, 0.0  ;;  %v2187_v51 = vmax.f32 %v2064_v12, 0.0  ;;  %v18_v28 = vstv %s5045_s12 }
 0x4e5   :  { %v1446_v4 = vpop.f32.mrf.mxu2  ;;  %v2353_v3 = vpop.f32.mrf.mxu1  ;;  %2647 = vadd.xlane.f32.xlu0 %v2646_v53  ;;  %19 = vst [vmem:[#allocation2] sm:$0x1] %v18_v28 }
 0x4e6   :  { %v2354_v5 = vadd.f32 %v4355_v18, %v2353_v3  ;;  %v1447_v54 = vadd.f32 %v1446_v4, %v4239_v59 }
 0x4e8   :  { %v2503_v9 = vmax.f32 %v2354_v5, 0.0  ;;  %v1586_v52 = vmax.f32 %v1447_v54, 0.0 }
 0x4e9   :  { %v2065_v8 = vpop.f32.mrf.mxu0 }
 0x4ea   :  { %v2066_v40 = vadd.f32 %v2065_v8, %v1897_v37  ;;  %v2571_v45 = vmul.f32 %v4363_v27, %v2503_v9  ;;  %v1905_v9 = vadd.f32 %v4289_v21, %v4193_v42 }
 0x4ec   :  { %v2188_v44 = vmax.f32 %v2066_v40, 0.0  ;;  %v2649_v7 = vsel %vm699_vm0, %v2571_v45, 0.0  ;;  %v1907_v40 = vadd.f32 %v4289_v21, %v4200_v26 }
 0x4ed   :  { %v1448_v2 = vpop.f32.mrf.mxu2  ;;  %v2356_v57 = vpop.f32.mrf.mxu1  ;;  %2650 = vadd.xlane.f32.xlu1 %v2649_v7 }
 0x4ee   :  { %v1449_v55 = vadd.f32 %v1448_v2, %v4239_v59  ;;  %v2357_v60 = vadd.f32 %v4355_v18, %v2356_v57  ;;  %v2239_v35 = vpack.c.bf16 %v2188_v44, %v2187_v51 }
 0x4f0   :  { %v1588_v56 = vmax.f32 %v1449_v55, 0.0  ;;  %v2504_v16 = vmax.f32 %v2357_v60, 0.0  ;;  %2395 = vmatmul.bf16.gmra.mxu1 %v2239_v35 }
 0x4f1   :  { %v2068_v62 = vpop.f32.mrf.mxu0 }
 0x4f2   :  { %v1672_v32 = vpack.c.bf16 %v1588_v56, %v1586_v52  ;;  %1490 = vmatmul.bf16.gmra.mxu2 %v5079_v34  ;;  %v2572_v63 = vmul.f32 %v4363_v27, %v2504_v16  ;;  %v2069_v24 = vadd.f32 %v2068_v62, %v1900_v48 }
 0x4f4   :  { %2107 = vmatmul.bf16.gmra.mxu0 %v1672_v32  ;;  %v2652_v15 = vsel %vm699_vm0, %v2572_v63, 0.0  ;;  %v2189_v33 = vmax.f32 %v2069_v24, 0.0  ;;  %v5083_v24 = vld [vmem:[#allocation16_spill] sm:$0xff] }
 0x4f5   :  { %v1451_v50 = vpop.f32.mrf.mxu2  ;;  %v2358_v43 = vpop.f32.mrf.mxu1  ;;  %2653 = vadd.xlane.f32.xlu2 %v2652_v15 }
 0x4f6   :  { %v2359_v46 = vadd.f32 %v4355_v18, %v2358_v43  ;;  %v1452_v49 = vadd.f32 %v1451_v50, %v4239_v59 }
 0x4f8   :  { %v2505_v29 = vmax.f32 %v2359_v46, 0.0  ;;  %v1590_v19 = vmax.f32 %v1452_v49, 0.0  ;;  %v5082_v46 = vld [vmem:[#allocation15_spill] sm:$0xff] }
 0x4f9   :  { %v2070_v61 = vpop.f32.mrf.mxu0  ;;  %v1910_v30 = vadd.f32 %v4289_v21, %v5082_v46 }
 0x4fa   :  { %v2071_v0 = vadd.f32 %v2070_v61, %v1902_v47  ;;  %v2573_v38 = vmul.f32 %v4363_v27, %v2505_v29  ;;  %v1912_v29 = vadd.f32 %v4289_v21, %v5083_v24 }
 0x4fc   :  { %v2190_v11 = vmax.f32 %v2071_v0, 0.0  ;;  %v2655_v1 = vsel %vm699_vm0, %v2573_v38, 0.0 }
 0x4fd   :  { %v1453_v41 = vpop.f32.mrf.mxu2  ;;  %v2361_v17 = vpop.f32.mrf.mxu1  ;;  %2656 = vadd.xlane.f32.xlu0 %v2655_v1 }
 0x4fe   :  { %v1454_v31 = vadd.f32 %v1453_v41, %v4239_v59  ;;  %v2362_v23 = vadd.f32 %v4355_v18, %v2361_v17  ;;  %v2240_v25 = vpack.c.bf16 %v2190_v11, %v2189_v33 }
 0x500   :  { %v1592_v22 = vmax.f32 %v1454_v31, 0.0  ;;  %v2506_v53 = vmax.f32 %v2362_v23, 0.0  ;;  %2400 = vmatmul.bf16.gmra.mxu1 %v2240_v25 }
 0x501   :  { %v2073_v4 = vpop.f32.mrf.mxu0 }
 0x502   :  { %v1674_v3 = vpack.c.bf16 %v1592_v22, %v1590_v19  ;;  %1495 = vmatmul.bf16.gmra.mxu2 %v5081_v58  ;;  %v2574_v10 = vmul.f32 %v4363_v27, %v2506_v53  ;;  %v2074_v45 = vadd.f32 %v2073_v4, %v1905_v9  ;;  %v4460_v9 = vld [vmem:[#allocation2] ss:$0 sm:$0xff] }
 0x504   :  { %2112 = vmatmul.bf16.gmra.mxu0 %v1674_v3  ;;  %v2658_v5 = vsel %vm699_vm0, %v2574_v10, 0.0  ;;  %v2191_v2 = vmax.f32 %v2074_v45, 0.0 }
 0x505   :  { %v1456_v37 = vpop.f32.mrf.mxu2  ;;  %v2363_v12 = vpop.f32.mrf.mxu1  ;;  %2659 = vadd.xlane.f32.xlu1 %v2658_v5 }
 0x506   :  { %v2364_v8 = vadd.f32 %v4355_v18, %v2363_v12  ;;  %v1457_v57 = vadd.f32 %v1456_v37, %v4239_v59 }
 0x508   :  { %v2507_v51 = vmax.f32 %v2364_v8, 0.0  ;;  %v1594_v16 = vmax.f32 %v1457_v57, 0.0  ;;  %v5084_v8 = vld [vmem:[#allocation17_spill] sm:$0xff] }
 0x509   :  { %v2075_v54 = vpop.f32.mrf.mxu0 }
 0x50a   :  { %v2076_v44 = vadd.f32 %v2075_v54, %v1907_v40  ;;  %v2575_v7 = vmul.f32 %v4363_v27, %v2507_v51  ;;  %v1915_v40 = vadd.f32 %v4289_v21, %v5084_v8  ;;  %v1917_v51 = vadd.f32 %v4289_v21, %v4221_v14 }
 0x50c   :  { %v2192_v55 = vmax.f32 %v2076_v44, 0.0  ;;  %v2661_v60 = vsel %vm699_vm0, %v2575_v7, 0.0 }
 0x50d   :  { %v1458_v35 = vpop.f32.mrf.mxu2  ;;  %v2366_v52 = vpop.f32.mrf.mxu1  ;;  %2662 = vadd.xlane.f32.xlu2 %v2661_v60 }
 0x50e   :  { %v1459_v42 = vadd.f32 %v1458_v35, %v4239_v59  ;;  %v2367_v56 = vadd.f32 %v4355_v18, %v2366_v52  ;;  %v2241_v26 = vpack.c.bf16 %v2192_v55, %v2191_v2 }
 0x510   :  { %v1596_v62 = vmax.f32 %v1459_v42, 0.0  ;;  %v2508_v32 = vmax.f32 %v2367_v56, 0.0  ;;  %2405 = vmatmul.bf16.gmra.mxu1 %v2241_v26 }
 0x511   :  { %v2078_v34 = vpop.f32.mrf.mxu0 }
 0x512   :  { %v1676_v63 = vpack.c.bf16 %v1596_v62, %v1594_v16  ;;  %v2576_v15 = vmul.f32 %v4363_v27, %v2508_v32  ;;  %v2079_v61 = vadd.f32 %v2078_v34, %v1910_v30  ;;  %v4475_v16 = vpop.f32.mrf.mxu3 }
 0x514   :  { %2117 = vmatmul.bf16.gmra.mxu0 %v1676_v63  ;;  %v2664_v50 = vsel %vm699_vm0, %v2576_v15, 0.0  ;;  %v2193_v11 = vmax.f32 %v2079_v61, 0.0 }
 0x515   :  { %v1461_v43 = vpop.f32.mrf.mxu2  ;;  %v2368_v48 = vpop.f32.mrf.mxu1  ;;  %2665 = vadd.xlane.f32.xlu0 %v2664_v50 }
 0x516   :  { %v2369_v47 = vadd.f32 %v4355_v18, %v2368_v48  ;;  %v1462_v1 = vadd.f32 %v1461_v43, %v4239_v59 }
 0x518   :  { %v2509_v0 = vmax.f32 %v2369_v47, 0.0  ;;  %v1598_v22 = vmax.f32 %v1462_v1, 0.0 }
 0x519   :  { %v2080_v38 = vpop.f32.mrf.mxu0 }
 0x51a   :  { %v2081_v33 = vadd.f32 %v2080_v38, %v1912_v29  ;;  %v2577_v49 = vmul.f32 %v4363_v27, %v2509_v0  ;;  %v1920_v0 = vadd.f32 %v4289_v21, %v4226_v20 }
 0x51c   :  { %v2194_v41 = vmax.f32 %v2081_v33, 0.0  ;;  %v2667_v17 = vsel %vm699_vm0, %v2577_v49, 0.0  ;;  %v1922_v33 = vadd.f32 %v4289_v21, %v4229_v36  ;;  %v4491_v49 = vpop.f32.mrf.mxu3 }
 0x51d   :  { %v1463_v31 = vpop.f32.mrf.mxu2  ;;  %v2371_v23 = vpop.f32.mrf.mxu1  ;;  %2668 = vadd.xlane.f32.xlu1 %v2667_v17 }
 0x51e   :  { %v1464_v25 = vadd.f32 %v1463_v31, %v4239_v59  ;;  %v2372_v28 = vadd.f32 %v4355_v18, %v2371_v23  ;;  %v2242_v19 = vpack.c.bf16 %v2194_v41, %v2193_v11 }
 0x520   :  { %v1600_v53 = vmax.f32 %v1464_v25, 0.0  ;;  %v2510_v4 = vmax.f32 %v2372_v28, 0.0  ;;  %2410 = vmatmul.bf16.gmra.mxu1 %v2242_v19 }
 0x521   :  { %v2083_v3 = vpop.f32.mrf.mxu0 }
 0x522   :  { %v1678_v58 = vpack.c.bf16 %v1600_v53, %v1598_v22  ;;  %v2578_v10 = vmul.f32 %v4363_v27, %v2510_v4  ;;  %v2084_v54 = vadd.f32 %v2083_v3, %v1915_v40 }
 0x524   :  { %2122 = vmatmul.bf16.gmra.mxu0 %v1678_v58  ;;  %v2670_v5 = vsel %vm699_vm0, %v2578_v10, 0.0  ;;  %v2195_v35 = vmax.f32 %v2084_v54, 0.0 }
 0x525   :  { %v1466_v37 = vpop.f32.mrf.mxu2  ;;  %v2373_v12 = vpop.f32.mrf.mxu1  ;;  %2671 = vadd.xlane.f32.xlu2 %v2670_v5 }
 0x526   :  { %v2374_v45 = vadd.f32 %v4355_v18, %v2373_v12  ;;  %v1467_v52 = vadd.f32 %v1466_v37, %v4239_v59 }
 0x528   :  { %v2511_v44 = vmax.f32 %v2374_v45, 0.0  ;;  %v2630_v7 = vpop.xlane.xlu1 %2629  ;;  %v1602_v63 = vmax.f32 %v1467_v52, 0.0  ;;  %v4504_v45 = vpop.f32.mrf.mxu3 }
 0x529   :  { %v2824_v2 = vadd.f32 %v4460_v9, %v2630_v7  ;;  %v2085_v57 = vpop.f32.mrf.mxu0 }
 0x52a   :  { %v2086_v55 = vadd.f32 %v2085_v57, %v1917_v51  ;;  %v2579_v60 = vmul.f32 %v4363_v27, %v2511_v44  ;;  %v5085_v57 = vld [vmem:[#allocation18_spill] sm:$0xff] }
 0x52b   :  { %2889 = vst.msk [vmem:[%s5046_s13] sm:$0xff] %vm2888_vm1, %v2824_v2 }
 0x52c   :  { %v2196_v42 = vmax.f32 %v2086_v55, 0.0  ;;  %v2673_v14 = vsel %vm699_vm0, %v2579_v60, 0.0  ;;  %v1925_v55 = vadd.f32 %v4289_v21, %v5085_v57 }
 0x52d   :  { %v1468_v56 = vpop.f32.mrf.mxu2  ;;  %v2376_v26 = vpop.f32.mrf.mxu1  ;;  %2674 = vadd.xlane.f32.xlu0 %v2673_v14 }
 0x52e   :  { %v1469_v62 = vadd.f32 %v1468_v56, %v4239_v59  ;;  %v2377_v32 = vadd.f32 %v4355_v18, %v2376_v26  ;;  %v2243_v34 = vpack.c.bf16 %v2196_v42, %v2195_v35  ;;  %v1927_v35 = vadd.f32 %v4289_v21, %v4245_v13 }
 0x530   :  { %v1604_v15 = vmax.f32 %v1469_v62, 0.0  ;;  %v2512_v50 = vmax.f32 %v2377_v32, 0.0  ;;  %2415 = vmatmul.bf16.gmra.mxu1 %v2243_v34  ;;  %v2633_v43 = vpop.xlane.xlu2 %2632  ;;  %v4523_v34 = vpop.f32.mrf.mxu3 }
 0x531   :  { %v2825_v48 = vadd.f32 %v4460_v9, %v2633_v43  ;;  %v2088_v46 = vpop.f32.mrf.mxu0 }
 0x532   :  { %v1680_v30 = vpack.c.bf16 %v1604_v15, %v1602_v63  ;;  %v2580_v47 = vmul.f32 %v4363_v27, %v2512_v50  ;;  %v2089_v11 = vadd.f32 %v2088_v46, %v1920_v0 }
 0x533   :  { %2890 = vst.msk [vmem:[%s5046_s13 + $0x8] sm:$0xff] %vm2888_vm1, %v2825_v48 }
 0x534   :  { %2127 = vmatmul.bf16.gmra.mxu0 %v1680_v30  ;;  %v2676_v24 = vsel %vm699_vm0, %v2580_v47, 0.0  ;;  %v2197_v20 = vmax.f32 %v2089_v11, 0.0 }
 0x535   :  { %v1471_v29 = vpop.f32.mrf.mxu2  ;;  %v2378_v61 = vpop.f32.mrf.mxu1  ;;  %2677 = vadd.xlane.f32.xlu1 %v2676_v24 }
 0x536   :  { %v2379_v38 = vadd.f32 %v4355_v18, %v2378_v61  ;;  %v1472_v28 = vadd.f32 %v1471_v29, %v4239_v59 }
 0x538   :  { %v2513_v1 = vmax.f32 %v2379_v38, 0.0  ;;  %v2636_v41 = vpop.xlane.xlu0 %2635  ;;  %v1606_v10 = vmax.f32 %v1472_v28, 0.0 }
 0x539   :  { %v2826_v17 = vadd.f32 %v4460_v9, %v2636_v41  ;;  %v2090_v31 = vpop.f32.mrf.mxu0 }
 0x53a   :  { %v2091_v23 = vadd.f32 %v2090_v31, %v1922_v33  ;;  %v2581_v25 = vmul.f32 %v4363_v27, %v2513_v1  ;;  %v4539_v31 = vld [vmem:[%s5041_s8] ss:$0 sm:$0xff] }
 0x53b   :  { %2891 = vst.msk [vmem:[%s5046_s13 + $0x10] sm:$0xff] %vm2888_vm1, %v2826_v17  ;;  %v1932_v28 = vadd.f32 %v4539_v31, %v4258_v39 }
 0x53c   :  { %v2198_v36 = vmax.f32 %v2091_v23, 0.0  ;;  %v2679_v19 = vsel %vm699_vm0, %v2581_v25, 0.0  ;;  %v1930_v23 = vadd.f32 %v4539_v31, %v4248_v6  ;;  %v4543_v25 = vpop.f32.mrf.mxu3 }
 0x53d   :  { %v1473_v22 = vpop.f32.mrf.mxu2  ;;  %v2381_v53 = vpop.f32.mrf.mxu1  ;;  %2680 = vadd.xlane.f32.xlu2 %v2679_v19 }
 0x53e   :  { %v1474_v4 = vadd.f32 %v1473_v22, %v4239_v59  ;;  %v2382_v3 = vadd.f32 %v4355_v18, %v2381_v53  ;;  %v2244_v58 = vpack.c.bf16 %v2198_v36, %v2197_v20 }
 0x540   :  { %v1608_v5 = vmax.f32 %v1474_v4, 0.0  ;;  %v2514_v37 = vmax.f32 %v2382_v3, 0.0  ;;  %2420 = vmatmul.bf16.gmra.mxu1 %v2244_v58  ;;  %v2639_v12 = vpop.xlane.xlu2 %2638 }
 0x541   :  { %v2827_v8 = vadd.f32 %v4460_v9, %v2639_v12  ;;  %v2093_v40 = vpop.f32.mrf.mxu0 }
 0x542   :  { %v1682_v51 = vpack.c.bf16 %v1608_v5, %v1606_v10  ;;  %v2582_v54 = vmul.f32 %v4363_v27, %v2514_v37  ;;  %v2094_v52 = vadd.f32 %v2093_v40, %v1925_v55 }
 0x543   :  { %2892 = vst.msk [vmem:[%s5046_s13 + $0x18] sm:$0xff] %vm2888_vm1, %v2827_v8 }
 0x544   :  { %2132 = vmatmul.bf16.gmra.mxu0 %v1682_v51  ;;  %v2682_v44 = vsel %vm699_vm0, %v2582_v54, 0.0  ;;  %v2199_v63 = vmax.f32 %v2094_v52, 0.0  ;;  %v4558_v54 = vpop.f32.mrf.mxu3 }
 0x545   :  { %v1476_v7 = vpop.f32.mrf.mxu2  ;;  %v2383_v2 = vpop.f32.mrf.mxu1  ;;  %2683 = vadd.xlane.f32.xlu0 %v2682_v44 }
 0x546   :  { %v2384_v60 = vadd.f32 %v4355_v18, %v2383_v2  ;;  %v1477_v15 = vadd.f32 %v1476_v7, %v4239_v59 }
 0x548   :  { %v2515_v42 = vmax.f32 %v2384_v60, 0.0  ;;  %v2642_v14 = vpop.xlane.xlu1 %2641  ;;  %v1610_v47 = vmax.f32 %v1477_v15, 0.0 }
 0x549   :  { %v2828_v56 = vadd.f32 %v4460_v9, %v2642_v14  ;;  %v2095_v26 = vpop.f32.mrf.mxu0 }
 0x54a   :  { %v2096_v62 = vadd.f32 %v2095_v26, %v1927_v35  ;;  %v2583_v32 = vmul.f32 %v4363_v27, %v2515_v42  ;;  %v1935_v26 = vadd.f32 %v4539_v31, %v4475_v16 }
 0x54b   :  { %2893 = vst.msk [vmem:[%s5046_s13 + $0x20] sm:$0xff] %vm2888_vm1, %v2828_v56 }
 0x54c   :  { %v2200_v13 = vmax.f32 %v2096_v62, 0.0  ;;  %v2685_v21 = vsel %vm699_vm0, %v2583_v32, 0.0  ;;  %v1937_v32 = vadd.f32 %v4539_v31, %v4491_v49 }
 0x54d   :  { %v1478_v50 = vpop.f32.mrf.mxu2  ;;  %v2386_v43 = vpop.f32.mrf.mxu1  ;;  %2686 = vadd.xlane.f32.xlu1 %v2685_v21 }
 0x54e   :  { %v1479_v48 = vadd.f32 %v1478_v50, %v4239_v59  ;;  %v2387_v46 = vadd.f32 %v4355_v18, %v2386_v43  ;;  %v2245_v30 = vpack.c.bf16 %v2200_v13, %v2199_v63  ;;  %v4573_v43 = vpop.f32.mrf.mxu3 }
 0x550   :  { %v1612_v24 = vmax.f32 %v1479_v48, 0.0  ;;  %v2516_v29 = vmax.f32 %v2387_v46, 0.0  ;;  %2425 = vmatmul.bf16.gmra.mxu1 %v2245_v30  ;;  %v2645_v61 = vpop.xlane.xlu2 %2644 }
 0x551   :  { %v2829_v0 = vadd.f32 %v4460_v9, %v2645_v61  ;;  %v2098_v38 = vpop.f32.mrf.mxu0 }
 0x552   :  { %v1684_v33 = vpack.c.bf16 %v1612_v24, %v1610_v47  ;;  %v2584_v11 = vmul.f32 %v4363_v27, %v2516_v29  ;;  %v2099_v36 = vadd.f32 %v2098_v38, %v1930_v23 }
 0x553   :  { %2894 = vst.msk [vmem:[%s5046_s13 + $0x28] sm:$0xff] %vm2888_vm1, %v2829_v0 }
 0x554   :  { %2137 = vmatmul.bf16.gmra.mxu0 %v1684_v33  ;;  %v2688_v1 = vsel %vm699_vm0, %v2584_v11, 0.0  ;;  %v2201_v6 = vmax.f32 %v2099_v36, 0.0 }
 0x555   :  { %v1481_v41 = vpop.f32.mrf.mxu2  ;;  %v2388_v17 = vpop.f32.mrf.mxu1  ;;  %2689 = vadd.xlane.f32.xlu2 %v2688_v1 }
 0x556   :  { %v2389_v20 = vadd.f32 %v4355_v18, %v2388_v17  ;;  %v1482_v10 = vadd.f32 %v1481_v41, %v4239_v59  ;;  %v4590_v36 = vpop.f32.mrf.mxu3 }
 0x558   :  { %v2517_v19 = vmax.f32 %v2389_v20, 0.0  ;;  %v2648_v22 = vpop.xlane.xlu0 %2647  ;;  %v1614_v44 = vmax.f32 %v1482_v10, 0.0 }
 0x559   :  { %v2830_v53 = vadd.f32 %v4460_v9, %v2648_v22  ;;  %v2100_v4 = vpop.f32.mrf.mxu0 }
 0x55a   :  { %v2101_v3 = vadd.f32 %v2100_v4, %v1932_v28  ;;  %v2585_v58 = vmul.f32 %v4363_v27, %v2517_v19  ;;  %v1940_v4 = vadd.f32 %v4539_v31, %v4504_v45 }
 0x55b   :  { %2895 = vst.msk [vmem:[%s5046_s13 + $0x30] sm:$0xff] %vm2888_vm1, %v2830_v53 }
 0x55c   :  { %v2202_v5 = vmax.f32 %v2101_v3, 0.0  ;;  %v2691_v39 = vsel %vm699_vm0, %v2585_v58, 0.0  ;;  %v1942_v58 = vadd.f32 %v4539_v31, %v4523_v34 }
 0x55d   :  { %v1483_v37 = vpop.f32.mrf.mxu2  ;;  %v2391_v12 = vpop.f32.mrf.mxu1  ;;  %2692 = vadd.xlane.f32.xlu0 %v2691_v39 }
 0x55e   :  { %v1484_v8 = vadd.f32 %v1483_v37, %v4239_v59  ;;  %v2392_v40 = vadd.f32 %v4355_v18, %v2391_v12  ;;  %v2246_v51 = vpack.c.bf16 %v2202_v5, %v2201_v6 }
 0x560   :  { %v1616_v7 = vmax.f32 %v1484_v8, 0.0  ;;  %v2518_v2 = vmax.f32 %v2392_v40, 0.0  ;;  %2430 = vmatmul.bf16.gmra.mxu1 %v2246_v51  ;;  %v2651_v57 = vpop.xlane.xlu1 %2650 }
 0x561   :  { %v2831_v55 = vadd.f32 %v4460_v9, %v2651_v57  ;;  %v2103_v60 = vpop.f32.mrf.mxu0 }
 0x562   :  { %v1686_v35 = vpack.c.bf16 %v1616_v7, %v1614_v44  ;;  %v2586_v52 = vmul.f32 %v4363_v27, %v2518_v2  ;;  %v2104_v63 = vadd.f32 %v2103_v60, %v1935_v26  ;;  %v4608_v60 = vpop.f32.mrf.mxu3 }
 0x563   :  { %2896 = vst.msk [vmem:[%s5046_s13 + $0x38] sm:$0xff] %vm2888_vm1, %v2831_v55 }
 0x564   :  { %2142 = vmatmul.bf16.gmra.mxu0 %v1686_v35  ;;  %v2694_v42 = vsel %vm699_vm0, %v2586_v52, 0.0  ;;  %v2203_v16 = vmax.f32 %v2104_v63, 0.0 }
 0x565   :  { %v1486_v14 = vpop.f32.mrf.mxu2  ;;  %v2393_v56 = vpop.f32.mrf.mxu1  ;;  %2695 = vadd.xlane.f32.xlu1 %v2694_v42 }
 0x566   :  { %v2394_v62 = vadd.f32 %v4355_v18, %v2393_v56  ;;  %v1487_v30 = vadd.f32 %v1486_v14, %v4239_v59 }
 0x568   :  { %v2519_v15 = vmax.f32 %v2394_v62, 0.0  ;;  %v2654_v13 = vpop.xlane.xlu2 %2653  ;;  %v1618_v33 = vmax.f32 %v1487_v30, 0.0 }
 0x569   :  { %v2832_v21 = vadd.f32 %v4460_v9, %v2654_v13  ;;  %v2105_v50 = vpop.f32.mrf.mxu0 }
 0x56a   :  { %v2106_v48 = vadd.f32 %v2105_v50, %v1937_v32  ;;  %v2587_v46 = vmul.f32 %v4363_v27, %v2519_v15 }
 0x56b   :  { %2897 = vst.msk [vmem:[%s5046_s13 + $0x40] sm:$0xff] %vm2888_vm1, %v2832_v21  ;;  %v1945_v21 = vadd.f32 %v4539_v31, %v4543_v25 }
 0x56c   :  { %v2204_v49 = vmax.f32 %v2106_v48, 0.0  ;;  %v2697_v47 = vsel %vm699_vm0, %v2587_v46, 0.0  ;;  %v1947_v48 = vadd.f32 %v4539_v31, %v4558_v54 }
 0x56d   :  { %v1488_v24 = vpop.f32.mrf.mxu2  ;;  %v2396_v29 = vpop.f32.mrf.mxu1  ;;  %2698 = vadd.xlane.f32.xlu2 %v2697_v47 }
 0x56e   :  { %v2247_v61 = vpack.c.bf16 %v2204_v49, %v2203_v16  ;;  %v1489_v0 = vadd.f32 %v1488_v24, %v4239_v59  ;;  %v2397_v38 = vadd.f32 %v4355_v18, %v2396_v29  ;;  %v4622_v49 = vpop.f32.mrf.mxu3 }
 0x570   :  { %v1620_v11 = vmax.f32 %v1489_v0, 0.0  ;;  %v2520_v1 = vmax.f32 %v2397_v38, 0.0  ;;  %2435 = vmatmul.bf16.gmra.mxu1 %v2247_v61  ;;  %v2657_v41 = vpop.xlane.xlu0 %2656 }
 0x571   :  { %v2833_v17 = vadd.f32 %v4460_v9, %v2657_v41  ;;  %v2108_v23 = vpop.f32.mrf.mxu0 }
 0x572   :  { %v1688_v20 = vpack.c.bf16 %v1620_v11, %v1618_v33  ;;  %v2588_v28 = vmul.f32 %v4363_v27, %v2520_v1  ;;  %v2109_v6 = vadd.f32 %v2108_v23, %v1940_v4 }
 0x573   :  { %2898 = vst.msk [vmem:[%s5046_s13 + $0x48] sm:$0xff] %vm2888_vm1, %v2833_v17 }
 0x574   :  { %2147 = vmatmul.bf16.gmra.mxu0 %v1688_v20  ;;  %v2700_v19 = vsel %vm699_vm0, %v2588_v28, 0.0  ;;  %v2205_v45 = vmax.f32 %v2109_v6, 0.0 }
 0x575   :  { %v1491_v22 = vpop.f32.mrf.mxu2  ;;  %v2398_v53 = vpop.f32.mrf.mxu1  ;;  %2701 = vadd.xlane.f32.xlu0 %v2700_v19 }
 0x576   :  { %v2399_v3 = vadd.f32 %v4355_v18, %v2398_v53  ;;  %v1492_v40 = vadd.f32 %v1491_v22, %v4239_v59 }
 0x578   :  { %v2521_v10 = vmax.f32 %v2399_v3, 0.0  ;;  %v2660_v5 = vpop.xlane.xlu1 %2659  ;;  %v1622_v35 = vmax.f32 %v1492_v40, 0.0 }
 0x579   :  { %v2834_v39 = vadd.f32 %v4460_v9, %v2660_v5  ;;  %v2110_v37 = vpop.f32.mrf.mxu0 }
 0x57a   :  { %v2111_v12 = vadd.f32 %v2110_v37, %v1942_v58  ;;  %v2589_v8 = vmul.f32 %v4363_v27, %v2521_v10  ;;  %v4636_v58 = vpop.f32.mrf.mxu3  ;;  %v1950_v10 = vadd.f32 %v4539_v31, %v4573_v43 }
 0x57b   :  { %2899 = vst.msk [vmem:[%s5046_s13 + $0x50] sm:$0xff] %vm2888_vm1, %v2834_v39  ;;  %v1952_v39 = vadd.f32 %v4539_v31, %v4590_v36 }
 0x57c   :  { %v2206_v51 = vmax.f32 %v2111_v12, 0.0  ;;  %v2703_v34 = vsel %vm699_vm0, %v2589_v8, 0.0 }
 0x57d   :  { %v1493_v44 = vpop.f32.mrf.mxu2  ;;  %v2401_v7 = vpop.f32.mrf.mxu1  ;;  %2704 = vadd.xlane.f32.xlu1 %v2703_v34 }
 0x57e   :  { %v2248_v2 = vpack.c.bf16 %v2206_v51, %v2205_v45  ;;  %v1494_v57 = vadd.f32 %v1493_v44, %v4239_v59  ;;  %v2402_v55 = vadd.f32 %v4355_v18, %v2401_v7 }
 0x580   :  { %v1624_v52 = vmax.f32 %v1494_v57, 0.0  ;;  %v2522_v42 = vmax.f32 %v2402_v55, 0.0  ;;  %2440 = vmatmul.bf16.gmra.mxu1 %v2248_v2  ;;  %v2663_v14 = vpop.xlane.xlu2 %2662  ;;  %v4658_v57 = vld [vmem:[%s5043_s10] ss:$0 sm:$0xff] }
 0x581   :  { %v2835_v56 = vadd.f32 %v4460_v9, %v2663_v14  ;;  %v2113_v26 = vpop.f32.mrf.mxu0  ;;  %v4665_v14 = vld [vmem:[%s5044_s11] ss:$0 sm:$0xff] }
 0x582   :  { %v1690_v62 = vpack.c.bf16 %v1624_v52, %v1622_v35  ;;  %v2590_v32 = vmul.f32 %v4363_v27, %v2522_v42  ;;  %v2114_v46 = vadd.f32 %v2113_v26, %v1945_v21  ;;  %v1961_v7 = vpop.f32.mrf.mxu3 }
 0x583   :  { %2900 = vst.msk [vmem:[%s5046_s13 + $0x58] sm:$0xff] %vm2888_vm1, %v2835_v56 }
 0x584   :  { %2152 = vmatmul.bf16.gmra.mxu0 %v1690_v62  ;;  %v2706_v63 = vsel %vm699_vm0, %v2590_v32, 0.0  ;;  %v2207_v25 = vmax.f32 %v2114_v46, 0.0  ;;  %v1955_v32 = vadd.f32 %v4539_v31, %v4608_v60 }
 0x585   :  { %v1496_v15 = vpop.f32.mrf.mxu2  ;;  %v2403_v13 = vpop.f32.mrf.mxu1  ;;  %2707 = vadd.xlane.f32.xlu2 %v2706_v63 }
 0x586   :  { %v2404_v50 = vadd.f32 %v4355_v18, %v2403_v13  ;;  %v1497_v0 = vadd.f32 %v1496_v15, %v4239_v59  ;;  %v1957_v13 = vadd.f32 %v4539_v31, %v4622_v49 }
 0x588   :  { %v2523_v16 = vmax.f32 %v2404_v50, 0.0  ;;  %v2666_v30 = vpop.xlane.xlu0 %2665  ;;  %v1626_v23 = vmax.f32 %v1497_v0, 0.0 }
 0x589   :  { %v2836_v47 = vadd.f32 %v4460_v9, %v2666_v30  ;;  %v2115_v24 = vpop.f32.mrf.mxu0 }
 0x58a   :  { %v2116_v29 = vadd.f32 %v2115_v24, %v1947_v48  ;;  %v2591_v61 = vmul.f32 %v4363_v27, %v2523_v16  ;;  %v1964_v15 = vpop.f32.mrf.mxu3 }
 0x58b   :  { %2901 = vst.msk [vmem:[%s5046_s13 + $0x60] sm:$0xff] %vm2888_vm1, %v2836_v47 }
 0x58c   :  { %v2208_v54 = vmax.f32 %v2116_v29, 0.0  ;;  %v2709_v38 = vsel %vm699_vm0, %v2591_v61, 0.0 }
 0x58d   :  { %v1498_v33 = vpop.f32.mrf.mxu2  ;;  %v2406_v11 = vpop.f32.mrf.mxu1  ;;  %2710 = vadd.xlane.f32.xlu0 %v2709_v38 }
 0x58e   :  { %v2249_v1 = vpack.c.bf16 %v2208_v54, %v2207_v25  ;;  %v1499_v41 = vadd.f32 %v1498_v33, %v4239_v59  ;;  %v2407_v17 = vadd.f32 %v4355_v18, %v2406_v11 }
 0x590   :  { %v1628_v20 = vmax.f32 %v1499_v41, 0.0  ;;  %v2524_v28 = vmax.f32 %v2407_v17, 0.0  ;;  %2445 = vmatmul.bf16.gmra.mxu1 %v2249_v1  ;;  %v2669_v19 = vpop.xlane.xlu1 %2668 }
 0x591   :  { %v2837_v22 = vadd.f32 %v4460_v9, %v2669_v19  ;;  %v2118_v53 = vpop.f32.mrf.mxu0 }
 0x592   :  { %v1692_v4 = vpack.c.bf16 %v1628_v20, %v1626_v23  ;;  %v2592_v3 = vmul.f32 %v4363_v27, %v2524_v28  ;;  %v2119_v37 = vadd.f32 %v2118_v53, %v1950_v10  ;;  %v1966_v38 = vpop.f32.mrf.mxu3  ;;  %v1960_v23 = vadd.f32 %v4539_v31, %v4636_v58 }
 0x593   :  { %2902 = vst.msk [vmem:[%s5046_s13 + $0x68] sm:$0xff] %vm2888_vm1, %v2837_v22  ;;  %v1962_v28 = vadd.f32 %v4539_v31, %v1961_v7 }
 0x594   :  { %2157 = vmatmul.bf16.gmra.mxu0 %v1692_v4  ;;  %v2712_v59 = vsel %vm699_vm0, %v2592_v3, 0.0  ;;  %v2209_v43 = vmax.f32 %v2119_v37, 0.0 }
 0x595   :  { %v2408_v6 = vpop.f32.mrf.mxu1  ;;  %2713 = vadd.xlane.f32.xlu1 %v2712_v59 }
 0x596   :  { %v2409_v5 = vadd.f32 %v4355_v18, %v2408_v6 }
 0x598   :  { %v2525_v12 = vmax.f32 %v2409_v5, 0.0  ;;  %v2672_v8 = vpop.xlane.xlu2 %2671 }
 0x599   :  { %v2838_v45 = vadd.f32 %v4460_v9, %v2672_v8  ;;  %v2120_v40 = vpop.f32.mrf.mxu0 }
 0x59a   :  { %v2121_v51 = vadd.f32 %v2120_v40, %v1952_v39  ;;  %v2593_v34 = vmul.f32 %v4363_v27, %v2525_v12  ;;  %v1969_v10 = vpop.f32.mrf.mxu3 }
 0x59b   :  { %2903 = vst.msk [vmem:[%s5046_s13 + $0x70] sm:$0xff] %vm2888_vm1, %v2838_v45 }
 0x59c   :  { %v2210_v44 = vmax.f32 %v2121_v51, 0.0  ;;  %v2715_v18 = vsel %vm699_vm0, %v2593_v34, 0.0 }
 0x59d   :  { %v2411_v36 = vpop.f32.mrf.mxu1  ;;  %2716 = vadd.xlane.f32.xlu2 %v2715_v18 }
 0x59e   :  { %v2250_v2 = vpack.c.bf16 %v2210_v44, %v2209_v43  ;;  %v2412_v27 = vadd.f32 %v4658_v57, %v2411_v36  ;;  %v1965_v36 = vadd.f32 %v4539_v31, %v1964_v15 }
 0x5a0   :  { %v2526_v55 = vmax.f32 %v2412_v27, 0.0  ;;  %2450 = vmatmul.bf16.gmra.mxu1 %v2250_v2  ;;  %v2675_v35 = vpop.xlane.xlu0 %2674  ;;  %v1967_v27 = vadd.f32 %v4539_v31, %v1966_v38 }
 0x5a1   :  { %v2839_v52 = vadd.f32 %v4460_v9, %v2675_v35  ;;  %v2123_v42 = vpop.f32.mrf.mxu0 }
 0x5a2   :  { %v2594_v56 = vmul.f32 %v4665_v14, %v2526_v55  ;;  %v2124_v21 = vadd.f32 %v2123_v42, %v1955_v32  ;;  %v1971_v18 = vpop.f32.mrf.mxu3 }
 0x5a3   :  { %2904 = vst.msk [vmem:[%s5046_s13 + $0x78] sm:$0xff] %vm2888_vm1, %v2839_v52 }
 0x5a4   :  { %v2718_v26 = vsel %vm699_vm0, %v2594_v56, 0.0  ;;  %v2211_v60 = vmax.f32 %v2124_v21, 0.0 }
 0x5a5   :  { %v2413_v62 = vpop.f32.mrf.mxu1  ;;  %2719 = vadd.xlane.f32.xlu0 %v2718_v26 }
 0x5a6   :  { %v2414_v63 = vadd.f32 %v4658_v57, %v2413_v62 }
 0x5a8   :  { %v2527_v50 = vmax.f32 %v2414_v63, 0.0  ;;  %v2678_v48 = vpop.xlane.xlu1 %2677 }
 0x5a9   :  { %v2840_v46 = vadd.f32 %v4460_v9, %v2678_v48  ;;  %v2125_v16 = vpop.f32.mrf.mxu0 }
 0x5aa   :  { %v2126_v30 = vadd.f32 %v2125_v16, %v1957_v13  ;;  %v2595_v47 = vmul.f32 %v4665_v14, %v2527_v50  ;;  %v1974_v48 = vpop.f32.mrf.mxu3 }
 0x5ab   :  { %2905 = vst.msk [vmem:[%s5046_s13 + $0x80] sm:$0xff] %vm2888_vm1, %v2840_v46 }
 0x5ac   :  { %v2212_v24 = vmax.f32 %v2126_v30, 0.0  ;;  %v2721_v29 = vsel %vm699_vm0, %v2595_v47, 0.0 }
 0x5ad   :  { %v2416_v61 = vpop.f32.mrf.mxu1  ;;  %2722 = vadd.xlane.f32.xlu1 %v2721_v29 }
 0x5ae   :  { %v2251_v49 = vpack.c.bf16 %v2212_v24, %v2211_v60  ;;  %v2417_v25 = vadd.f32 %v4658_v57, %v2416_v61  ;;  %v1970_v61 = vadd.f32 %v4539_v31, %v1969_v10 }
 0x5b0   :  { %v2528_v0 = vmax.f32 %v2417_v25, 0.0  ;;  %2455 = vmatmul.bf16.gmra.mxu1 %v2251_v49  ;;  %v2681_v54 = vpop.xlane.xlu2 %2680  ;;  %v1972_v25 = vadd.f32 %v4539_v31, %v1971_v18 }
 0x5b1   :  { %v2841_v33 = vadd.f32 %v4460_v9, %v2681_v54  ;;  %v2128_v11 = vpop.f32.mrf.mxu0 }
 0x5b2   :  { %v2596_v1 = vmul.f32 %v4665_v14, %v2528_v0  ;;  %v2129_v19 = vadd.f32 %v2128_v11, %v1960_v23 }
 0x5b3   :  { %2906 = vst.msk [vmem:[%s5046_s13 + $0x88] sm:$0xff] %vm2888_vm1, %v2841_v33  ;;  %v1976_v33 = vpop.f32.mrf.mxu3 }
 0x5b4   :  { %v2724_v41 = vsel %vm699_vm0, %v2596_v1, 0.0  ;;  %v2213_v58 = vmax.f32 %v2129_v19, 0.0 }
 0x5b5   :  { %v2418_v17 = vpop.f32.mrf.mxu1  ;;  %2725 = vadd.xlane.f32.xlu2 %v2724_v41 }
 0x5b6   :  { %v2419_v20 = vadd.f32 %v4658_v57, %v2418_v17 }
 0x5b8   :  { %v2529_v22 = vmax.f32 %v2419_v20, 0.0  ;;  %v2684_v53 = vpop.xlane.xlu0 %2683 }
 0x5b9   :  { %v2842_v4 = vadd.f32 %v4460_v9, %v2684_v53  ;;  %v2130_v3 = vpop.f32.mrf.mxu0 }
 0x5ba   :  { %v2131_v59 = vadd.f32 %v2130_v3, %v1962_v28  ;;  %v2597_v6 = vmul.f32 %v4665_v14, %v2529_v22 }
 0x5bb   :  { %2907 = vst.msk [vmem:[%s5046_s13 + $0x90] sm:$0xff] %vm2888_vm1, %v2842_v4 }
 0x5bc   :  { %v2214_v5 = vmax.f32 %v2131_v59, 0.0  ;;  %v2727_v39 = vsel %vm699_vm0, %v2597_v6, 0.0 }
 0x5bd   :  { %v2421_v37 = vpop.f32.mrf.mxu1  ;;  %2728 = vadd.xlane.f32.xlu0 %v2727_v39 }
 0x5be   :  { %v2252_v12 = vpack.c.bf16 %v2214_v5, %v2213_v58  ;;  %v2422_v8 = vadd.f32 %v4658_v57, %v2421_v37  ;;  %v1979_v58 = vpop.f32.mrf.mxu3  ;;  %v1975_v37 = vadd.f32 %v4539_v31, %v1974_v48 }
 0x5c0   :  { %v2530_v45 = vmax.f32 %v2422_v8, 0.0  ;;  %2460 = vmatmul.bf16.gmra.mxu1 %v2252_v12  ;;  %v2687_v40 = vpop.xlane.xlu1 %2686  ;;  %v1977_v8 = vadd.f32 %v4539_v31, %v1976_v33 }
 0x5c1   :  { %v2843_v51 = vadd.f32 %v4460_v9, %v2687_v40  ;;  %v2133_v34 = vpop.f32.mrf.mxu0 }
 0x5c2   :  { %v2598_v43 = vmul.f32 %v4665_v14, %v2530_v45  ;;  %v2134_v55 = vadd.f32 %v2133_v34, %v1965_v36 }
 0x5c3   :  { %2908 = vst.msk [vmem:[%s5046_s13 + $0x98] sm:$0xff] %vm2888_vm1, %v2843_v51 }
 0x5c4   :  { %v2730_v44 = vsel %vm699_vm0, %v2598_v43, 0.0  ;;  %v2215_v32 = vmax.f32 %v2134_v55, 0.0 }
 0x5c5   :  { %v2423_v7 = vpop.f32.mrf.mxu1  ;;  %2731 = vadd.xlane.f32.xlu1 %v2730_v44 }
 0x5c6   :  { %v2424_v2 = vadd.f32 %v4658_v57, %v2423_v7 }
 0x5c8   :  { %v2531_v35 = vmax.f32 %v2424_v2, 0.0  ;;  %v2690_v52 = vpop.xlane.xlu2 %2689 }
 0x5c9   :  { %v2844_v42 = vadd.f32 %v4460_v9, %v2690_v52  ;;  %v2135_v56 = vpop.f32.mrf.mxu0 }
 0x5ca   :  { %v2136_v26 = vadd.f32 %v2135_v56, %v1967_v27  ;;  %v2599_v62 = vmul.f32 %v4665_v14, %v2531_v35  ;;  %v1981_v27 = vpop.f32.mrf.mxu3 }
 0x5cb   :  { %2909 = vst.msk [vmem:[%s5046_s13 + $0xa0] sm:$0xff] %vm2888_vm1, %v2844_v42  ;;  %v1982_v48 = vadd.f32 %v4539_v31, %v1981_v27 }
 0x5cc   :  { %v2216_v63 = vmax.f32 %v2136_v26, 0.0  ;;  %v2733_v15 = vsel %vm699_vm0, %v2599_v62, 0.0 }
 0x5cd   :  { %v2426_v13 = vpop.f32.mrf.mxu1  ;;  %2734 = vadd.xlane.f32.xlu2 %v2733_v15 }
 0x5ce   :  { %v2253_v21 = vpack.c.bf16 %v2216_v63, %v2215_v32  ;;  %v2427_v50 = vadd.f32 %v4658_v57, %v2426_v13  ;;  %v1980_v13 = vadd.f32 %v4539_v31, %v1979_v58 }
 0x5d0   :  { %v2532_v46 = vmax.f32 %v2427_v50, 0.0  ;;  %2465 = vmatmul.bf16.gmra.mxu1 %v2253_v21  ;;  %v2693_v16 = vpop.xlane.xlu0 %2692 }
 0x5d1   :  { %v2845_v30 = vadd.f32 %v4460_v9, %v2693_v16  ;;  %v2138_v47 = vpop.f32.mrf.mxu0 }
 0x5d2   :  { %v2600_v60 = vmul.f32 %v4665_v14, %v2532_v46  ;;  %v2139_v0 = vadd.f32 %v2138_v47, %v1970_v61  ;;  %v1984_v50 = vpop.f32.mrf.mxu3 }
 0x5d3   :  { %2910 = vst.msk [vmem:[%s5046_s13 + $0xa8] sm:$0xff] %vm2888_vm1, %v2845_v30 }
 0x5d4   :  { %v2736_v24 = vsel %vm699_vm0, %v2600_v60, 0.0  ;;  %v2217_v23 = vmax.f32 %v2139_v0, 0.0 }
 0x5d5   :  { %v2428_v29 = vpop.f32.mrf.mxu1  ;;  %2737 = vadd.xlane.f32.xlu0 %v2736_v24 }
 0x5d6   :  { %v2429_v49 = vadd.f32 %v4658_v57, %v2428_v29 }
 0x5d8   :  { %v2533_v54 = vmax.f32 %v2429_v49, 0.0  ;;  %v2696_v38 = vpop.xlane.xlu1 %2695 }
 0x5d9   :  { %v2846_v11 = vadd.f32 %v4460_v9, %v2696_v38  ;;  %v2140_v1 = vpop.f32.mrf.mxu0 }
 0x5da   :  { %v2141_v41 = vadd.f32 %v2140_v1, %v1972_v25  ;;  %v2601_v17 = vmul.f32 %v4665_v14, %v2533_v54  ;;  %v1986_v1 = vpop.f32.mrf.mxu3 }
 0x5db   :  { %2911 = vst.msk [vmem:[%s5046_s13 + $0xb0] sm:$0xff] %vm2888_vm1, %v2846_v11 }
 0x5dc   :  { %v2218_v20 = vmax.f32 %v2141_v41, 0.0  ;;  %v2739_v28 = vsel %vm699_vm0, %v2601_v17, 0.0 }
 0x5dd   :  { %v2431_v19 = vpop.f32.mrf.mxu1  ;;  %2740 = vadd.xlane.f32.xlu1 %v2739_v28 }
 0x5de   :  { %v2254_v22 = vpack.c.bf16 %v2218_v20, %v2217_v23  ;;  %v2432_v53 = vadd.f32 %v4658_v57, %v2431_v19  ;;  %v1985_v19 = vadd.f32 %v4539_v31, %v1984_v50 }
 0x5e0   :  { %v2534_v4 = vmax.f32 %v2432_v53, 0.0  ;;  %2470 = vmatmul.bf16.gmra.mxu1 %v2254_v22  ;;  %v2699_v3 = vpop.xlane.xlu2 %2698  ;;  %v1987_v53 = vadd.f32 %v4539_v31, %v1986_v1 }
 0x5e1   :  { %v2847_v59 = vadd.f32 %v4460_v9, %v2699_v3  ;;  %v2143_v6 = vpop.f32.mrf.mxu0 }
 0x5e2   :  { %v2602_v10 = vmul.f32 %v4665_v14, %v2534_v4  ;;  %v2144_v45 = vadd.f32 %v2143_v6, %v1975_v37 }
 0x5e3   :  { %2912 = vst.msk [vmem:[%s5046_s13 + $0xb8] sm:$0xff] %vm2888_vm1, %v2847_v59 }
 0x5e4   :  { %v2742_v5 = vsel %vm699_vm0, %v2602_v10, 0.0  ;;  %v2219_v7 = vmax.f32 %v2144_v45, 0.0 }
 0x5e5   :  { %v2433_v39 = vpop.f32.mrf.mxu1  ;;  %2743 = vadd.xlane.f32.xlu2 %v2742_v5 }
 0x5e6   :  { %v2434_v12 = vadd.f32 %v4658_v57, %v2433_v39  ;;  %v1989_v39 = vpop.f32.mrf.mxu3 }
 0x5e8   :  { %v2535_v40 = vmax.f32 %v2434_v12, 0.0  ;;  %v2702_v51 = vpop.xlane.xlu0 %2701 }
 0x5e9   :  { %v2848_v34 = vadd.f32 %v4460_v9, %v2702_v51  ;;  %v2145_v43 = vpop.f32.mrf.mxu0 }
 0x5ea   :  { %v2146_v44 = vadd.f32 %v2145_v43, %v1977_v8  ;;  %v2603_v18 = vmul.f32 %v4665_v14, %v2535_v40 }
 0x5eb   :  { %2913 = vst.msk [vmem:[%s5046_s13 + $0xc0] sm:$0xff] %vm2888_vm1, %v2848_v34 }
 0x5ec   :  { %v2220_v36 = vmax.f32 %v2146_v44, 0.0  ;;  %v2745_v2 = vsel %vm699_vm0, %v2603_v18, 0.0 }
 0x5ed   :  { %v2436_v55 = vpop.f32.mrf.mxu1  ;;  %2746 = vadd.xlane.f32.xlu0 %v2745_v2 }
 0x5ee   :  { %v2255_v35 = vpack.c.bf16 %v2220_v36, %v2219_v7  ;;  %v2437_v52 = vadd.f32 %v4658_v57, %v2436_v55  ;;  %v1991_v2 = vpop.f32.mrf.mxu3  ;;  %v1990_v55 = vadd.f32 %v4539_v31, %v1989_v39 }
 0x5f0   :  { %v2536_v42 = vmax.f32 %v2437_v52, 0.0  ;;  %2475 = vmatmul.bf16.gmra.mxu1 %v2255_v35  ;;  %v2705_v56 = vpop.xlane.xlu1 %2704  ;;  %v1992_v52 = vadd.f32 %v4539_v31, %v1991_v2 }
 0x5f1   :  { %v2849_v26 = vadd.f32 %v4460_v9, %v2705_v56  ;;  %v2148_v62 = vpop.f32.mrf.mxu0 }
 0x5f2   :  { %v2604_v32 = vmul.f32 %v4665_v14, %v2536_v42  ;;  %v2149_v46 = vadd.f32 %v2148_v62, %v1980_v13 }
 0x5f3   :  { %2914 = vst.msk [vmem:[%s5046_s13 + $0xc8] sm:$0xff] %vm2888_vm1, %v2849_v26 }
 0x5f4   :  { %v2748_v63 = vsel %vm699_vm0, %v2604_v32, 0.0  ;;  %v2221_v61 = vmax.f32 %v2149_v46, 0.0 }
 0x5f5   :  { %v2438_v15 = vpop.f32.mrf.mxu1  ;;  %2749 = vadd.xlane.f32.xlu1 %v2748_v63 }
 0x5f6   :  { %v2439_v21 = vadd.f32 %v4658_v57, %v2438_v15 }
 0x5f8   :  { %v2537_v16 = vmax.f32 %v2439_v21, 0.0  ;;  %v2708_v30 = vpop.xlane.xlu2 %2707 }
 0x5f9   :  { %v2850_v47 = vadd.f32 %v4460_v9, %v2708_v30  ;;  %v2150_v60 = vpop.f32.mrf.mxu0  ;;  %v4813_v30 = vld [vmem:[#allocation2] ss:$0 sm:$0xff] }
 0x5fa   :  { %v2151_v24 = vadd.f32 %v2150_v60, %v1982_v48  ;;  %v2605_v29 = vmul.f32 %v4665_v14, %v2537_v16 }
 0x5fb   :  { %2915 = vst.msk [vmem:[%s5046_s13 + $0xd0] sm:$0xff] %vm2888_vm1, %v2850_v47 }
 0x5fc   :  { %v2222_v49 = vmax.f32 %v2151_v24, 0.0  ;;  %v2751_v25 = vsel %vm699_vm0, %v2605_v29, 0.0 }
 0x5fd   :  { %v2441_v0 = vpop.f32.mrf.mxu1  ;;  %2752 = vadd.xlane.f32.xlu2 %v2751_v25 }
 0x5fe   :  { %v2256_v54 = vpack.c.bf16 %v2222_v49, %v2221_v61  ;;  %v2442_v38 = vadd.f32 %v4658_v57, %v2441_v0 }
 0x600   :  { %v2538_v33 = vmax.f32 %v2442_v38, 0.0  ;;  %2480 = vmatmul.bf16.gmra.mxu1 %v2256_v54  ;;  %v2711_v11 = vpop.xlane.xlu0 %2710 }
 0x601   :  { %v2851_v41 = vadd.f32 %v4460_v9, %v2711_v11  ;;  %v2153_v17 = vpop.f32.mrf.mxu0 }
 0x602   :  { %v2606_v23 = vmul.f32 %v4665_v14, %v2538_v33  ;;  %v2154_v4 = vadd.f32 %v2153_v17, %v1985_v19 }
 0x603   :  { %2916 = vst.msk [vmem:[%s5046_s13 + $0xd8] sm:$0xff] %vm2888_vm1, %v2851_v41 }
 0x604   :  { %v2754_v20 = vsel %vm699_vm0, %v2606_v23, 0.0  ;;  %v2223_v37 = vmax.f32 %v2154_v4, 0.0 }
 0x605   :  { %v2443_v28 = vpop.f32.mrf.mxu1  ;;  %2755 = vadd.xlane.f32.xlu0 %v2754_v20 }
 0x606   :  { %v2444_v22 = vadd.f32 %v4658_v57, %v2443_v28 }
 0x608   :  { %v2539_v3 = vmax.f32 %v2444_v22, 0.0  ;;  %v2714_v59 = vpop.xlane.xlu1 %2713 }
 0x609   :  { %v2852_v6 = vadd.f32 %v4460_v9, %v2714_v59  ;;  %v2155_v10 = vpop.f32.mrf.mxu0 }
 0x60a   :  { %v2156_v58 = vadd.f32 %v2155_v10, %v1987_v53  ;;  %v2607_v5 = vmul.f32 %v4665_v14, %v2539_v3 }
 0x60b   :  { %2917 = vst.msk [vmem:[%s5046_s13 + $0xe0] sm:$0xff] %vm2888_vm1, %v2852_v6 }
 0x60c   :  { %v2224_v12 = vmax.f32 %v2156_v58, 0.0  ;;  %v2757_v8 = vsel %vm699_vm0, %v2607_v5, 0.0 }
 0x60d   :  { %v2446_v45 = vpop.f32.mrf.mxu1  ;;  %2758 = vadd.xlane.f32.xlu1 %v2757_v8 }
 0x60e   :  { %v2257_v40 = vpack.c.bf16 %v2224_v12, %v2223_v37  ;;  %v2447_v51 = vadd.f32 %v4658_v57, %v2446_v45 }
 0x610   :  { %v2540_v34 = vmax.f32 %v2447_v51, 0.0  ;;  %2485 = vmatmul.bf16.gmra.mxu1 %v2257_v40  ;;  %v2717_v43 = vpop.xlane.xlu2 %2716 }
 0x611   :  { %v2853_v44 = vadd.f32 %v4460_v9, %v2717_v43  ;;  %v2158_v18 = vpop.f32.mrf.mxu0 }
 0x612   :  { %v2608_v7 = vmul.f32 %v4665_v14, %v2540_v34  ;;  %v2159_v42 = vadd.f32 %v2158_v18, %v1990_v55 }
 0x613   :  { %2918 = vst.msk [vmem:[%s5046_s13 + $0xe8] sm:$0xff] %vm2888_vm1, %v2853_v44 }
 0x614   :  { %v2760_v36 = vsel %vm699_vm0, %v2608_v7, 0.0  ;;  %v2225_v13 = vmax.f32 %v2159_v42, 0.0 }
 0x615   :  { %v2448_v27 = vpop.f32.mrf.mxu1  ;;  %2761 = vadd.xlane.f32.xlu2 %v2760_v36 }
 0x616   :  { %v2449_v35 = vadd.f32 %v4658_v57, %v2448_v27 }
 0x618   :  { %v2541_v56 = vmax.f32 %v2449_v35, 0.0  ;;  %v2720_v26 = vpop.xlane.xlu0 %2719 }
 0x619   :  { %v2854_v62 = vadd.f32 %v4460_v9, %v2720_v26  ;;  %v2160_v32 = vpop.f32.mrf.mxu0 }
 0x61a   :  { %v2161_v63 = vadd.f32 %v2160_v32, %v1992_v52  ;;  %v2609_v15 = vmul.f32 %v4665_v14, %v2541_v56 }
 0x61b   :  { %2919 = vst.msk [vmem:[%s5046_s13 + $0xf0] sm:$0xff] %vm2888_vm1, %v2854_v62 }
 0x61c   :  { %v2226_v21 = vmax.f32 %v2161_v63, 0.0  ;;  %v2763_v50 = vsel %vm699_vm0, %v2609_v15, 0.0 }
 0x61d   :  { %v2451_v48 = vpop.f32.mrf.mxu1  ;;  %2764 = vadd.xlane.f32.xlu0 %v2763_v50 }
 0x61e   :  { %v2258_v31 = vpack.c.bf16 %v2226_v21, %v2225_v13  ;;  %v2452_v46 = vadd.f32 %v4658_v57, %v2451_v48 }
 0x620   :  { %v2542_v16 = vmax.f32 %v2452_v46, 0.0  ;;  %v2723_v9 = vpop.xlane.xlu1 %2722  ;;  %2490 = vmatmul.bf16.gmra.mxu1 %v2258_v31 }
 0x621   :  { %v2855_v47 = vadd.f32 %v4813_v30, %v2723_v9 }
 0x622   :  { %v2610_v60 = vmul.f32 %v4665_v14, %v2542_v16 }
 0x623   :  { %2920 = vst.msk [vmem:[%s5046_s13 + $0xf8] sm:$0xff] %vm2888_vm1, %v2855_v47 }
 0x624   :  { %v2766_v24 = vsel %vm699_vm0, %v2610_v60, 0.0 }
 0x625   :  { %v2453_v29 = vpop.f32.mrf.mxu1  ;;  %2767 = vadd.xlane.f32.xlu1 %v2766_v24 }
 0x626   :  { %v2454_v61 = vadd.f32 %v4658_v57, %v2453_v29 }
 0x628   :  { %v2543_v49 = vmax.f32 %v2454_v61, 0.0  ;;  %v2726_v25 = vpop.xlane.xlu2 %2725 }
 0x629   :  { %v2856_v0 = vadd.f32 %v4813_v30, %v2726_v25 }
 0x62a   :  { %v2611_v54 = vmul.f32 %v4665_v14, %v2543_v49 }
 0x62b   :  { %2921 = vst.msk [vmem:[%s5046_s13 + $0x100] sm:$0xff] %vm2888_vm1, %v2856_v0 }
 0x62c   :  { %v2769_v38 = vsel %vm699_vm0, %v2611_v54, 0.0 }
 0x62d   :  { %v2456_v33 = vpop.f32.mrf.mxu1  ;;  %2770 = vadd.xlane.f32.xlu2 %v2769_v38 }
 0x62e   :  { %v2457_v11 = vadd.f32 %v4658_v57, %v2456_v33 }
 0x630   :  { %v2544_v1 = vmax.f32 %v2457_v11, 0.0  ;;  %v2729_v41 = vpop.xlane.xlu0 %2728 }
 0x631   :  { %v2857_v17 = vadd.f32 %v4813_v30, %v2729_v41 }
 0x632   :  { %v2612_v23 = vmul.f32 %v4665_v14, %v2544_v1 }
 0x633   :  { %2922 = vst.msk [vmem:[%s5046_s13 + $0x108] sm:$0xff] %vm2888_vm1, %v2857_v17 }
 0x634   :  { %v2772_v20 = vsel %vm699_vm0, %v2612_v23, 0.0 }
 0x635   :  { %v2458_v28 = vpop.f32.mrf.mxu1  ;;  %2773 = vadd.xlane.f32.xlu0 %v2772_v20 }
 0x636   :  { %v2459_v19 = vadd.f32 %v4658_v57, %v2458_v28 }
 0x638   :  { %v2545_v22 = vmax.f32 %v2459_v19, 0.0  ;;  %v2732_v53 = vpop.xlane.xlu1 %2731 }
 0x639   :  { %v2858_v4 = vadd.f32 %v4813_v30, %v2732_v53 }
 0x63a   :  { %v2613_v3 = vmul.f32 %v4665_v14, %v2545_v22 }
 0x63b   :  { %2923 = vst.msk [vmem:[%s5046_s13 + $0x110] sm:$0xff] %vm2888_vm1, %v2858_v4 }
 0x63c   :  { %v2775_v59 = vsel %vm699_vm0, %v2613_v3, 0.0 }
 0x63d   :  { %v2461_v6 = vpop.f32.mrf.mxu1  ;;  %2776 = vadd.xlane.f32.xlu1 %v2775_v59 }
 0x63e   :  { %v2462_v10 = vadd.f32 %v4658_v57, %v2461_v6 }
 0x640   :  { %v2546_v58 = vmax.f32 %v2462_v10, 0.0  ;;  %v2735_v5 = vpop.xlane.xlu2 %2734 }
 0x641   :  { %v2859_v39 = vadd.f32 %v4813_v30, %v2735_v5 }
 0x642   :  { %v2614_v37 = vmul.f32 %v4665_v14, %v2546_v58 }
 0x643   :  { %2924 = vst.msk [vmem:[%s5046_s13 + $0x118] sm:$0xff] %vm2888_vm1, %v2859_v39 }
 0x644   :  { %v2778_v12 = vsel %vm699_vm0, %v2614_v37, 0.0 }
 0x645   :  { %v2463_v8 = vpop.f32.mrf.mxu1  ;;  %2779 = vadd.xlane.f32.xlu2 %v2778_v12 }
 0x646   :  { %v2464_v45 = vadd.f32 %v4658_v57, %v2463_v8 }
 0x648   :  { %v2547_v40 = vmax.f32 %v2464_v45, 0.0  ;;  %v2738_v51 = vpop.xlane.xlu0 %2737 }
 0x649   :  { %v2860_v34 = vadd.f32 %v4813_v30, %v2738_v51 }
 0x64a   :  { %v2615_v43 = vmul.f32 %v4665_v14, %v2547_v40 }
 0x64b   :  { %2925 = vst.msk [vmem:[%s5046_s13 + $0x120] sm:$0xff] %vm2888_vm1, %v2860_v34 }
 0x64c   :  { %v2781_v44 = vsel %vm699_vm0, %v2615_v43, 0.0 }
 0x64d   :  { %v2466_v18 = vpop.f32.mrf.mxu1  ;;  %2782 = vadd.xlane.f32.xlu0 %v2781_v44 }
 0x64e   :  { %v2467_v7 = vadd.f32 %v4658_v57, %v2466_v18 }
 0x650   :  { %v2548_v36 = vmax.f32 %v2467_v7, 0.0  ;;  %v2741_v2 = vpop.xlane.xlu1 %2740 }
 0x651   :  { %v2861_v27 = vadd.f32 %v4813_v30, %v2741_v2 }
 0x652   :  { %v2616_v55 = vmul.f32 %v4665_v14, %v2548_v36 }
 0x653   :  { %2926 = vst.msk [vmem:[%s5046_s13 + $0x128] sm:$0xff] %vm2888_vm1, %v2861_v27 }
 0x654   :  { %v2784_v35 = vsel %vm699_vm0, %v2616_v55, 0.0 }
 0x655   :  { %v2468_v52 = vpop.f32.mrf.mxu1  ;;  %2785 = vadd.xlane.f32.xlu1 %v2784_v35 }
 0x656   :  { %v2469_v42 = vadd.f32 %v4658_v57, %v2468_v52 }
 0x658   :  { %v2549_v56 = vmax.f32 %v2469_v42, 0.0  ;;  %v2744_v26 = vpop.xlane.xlu2 %2743 }
 0x659   :  { %v2862_v62 = vadd.f32 %v4813_v30, %v2744_v26 }
 0x65a   :  { %v2617_v32 = vmul.f32 %v4665_v14, %v2549_v56 }
 0x65b   :  { %2927 = vst.msk [vmem:[%s5046_s13 + $0x130] sm:$0xff] %vm2888_vm1, %v2862_v62 }
 0x65c   :  { %v2787_v63 = vsel %vm699_vm0, %v2617_v32, 0.0 }
 0x65d   :  { %v2471_v15 = vpop.f32.mrf.mxu1  ;;  %2788 = vadd.xlane.f32.xlu2 %v2787_v63 }
 0x65e   :  { %v2472_v13 = vadd.f32 %v4658_v57, %v2471_v15 }
 0x660   :  { %v2550_v21 = vmax.f32 %v2472_v13, 0.0  ;;  %v2747_v50 = vpop.xlane.xlu0 %2746 }
 0x661   :  { %v2863_v48 = vadd.f32 %v4813_v30, %v2747_v50 }
 0x662   :  { %v2618_v31 = vmul.f32 %v4665_v14, %v2550_v21 }
 0x663   :  { %2928 = vst.msk [vmem:[%s5046_s13 + $0x138] sm:$0xff] %vm2888_vm1, %v2863_v48 }
 0x664   :  { %v2790_v46 = vsel %vm699_vm0, %v2618_v31, 0.0 }
 0x665   :  { %v2473_v16 = vpop.f32.mrf.mxu1  ;;  %2791 = vadd.xlane.f32.xlu0 %v2790_v46 }
 0x666   :  { %v2474_v9 = vadd.f32 %v4658_v57, %v2473_v16 }
 0x668   :  { %v2551_v47 = vmax.f32 %v2474_v9, 0.0  ;;  %v2750_v60 = vpop.xlane.xlu1 %2749 }
 0x669   :  { %v2864_v24 = vadd.f32 %v4813_v30, %v2750_v60 }
 0x66a   :  { %v2619_v29 = vmul.f32 %v4665_v14, %v2551_v47 }
 0x66b   :  { %2929 = vst.msk [vmem:[%s5046_s13 + $0x140] sm:$0xff] %vm2888_vm1, %v2864_v24 }
 0x66c   :  { %v2793_v61 = vsel %vm699_vm0, %v2619_v29, 0.0 }
 0x66d   :  { %v2476_v49 = vpop.f32.mrf.mxu1  ;;  %2794 = vadd.xlane.f32.xlu1 %v2793_v61 }
 0x66e   :  { %v2477_v25 = vadd.f32 %v4658_v57, %v2476_v49 }
 0x670   :  { %v2552_v0 = vmax.f32 %v2477_v25, 0.0  ;;  %v2753_v54 = vpop.xlane.xlu2 %2752 }
 0x671   :  { %v2865_v38 = vadd.f32 %v4813_v30, %v2753_v54 }
 0x672   :  { %v2620_v33 = vmul.f32 %v4665_v14, %v2552_v0 }
 0x673   :  { %2930 = vst.msk [vmem:[%s5046_s13 + $0x148] sm:$0xff] %vm2888_vm1, %v2865_v38 }
 0x674   :  { %v2796_v11 = vsel %vm699_vm0, %v2620_v33, 0.0 }
 0x675   :  { %v2478_v1 = vpop.f32.mrf.mxu1  ;;  %2797 = vadd.xlane.f32.xlu2 %v2796_v11 }
 0x676   :  { %v2479_v41 = vadd.f32 %v4658_v57, %v2478_v1 }
 0x678   :  { %v2553_v17 = vmax.f32 %v2479_v41, 0.0  ;;  %v2756_v23 = vpop.xlane.xlu0 %2755 }
 0x679   :  { %v2866_v20 = vadd.f32 %v4813_v30, %v2756_v23 }
 0x67a   :  { %v2621_v28 = vmul.f32 %v4665_v14, %v2553_v17 }
 0x67b   :  { %2931 = vst.msk [vmem:[%s5046_s13 + $0x150] sm:$0xff] %vm2888_vm1, %v2866_v20 }
 0x67c   :  { %v2799_v19 = vsel %vm699_vm0, %v2621_v28, 0.0 }
 0x67d   :  { %v2481_v22 = vpop.f32.mrf.mxu1  ;;  %2800 = vadd.xlane.f32.xlu0 %v2799_v19 }
 0x67e   :  { %v2482_v53 = vadd.f32 %v4658_v57, %v2481_v22 }
 0x680   :  { %v2554_v4 = vmax.f32 %v2482_v53, 0.0  ;;  %v2759_v3 = vpop.xlane.xlu1 %2758 }
 0x681   :  { %v2867_v59 = vadd.f32 %v4813_v30, %v2759_v3 }
 0x682   :  { %v2622_v6 = vmul.f32 %v4665_v14, %v2554_v4 }
 0x683   :  { %2932 = vst.msk [vmem:[%s5046_s13 + $0x158] sm:$0xff] %vm2888_vm1, %v2867_v59 }
 0x684   :  { %v2802_v10 = vsel %vm699_vm0, %v2622_v6, 0.0 }
 0x685   :  { %v2483_v58 = vpop.f32.mrf.mxu1  ;;  %2803 = vadd.xlane.f32.xlu1 %v2802_v10 }
 0x686   :  { %v2484_v5 = vadd.f32 %v4658_v57, %v2483_v58 }
 0x688   :  { %v2555_v39 = vmax.f32 %v2484_v5, 0.0  ;;  %v2762_v37 = vpop.xlane.xlu2 %2761 }
 0x689   :  { %v2868_v12 = vadd.f32 %v4813_v30, %v2762_v37 }
 0x68a   :  { %v2623_v8 = vmul.f32 %v4665_v14, %v2555_v39 }
 0x68b   :  { %2933 = vst.msk [vmem:[%s5046_s13 + $0x160] sm:$0xff] %vm2888_vm1, %v2868_v12 }
 0x68c   :  { %v2805_v45 = vsel %vm699_vm0, %v2623_v8, 0.0 }
 0x68d   :  { %v2486_v40 = vpop.f32.mrf.mxu1  ;;  %2806 = vadd.xlane.f32.xlu2 %v2805_v45 }
 0x68e   :  { %v2487_v51 = vadd.f32 %v4658_v57, %v2486_v40 }
 0x690   :  { %v2556_v34 = vmax.f32 %v2487_v51, 0.0  ;;  %v2765_v43 = vpop.xlane.xlu0 %2764 }
 0x691   :  { %v2869_v44 = vadd.f32 %v4813_v30, %v2765_v43 }
 0x692   :  { %v2624_v18 = vmul.f32 %v4665_v14, %v2556_v34 }
 0x693   :  { %2934 = vst.msk [vmem:[%s5046_s13 + $0x168] sm:$0xff] %vm2888_vm1, %v2869_v44 }
 0x694   :  { %v2808_v7 = vsel %vm699_vm0, %v2624_v18, 0.0 }
 0x695   :  { %v2488_v36 = vpop.f32.mrf.mxu1  ;;  %2809 = vadd.xlane.f32.xlu0 %v2808_v7 }
 0x696   :  { %v2489_v2 = vadd.f32 %v4658_v57, %v2488_v36 }
 0x698   :  { %v2557_v27 = vmax.f32 %v2489_v2, 0.0  ;;  %v2768_v55 = vpop.xlane.xlu1 %2767 }
 0x699   :  { %v2870_v35 = vadd.f32 %v4813_v30, %v2768_v55 }
 0x69a   :  { %v2625_v52 = vmul.f32 %v4665_v14, %v2557_v27 }
 0x69b   :  { %2935 = vst.msk [vmem:[%s5046_s13 + $0x170] sm:$0xff] %vm2888_vm1, %v2870_v35 }
 0x69c   :  { %v2811_v42 = vsel %vm699_vm0, %v2625_v52, 0.0 }
 0x69d   :  { %2812 = vadd.xlane.f32.xlu1 %v2811_v42  ;;  %v2491_v56 = vpop.f32.mrf.mxu1 }
 0x69e   :  { %v2492_v26 = vadd.f32 %v4658_v57, %v2491_v56 }
 0x6a0   :  { %v2558_v62 = vmax.f32 %v2492_v26, 0.0  ;;  %v2771_v32 = vpop.xlane.xlu2 %2770 }
 0x6a1   :  { %v2871_v63 = vadd.f32 %v4813_v30, %v2771_v32 }
 0x6a2   :  { %v2626_v15 = vmul.f32 %v4665_v14, %v2558_v62 }
 0x6a3   :  { %2936 = vst.msk [vmem:[%s5046_s13 + $0x178] sm:$0xff] %vm2888_vm1, %v2871_v63 }
 0x6a4   :  { %v2814_v13 = vsel %vm699_vm0, %v2626_v15, 0.0 }
 0x6a5   :  { %v2493_v21 = vpop.f32.mrf.mxu1  ;;  %2815 = vadd.xlane.f32.xlu2 %v2814_v13 }
 0x6a6   :  { %v2494_v50 = vadd.f32 %v4658_v57, %v2493_v21 }
 0x6a8   :  { %v2559_v48 = vmax.f32 %v2494_v50, 0.0  ;;  %v2774_v31 = vpop.xlane.xlu0 %2773 }
 0x6a9   :  { %v2872_v46 = vadd.f32 %v4813_v30, %v2774_v31 }
 0x6aa   :  { %v2627_v16 = vmul.f32 %v4665_v14, %v2559_v48 }
 0x6ab   :  { %2937 = vst.msk [vmem:[%s5046_s13 + $0x180] sm:$0xff] %vm2888_vm1, %v2872_v46 }
 0x6ac   :  { %v2817_v9 = vsel %vm699_vm0, %v2627_v16, 0.0 }
 0x6ad   :  { %2818 = vadd.xlane.f32.xlu0 %v2817_v9 }
 0x6b0   :  { %v2777_v47 = vpop.xlane.xlu1 %2776 }
 0x6b1   :  { %v2873_v60 = vadd.f32 %v4813_v30, %v2777_v47 }
 0x6b3   :  { %2938 = vst.msk [vmem:[%s5046_s13 + $0x188] sm:$0xff] %vm2888_vm1, %v2873_v60 }
 0x6b8   :  { %v2780_v57 = vpop.xlane.xlu2 %2779 }
 0x6b9   :  { %v2874_v24 = vadd.f32 %v4813_v30, %v2780_v57 }
 0x6bb   :  { %2939 = vst.msk [vmem:[%s5046_s13 + $0x190] sm:$0xff] %vm2888_vm1, %v2874_v24 }
 0x6c0   :  { %v2783_v14 = vpop.xlane.xlu0 %2782 }
 0x6c1   :  { %v2875_v29 = vadd.f32 %v4813_v30, %v2783_v14 }
 0x6c3   :  { %2940 = vst.msk [vmem:[%s5046_s13 + $0x198] sm:$0xff] %vm2888_vm1, %v2875_v29 }
 0x6c8   :  { %v2786_v61 = vpop.xlane.xlu1 %2785 }
 0x6c9   :  { %v2876_v49 = vadd.f32 %v4813_v30, %v2786_v61 }
 0x6cb   :  { %2941 = vst.msk [vmem:[%s5046_s13 + $0x1a0] sm:$0xff] %vm2888_vm1, %v2876_v49 }
 0x6d0   :  { %v2789_v25 = vpop.xlane.xlu2 %2788 }
 0x6d1   :  { %v2877_v0 = vadd.f32 %v4813_v30, %v2789_v25 }
 0x6d3   :  { %2942 = vst.msk [vmem:[%s5046_s13 + $0x1a8] sm:$0xff] %vm2888_vm1, %v2877_v0 }
 0x6d8   :  { %v2792_v54 = vpop.xlane.xlu0 %2791 }
 0x6d9   :  { %v2878_v38 = vadd.f32 %v4813_v30, %v2792_v54 }
 0x6db   :  { %2943 = vst.msk [vmem:[%s5046_s13 + $0x1b0] sm:$0xff] %vm2888_vm1, %v2878_v38 }
 0x6e0   :  { %v2795_v33 = vpop.xlane.xlu1 %2794 }
 0x6e1   :  { %v2879_v11 = vadd.f32 %v4813_v30, %v2795_v33 }
 0x6e3   :  { %2944 = vst.msk [vmem:[%s5046_s13 + $0x1b8] sm:$0xff] %vm2888_vm1, %v2879_v11 }
 0x6e8   :  { %v2798_v1 = vpop.xlane.xlu2 %2797 }
 0x6e9   :  { %v2880_v41 = vadd.f32 %v4813_v30, %v2798_v1 }
 0x6eb   :  { %2945 = vst.msk [vmem:[%s5046_s13 + $0x1c0] sm:$0xff] %vm2888_vm1, %v2880_v41 }
 0x6f0   :  { %v2801_v17 = vpop.xlane.xlu0 %2800 }
 0x6f1   :  { %v2881_v23 = vadd.f32 %v4813_v30, %v2801_v17 }
 0x6f3   :  { %2946 = vst.msk [vmem:[%s5046_s13 + $0x1c8] sm:$0xff] %vm2888_vm1, %v2881_v23 }
 0x6f8   :  { %v2804_v20 = vpop.xlane.xlu1 %2803 }
 0x6f9   :  { %v2882_v28 = vadd.f32 %v4813_v30, %v2804_v20 }
 0x6fb   :  { %2947 = vst.msk [vmem:[%s5046_s13 + $0x1d0] sm:$0xff] %vm2888_vm1, %v2882_v28 }
 0x700   :  { %v2807_v19 = vpop.xlane.xlu2 %2806 }
 0x701   :  { %v2883_v22 = vadd.f32 %v4813_v30, %v2807_v19 }
 0x703   :  { %2948 = vst.msk [vmem:[%s5046_s13 + $0x1d8] sm:$0xff] %vm2888_vm1, %v2883_v22 }
 0x708   :  { %v2810_v53 = vpop.xlane.xlu0 %2809 }
 0x709   :  { %v2884_v4 = vadd.f32 %v4813_v30, %v2810_v53 }
 0x70b   :  { %2949 = vst.msk [vmem:[%s5046_s13 + $0x1e0] sm:$0xff] %vm2888_vm1, %v2884_v4 }
 0x710   :  { %v2813_v3 = vpop.xlane.xlu1 %2812 }
 0x711   :  { %v2885_v59 = vadd.f32 %v4813_v30, %v2813_v3 }
 0x713   :  { %2950 = vst.msk [vmem:[%s5046_s13 + $0x1e8] sm:$0xff] %vm2888_vm1, %v2885_v59 }
 0x718   :  { %v2816_v6 = vpop.xlane.xlu2 %2815 }
 0x719   :  { %v2886_v10 = vadd.f32 %v4813_v30, %v2816_v6 }
 0x71b   :  { %2951 = vst.msk [vmem:[%s5046_s13 + $0x1f0] sm:$0xff] %vm2888_vm1, %v2886_v10 }
 0x720   :  { %v2819_v58 = vpop.xlane.xlu0 %2818 }
 0x721   :  { %v2887_v5 = vadd.f32 %v4813_v30, %v2819_v58 }
 0x723   :  { %2952 = vst.msk [vmem:[%s5046_s13 + $0x1f8] sm:$0xff] %vm2888_vm1, %v2887_v5 }

</bundles_post_ra>
